<compile_context>
chip_gen: v5e
topology: v5e:2x2
jax: 0.10.0
libtpu: 0.0.40
codegen_flags: <defaults>
</compile_context>

<pallas_src>
import jax
import jax.numpy as jnp
from jax.experimental import pallas as pl
from jax.experimental.pallas import tpu as pltpu

# ---- model / problem dims ----
B = 2            # batch
S = 8            # target sequence length
SE = 8           # source (encoder) sequence length
EMB = 32         # args.emb
HEADS = 4        # args.heads
DH = EMB // HEADS
FFN = 4 * EMB    # position-wise FFN hidden width
DEPTH = 2        # args.depth
MAX_LEN = 64     # args.max_len
LN_EPS = 1e-5
NEG_INF = -1e9
SCALE = 1.0 / (DH ** 0.5)

BS = B * S
BSE = B * SE

# ---- packed bf16 weight blob column layout (per layer, [EMB, W_COLS]) ----
C_SA_WQKV = 0                      # width 3*EMB  (wq*SCALE | wk | wv)
C_SA_WO = C_SA_WQKV + 3 * EMB      # width EMB
C_CA_WQ = C_SA_WO + EMB            # width EMB    (wq*SCALE)
C_CA_WKV = C_CA_WQ + EMB           # width 2*EMB  (wk | wv)
C_CA_WO = C_CA_WKV + 2 * EMB       # width EMB
C_FF_W1 = C_CA_WO + EMB            # width FFN
W_COLS = C_FF_W1 + FFN             # = 384

# ---- packed f32 static blob row layout ([DEPTH*16 + 2*BS, 128]) ----
ROWS_PER_LAYER = 16
R_SA_BQKV, R_SA_BO, R_CA_BQ, R_CA_BKV, R_CA_BO = 0, 1, 2, 3, 4
R_LN1_G, R_LN1_B, R_LN2_G, R_LN2_B = 5, 6, 7, 8
R_FF_B1, R_FF_B2, R_LN3_G, R_LN3_B = 9, 10, 11, 12
MASK_S_ROW = DEPTH * ROWS_PER_LAYER          # BS rows: self-attn additive mask
MASK_C_ROW = MASK_S_ROW + BS                 # BS rows: cross-attn additive mask
P_ROWS = MASK_C_ROW + BS


# --------------------------- fused Pallas kernel: full decoder ---------------------------
def fused_decoder_kernel(d_ref, pe_ref, enc_ref, wmain_ref, wff2_ref, p_ref, o_ref):
    # x: [BS, EMB] f32 ; positional-encoding add fused in-kernel
    x = d_ref[...] + pe_ref[...]
    enc_bf = enc_ref[...]                                   # [BSE, EMB] bf16 (pre-cast)

    # static additive masks (0 where allowed, -1e9 elsewhere), one slice each
    sbias = p_ref[MASK_S_ROW:MASK_S_ROW + BS, :BS]          # [BS, BS]
    cbias = p_ref[MASK_C_ROW:MASK_C_ROW + BS, :BSE]         # [BS, BSE]

    def layer_norm(v, g, b):                                # f32 math everywhere
        mu = jnp.mean(v, axis=-1, keepdims=True)
        var = jnp.mean((v - mu) * (v - mu), axis=-1, keepdims=True)
        return (v - mu) * jax.lax.rsqrt(var + LN_EPS) * g + b

    def mha_core(q_all, kv_all, bias, wo_bf, bo):
        # q_all: [N, EMB] f32 (scale already folded into wq/bq)
        # kv_all: [M, 2*EMB] f32 -> lanes [0:EMB]=K(all heads), [EMB:2*EMB]=V
        outs = []
        for h in range(HEADS):                              # static, tiny head loop
            qh = q_all[:, h * DH:(h + 1) * DH].astype(jnp.bfloat16)
            kh = kv_all[:, h * DH:(h + 1) * DH].astype(jnp.bfloat16)
            vh = kv_all[:, EMB + h * DH:EMB + (h + 1) * DH].astype(jnp.bfloat16)
            # scores = qh @ kh^T without explicit transpose (contract dim 1 of both)
            s = jax.lax.dot_general(
                qh, kh, dimension_numbers=(((1,), (1,)), ((), ())),
                preferred_element_type=jnp.float32)
            s = s + bias                                    # additive mask (one vadd)
            s = s - jnp.max(s, axis=-1, keepdims=True)
            p = jnp.exp(s)
            p = p * pl.reciprocal(jnp.sum(p, axis=-1, keepdims=True), approx=True)
            outs.append(jnp.dot(p.astype(jnp.bfloat16), vh,
                                preferred_element_type=jnp.float32))
        # lane-concat of per-head outputs (stays in one 32-lane span), then ONE
        # output projection against the unsplit wo.
        o = jnp.concatenate(outs, axis=1).astype(jnp.bfloat16)   # [N, EMB]
        return jnp.dot(o, wo_bf, preferred_element_type=jnp.float32) + bo

    # TODO(synk): dropout layers inside DecoderLayer are identity (eval-mode semantics).
    for L in range(DEPTH):                                  # static loop over fused layers
        base = L * ROWS_PER_LAYER
        W = wmain_ref[L]                                    # [EMB, 384] bf16
        ff_w2 = wff2_ref[L]                                 # [FFN, EMB] bf16

        def prow(r, w):                                     # static slices -> [1, w] f32
            return p_ref[base + r:base + r + 1, :w]

        # 1) masked self-attention + residual + LayerNorm
        x_bf = x.astype(jnp.bfloat16)
        qkv = jnp.dot(x_bf, W[:, C_SA_WQKV:C_SA_WQKV + 3 * EMB],
                      preferred_element_type=jnp.float32) + prow(R_SA_BQKV, 3 * EMB)
        sa = mha_core(qkv[:, :EMB], qkv[:, EMB:3 * EMB], sbias,
                      W[:, C_SA_WO:C_SA_WO + EMB], prow(R_SA_BO, EMB))
        x = layer_norm(x + sa, prow(R_LN1_G, EMB), prow(R_LN1_B, EMB))

        # 2) encoder-decoder cross attention + residual + LayerNorm
        x_bf = x.astype(jnp.bfloat16)
        q_all = jnp.dot(x_bf, W[:, C_CA_WQ:C_CA_WQ + EMB],
                        preferred_element_type=jnp.float32) + prow(R_CA_BQ, EMB)
        kv_all = jnp.dot(enc_bf, W[:, C_CA_WKV:C_CA_WKV + 2 * EMB],
                         preferred_element_type=jnp.float32) + prow(R_CA_BKV, 2 * EMB)
        ca = mha_core(q_all, kv_all, cbias,
                      W[:, C_CA_WO:C_CA_WO + EMB], prow(R_CA_BO, EMB))
        x = layer_norm(x + ca, prow(R_LN2_G, EMB), prow(R_LN2_B, EMB))

        # 3) position-wise FFN (Linear -> ReLU -> Linear) + residual + LayerNorm
        x_bf = x.astype(jnp.bfloat16)
        h1 = jnp.dot(x_bf, W[:, C_FF_W1:C_FF_W1 + FFN],
                     preferred_element_type=jnp.float32) + prow(R_FF_B1, FFN)
        h1 = jnp.maximum(h1, 0.0)
        ff = jnp.dot(h1.astype(jnp.bfloat16), ff_w2,
                     preferred_element_type=jnp.float32) + prow(R_FF_B2, EMB)
        x = layer_norm(x + ff, prow(R_LN3_G, EMB), prow(R_LN3_B, EMB))

    o_ref[...] = x.astype(o_ref.dtype)


# --------------------------- wrapper / glue ---------------------------
def _full_spec(arr):
    nd = arr.ndim
    return pl.BlockSpec(arr.shape, lambda i, _nd=nd: (0,) * _nd)


def decoder_forward(d, enc_src, w_main, w_ff2, p_static, pe_tiled):
    # fold batch into rows (lane-friendly single block; no batch grid)
    d2 = d.reshape(BS, EMB)
    enc_bf = enc_src.reshape(BSE, EMB).astype(jnp.bfloat16)   # bf16 once, wrapper-side

    inputs = [d2, pe_tiled, enc_bf, w_main, w_ff2, p_static]
    in_specs = [_full_spec(a) for a in inputs]

    out = pl.pallas_call(
        fused_decoder_kernel,
        out_shape=jax.ShapeDtypeStruct((BS, EMB), jnp.float32),
        grid_spec=pltpu.PrefetchScalarGridSpec(
            num_scalar_prefetch=0,
            grid=(1,),                           # single grid step: whole problem
            in_specs=in_specs,
            out_specs=pl.BlockSpec((BS, EMB), lambda i: (0, 0)),
        ),
    )(*inputs)
    return out.reshape(B, S, EMB)


def positional_encoding(max_len, emb):
    pos = jnp.arange(max_len, dtype=jnp.float32)[:, None]
    i = jnp.arange(0, emb, 2, dtype=jnp.float32)
    angle = pos / jnp.power(10000.0, i / emb)
    pe = jnp.zeros((max_len, emb), jnp.float32)
    pe = pe.at[:, 0::2].set(jnp.sin(angle))
    pe = pe.at[:, 1::2].set(jnp.cos(angle))
    return pe


def init_params(key):
    # canonical f32 per-layer weights ([in, out] projections, [1, out] biases)
    def dense(k, din, dout):
        w = jax.random.normal(k, (din, dout), jnp.float32) * 0.02
        b = jnp.zeros((1, dout), jnp.float32)
        return w, b

    per_layer = []
    for _ in range(DEPTH):
        key, *ks = jax.random.split(key, 11)
        layer = {}
        layer["sa_wq"], layer["sa_bq"] = dense(ks[0], EMB, EMB)
        layer["sa_wk"], layer["sa_bk"] = dense(ks[1], EMB, EMB)
        layer["sa_wv"], layer["sa_bv"] = dense(ks[2], EMB, EMB)
        layer["sa_wo"], layer["sa_bo"] = dense(ks[3], EMB, EMB)
        layer["ln1_g"], layer["ln1_b"] = jnp.ones((1, EMB)), jnp.zeros((1, EMB))
        layer["ca_wq"], layer["ca_bq"] = dense(ks[4], EMB, EMB)
        layer["ca_wk"], layer["ca_bk"] = dense(ks[5], EMB, EMB)
        layer["ca_wv"], layer["ca_bv"] = dense(ks[6], EMB, EMB)
        layer["ca_wo"], layer["ca_bo"] = dense(ks[7], EMB, EMB)
        layer["ln2_g"], layer["ln2_b"] = jnp.ones((1, EMB)), jnp.zeros((1, EMB))
        layer["ff_w1"], layer["ff_b1"] = dense(ks[8], EMB, FFN)
        layer["ff_w2"], layer["ff_b2"] = dense(ks[9], FFN, EMB)
        layer["ln3_g"], layer["ln3_b"] = jnp.ones((1, EMB)), jnp.zeros((1, EMB))
        per_layer.append(layer)
    return per_layer


def pack_params(per_layer, trg_mask, src_mask):
    """One-time init packing: 2 bf16 weight blobs + 1 f32 bias/LN/mask blob.

    SCALE is folded into wq / bq here (strictly free, init-time only)."""
    def pad_lanes(a, width=128):
        return jnp.pad(a, ((0, 0), (0, width - a.shape[-1])))

    wmain_layers, wff2_layers, prow_layers = [], [], []
    for l in per_layer:
        wqkv_sa = jnp.concatenate([l["sa_wq"] * SCALE, l["sa_wk"], l["sa_wv"]], axis=1)
        wkv_ca = jnp.concatenate([l["ca_wk"], l["ca_wv"]], axis=1)
        w_row = jnp.concatenate(
            [wqkv_sa, l["sa_wo"], l["ca_wq"] * SCALE, wkv_ca, l["ca_wo"], l["ff_w1"]],
            axis=1)                                               # [EMB, 384]
        wmain_layers.append(w_row.astype(jnp.bfloat16))
        wff2_layers.append(l["ff_w2"].astype(jnp.bfloat16))       # [FFN, EMB]

        rows = [
            jnp.concatenate([l["sa_bq"] * SCALE, l["sa_bk"], l["sa_bv"]], axis=1),  # 0
            l["sa_bo"],                                                             # 1
            l["ca_bq"] * SCALE,                                                     # 2
            jnp.concatenate([l["ca_bk"], l["ca_bv"]], axis=1),                      # 3
            l["ca_bo"],                                                             # 4
            l["ln1_g"], l["ln1_b"],                                                 # 5,6
            l["ln2_g"], l["ln2_b"],                                                 # 7,8
            l["ff_b1"],                                                             # 9
            l["ff_b2"],                                                             # 10
            l["ln3_g"], l["ln3_b"],                                                 # 11,12
        ]
        rows = [pad_lanes(r) for r in rows]
        rows.append(jnp.zeros((ROWS_PER_LAYER - len(rows), 128), jnp.float32))
        prow_layers.append(jnp.concatenate(rows, axis=0))          # [16, 128]

    # static block-diagonal additive masks: 0 where allowed, -1e9 elsewhere
    allow_s = jnp.kron(jnp.eye(B, dtype=jnp.float32), trg_mask)    # [BS, BS]
    allow_c = jnp.kron(jnp.eye(B, dtype=jnp.float32), src_mask)    # [BS, BSE]
    sbias = pad_lanes((1.0 - allow_s) * NEG_INF)                   # [BS, 128]
    cbias = pad_lanes((1.0 - allow_c) * NEG_INF)                   # [BS, 128]

    w_main = jnp.stack(wmain_layers, axis=0)                       # [DEPTH, EMB, 384] bf16
    w_ff2 = jnp.stack(wff2_layers, axis=0)                         # [DEPTH, FFN, EMB] bf16
    p_static = jnp.concatenate(prow_layers + [sbias, cbias], axis=0)  # [P_ROWS, 128] f32
    assert p_static.shape == (P_ROWS, 128)
    assert w_main.shape == (DEPTH, EMB, W_COLS)
    return w_main, w_ff2, p_static


if __name__ == "__main__":
    key = jax.random.PRNGKey(0)
    k_d, k_e, k_p = jax.random.split(key, 3)

    d = jax.random.normal(k_d, (B, S, EMB), jnp.float32)
    enc_src = jax.random.normal(k_e, (B, SE, EMB), jnp.float32)
    # causal target mask [S, S] (1 = keep), full source mask [S, SE]
    trg_mask = jnp.tril(jnp.ones((S, S), jnp.float32))
    src_mask = jnp.ones((S, SE), jnp.float32)

    per_layer = init_params(k_p)
    w_main, w_ff2, p_static = pack_params(per_layer, trg_mask, src_mask)

    # positional encoding precomputed once at init (static), tiled over batch rows
    pe = positional_encoding(MAX_LEN, EMB)
    pe_tiled = jnp.tile(pe[:S], (B, 1))            # [BS, EMB]

    fwd = jax.jit(decoder_forward)
    out = fwd(d, enc_src, w_main, w_ff2, p_static, pe_tiled)
    out = jax.block_until_ready(out)
    assert out.shape == (B, S, EMB)
    print("KERNEL_OK")
</pallas_src>

<mosaic_0001>
module attributes {stable_mosaic.version = 11 : i64} {
  func.func @fused_decoder_kernel(%arg0: i32, %arg1: memref<16x32xf32, #tpu.memory_space<vmem>>, %arg2: memref<16x32xf32, #tpu.memory_space<vmem>>, %arg3: memref<16x32xbf16, #tpu.memory_space<vmem>>, %arg4: memref<2x32x384xbf16, #tpu.memory_space<vmem>>, %arg5: memref<2x128x32xbf16, #tpu.memory_space<vmem>>, %arg6: memref<64x128xf32, #tpu.memory_space<vmem>>, %arg7: memref<16x32xf32, #tpu.memory_space<vmem>>) attributes {dimension_semantics = [#tpu.dimension_semantics<arbitrary>], iteration_bounds = array<i64: 1>, scalar_prefetch = 0 : i64, scratch_operands = 0 : i64, tpu.core_type = #tpu.core_type<tc>, window_params = [{pipeline_mode = #tpu.pipeline_mode<synchronous>, transform_indices = @transform_0, window_bounds = array<i64: 16, 32>}, {pipeline_mode = #tpu.pipeline_mode<synchronous>, transform_indices = @transform_1, window_bounds = array<i64: 16, 32>}, {pipeline_mode = #tpu.pipeline_mode<synchronous>, transform_indices = @transform_2, window_bounds = array<i64: 16, 32>}, {pipeline_mode = #tpu.pipeline_mode<synchronous>, transform_indices = @transform_3, window_bounds = array<i64: 2, 32, 384>}, {pipeline_mode = #tpu.pipeline_mode<synchronous>, transform_indices = @transform_4, window_bounds = array<i64: 2, 128, 32>}, {pipeline_mode = #tpu.pipeline_mode<synchronous>, transform_indices = @transform_5, window_bounds = array<i64: 64, 128>}, {pipeline_mode = #tpu.pipeline_mode<synchronous>, transform_indices = @transform_6, window_bounds = array<i64: 16, 32>}]} {
    %c0 = arith.constant 0 : index
    %c0_0 = arith.constant 0 : index
    %0 = vector.load %arg1[%c0, %c0_0] : memref<16x32xf32, #tpu.memory_space<vmem>>, vector<16x32xf32>
    %c0_1 = arith.constant 0 : index
    %c0_2 = arith.constant 0 : index
    %1 = vector.load %arg2[%c0_1, %c0_2] : memref<16x32xf32, #tpu.memory_space<vmem>>, vector<16x32xf32>
    %2 = arith.addf %0, %1 : vector<16x32xf32>
    %c0_3 = arith.constant 0 : index
    %c0_4 = arith.constant 0 : index
    %3 = vector.load %arg3[%c0_3, %c0_4] : memref<16x32xbf16, #tpu.memory_space<vmem>>, vector<16x32xbf16>
    %c32 = arith.constant 32 : index
    %c0_5 = arith.constant 0 : index
    %4 = vector.load %arg6[%c32, %c0_5] : memref<64x128xf32, #tpu.memory_space<vmem>>, vector<16x16xf32>
    %c48 = arith.constant 48 : index
    %c0_6 = arith.constant 0 : index
    %5 = vector.load %arg6[%c48, %c0_6] : memref<64x128xf32, #tpu.memory_space<vmem>>, vector<16x16xf32>
    %c0_7 = arith.constant 0 : index
    %c0_8 = arith.constant 0 : index
    %c0_9 = arith.constant 0 : index
    %6 = vector.load %arg4[%c0_7, %c0_8, %c0_9] : memref<2x32x384xbf16, #tpu.memory_space<vmem>>, vector<1x32x384xbf16>
    %7 = vector.shape_cast %6 : vector<1x32x384xbf16> to vector<32x384xbf16>
    %c0_10 = arith.constant 0 : index
    %c0_11 = arith.constant 0 : index
    %c0_12 = arith.constant 0 : index
    %8 = vector.load %arg5[%c0_10, %c0_11, %c0_12] : memref<2x128x32xbf16, #tpu.memory_space<vmem>>, vector<1x128x32xbf16>
    %9 = vector.shape_cast %8 : vector<1x128x32xbf16> to vector<128x32xbf16>
    %10 = arith.truncf %2 : vector<16x32xf32> to vector<16x32xbf16>
    %11 = vector.extract_strided_slice %7 {offsets = [0, 0], sizes = [32, 96], strides = [1, 1]} : vector<32x384xbf16> to vector<32x96xbf16>
    %cst = arith.constant dense<0.000000e+00> : vector<16x96xf32>
    %12 = tpu.matmul %10, %11, %cst {dimension_numbers = #tpu.dot_dimension_numbers<[1], [0], [0], [1], [0, 0, 1, 1], [], []>} : vector<16x32xbf16>, vector<32x96xbf16>, vector<16x96xf32> -> vector<16x96xf32>
    %c0_13 = arith.constant 0 : index
    %c0_14 = arith.constant 0 : index
    %13 = vector.load %arg6[%c0_13, %c0_14] : memref<64x128xf32, #tpu.memory_space<vmem>>, vector<1x96xf32>
    %14 = vector.broadcast %13 : vector<1x96xf32> to vector<16x96xf32>
    %15 = arith.addf %12, %14 : vector<16x96xf32>
    %16 = vector.extract_strided_slice %15 {offsets = [0, 0], sizes = [16, 32], strides = [1, 1]} : vector<16x96xf32> to vector<16x32xf32>
    %17 = vector.extract_strided_slice %15 {offsets = [0, 32], sizes = [16, 64], strides = [1, 1]} : vector<16x96xf32> to vector<16x64xf32>
    %18 = vector.extract_strided_slice %7 {offsets = [0, 96], sizes = [32, 32], strides = [1, 1]} : vector<32x384xbf16> to vector<32x32xbf16>
    %c1 = arith.constant 1 : index
    %c0_15 = arith.constant 0 : index
    %19 = vector.load %arg6[%c1, %c0_15] : memref<64x128xf32, #tpu.memory_space<vmem>>, vector<1x32xf32>
    %20 = vector.extract_strided_slice %16 {offsets = [0, 0], sizes = [16, 8], strides = [1, 1]} : vector<16x32xf32> to vector<16x8xf32>
    %21 = arith.truncf %20 : vector<16x8xf32> to vector<16x8xbf16>
    %22 = vector.extract_strided_slice %17 {offsets = [0, 0], sizes = [16, 8], strides = [1, 1]} : vector<16x64xf32> to vector<16x8xf32>
    %23 = arith.truncf %22 : vector<16x8xf32> to vector<16x8xbf16>
    %24 = vector.extract_strided_slice %17 {offsets = [0, 32], sizes = [16, 8], strides = [1, 1]} : vector<16x64xf32> to vector<16x8xf32>
    %25 = arith.truncf %24 : vector<16x8xf32> to vector<16x8xbf16>
    %cst_16 = arith.constant dense<0.000000e+00> : vector<16x16xf32>
    %26 = tpu.matmul %21, %23, %cst_16 {dimension_numbers = #tpu.dot_dimension_numbers<[1], [1], [0], [0], [0, 0, 1, 0], [], []>} : vector<16x8xbf16>, vector<16x8xbf16>, vector<16x16xf32> -> vector<16x16xf32>
    %27 = arith.addf %26, %4 : vector<16x16xf32>
    %cst_17 = arith.constant dense<0xFF800000> : vector<16xf32>
    %28 = vector.multi_reduction <maximumf>, %27, %cst_17 [1] : vector<16x16xf32> to vector<16xf32>
    %29 = vector.shape_cast %28 : vector<16xf32> to vector<16x1xf32>
    %30 = vector.broadcast %29 : vector<16x1xf32> to vector<16x16xf32>
    %31 = arith.subf %27, %30 : vector<16x16xf32>
    %32 = math.exp %31 : vector<16x16xf32>
    %cst_18 = arith.constant dense<0.000000e+00> : vector<16xf32>
    %33 = vector.multi_reduction <add>, %32, %cst_18 [1] : vector<16x16xf32> to vector<16xf32>
    %34 = vector.shape_cast %33 : vector<16xf32> to vector<16x1xf32>
    %35 = tpu.reciprocal %34 {approx = true} : vector<16x1xf32> -> vector<16x1xf32>
    %36 = vector.broadcast %35 : vector<16x1xf32> to vector<16x16xf32>
    %37 = arith.mulf %32, %36 : vector<16x16xf32>
    %38 = arith.truncf %37 : vector<16x16xf32> to vector<16x16xbf16>
    %cst_19 = arith.constant dense<0.000000e+00> : vector<16x8xf32>
    %39 = tpu.matmul %38, %25, %cst_19 {dimension_numbers = #tpu.dot_dimension_numbers<[1], [0], [0], [1], [0, 0, 1, 1], [], []>} : vector<16x16xbf16>, vector<16x8xbf16>, vector<16x8xf32> -> vector<16x8xf32>
    %40 = vector.extract_strided_slice %16 {offsets = [0, 8], sizes = [16, 8], strides = [1, 1]} : vector<16x32xf32> to vector<16x8xf32>
    %41 = arith.truncf %40 : vector<16x8xf32> to vector<16x8xbf16>
    %42 = vector.extract_strided_slice %17 {offsets = [0, 8], sizes = [16, 8], strides = [1, 1]} : vector<16x64xf32> to vector<16x8xf32>
    %43 = arith.truncf %42 : vector<16x8xf32> to vector<16x8xbf16>
    %44 = vector.extract_strided_slice %17 {offsets = [0, 40], sizes = [16, 8], strides = [1, 1]} : vector<16x64xf32> to vector<16x8xf32>
    %45 = arith.truncf %44 : vector<16x8xf32> to vector<16x8xbf16>
    %cst_20 = arith.constant dense<0.000000e+00> : vector<16x16xf32>
    %46 = tpu.matmul %41, %43, %cst_20 {dimension_numbers = #tpu.dot_dimension_numbers<[1], [1], [0], [0], [0, 0, 1, 0], [], []>} : vector<16x8xbf16>, vector<16x8xbf16>, vector<16x16xf32> -> vector<16x16xf32>
    %47 = arith.addf %46, %4 : vector<16x16xf32>
    %cst_21 = arith.constant dense<0xFF800000> : vector<16xf32>
    %48 = vector.multi_reduction <maximumf>, %47, %cst_21 [1] : vector<16x16xf32> to vector<16xf32>
    %49 = vector.shape_cast %48 : vector<16xf32> to vector<16x1xf32>
    %50 = vector.broadcast %49 : vector<16x1xf32> to vector<16x16xf32>
    %51 = arith.subf %47, %50 : vector<16x16xf32>
    %52 = math.exp %51 : vector<16x16xf32>
    %cst_22 = arith.constant dense<0.000000e+00> : vector<16xf32>
    %53 = vector.multi_reduction <add>, %52, %cst_22 [1] : vector<16x16xf32> to vector<16xf32>
    %54 = vector.shape_cast %53 : vector<16xf32> to vector<16x1xf32>
    %55 = tpu.reciprocal %54 {approx = true} : vector<16x1xf32> -> vector<16x1xf32>
    %56 = vector.broadcast %55 : vector<16x1xf32> to vector<16x16xf32>
    %57 = arith.mulf %52, %56 : vector<16x16xf32>
    %58 = arith.truncf %57 : vector<16x16xf32> to vector<16x16xbf16>
    %cst_23 = arith.constant dense<0.000000e+00> : vector<16x8xf32>
    %59 = tpu.matmul %58, %45, %cst_23 {dimension_numbers = #tpu.dot_dimension_numbers<[1], [0], [0], [1], [0, 0, 1, 1], [], []>} : vector<16x16xbf16>, vector<16x8xbf16>, vector<16x8xf32> -> vector<16x8xf32>
    %60 = vector.extract_strided_slice %16 {offsets = [0, 16], sizes = [16, 8], strides = [1, 1]} : vector<16x32xf32> to vector<16x8xf32>
    %61 = arith.truncf %60 : vector<16x8xf32> to vector<16x8xbf16>
    %62 = vector.extract_strided_slice %17 {offsets = [0, 16], sizes = [16, 8], strides = [1, 1]} : vector<16x64xf32> to vector<16x8xf32>
    %63 = arith.truncf %62 : vector<16x8xf32> to vector<16x8xbf16>
    %64 = vector.extract_strided_slice %17 {offsets = [0, 48], sizes = [16, 8], strides = [1, 1]} : vector<16x64xf32> to vector<16x8xf32>
    %65 = arith.truncf %64 : vector<16x8xf32> to vector<16x8xbf16>
    %cst_24 = arith.constant dense<0.000000e+00> : vector<16x16xf32>
    %66 = tpu.matmul %61, %63, %cst_24 {dimension_numbers = #tpu.dot_dimension_numbers<[1], [1], [0], [0], [0, 0, 1, 0], [], []>} : vector<16x8xbf16>, vector<16x8xbf16>, vector<16x16xf32> -> vector<16x16xf32>
    %67 = arith.addf %66, %4 : vector<16x16xf32>
    %cst_25 = arith.constant dense<0xFF800000> : vector<16xf32>
    %68 = vector.multi_reduction <maximumf>, %67, %cst_25 [1] : vector<16x16xf32> to vector<16xf32>
    %69 = vector.shape_cast %68 : vector<16xf32> to vector<16x1xf32>
    %70 = vector.broadcast %69 : vector<16x1xf32> to vector<16x16xf32>
    %71 = arith.subf %67, %70 : vector<16x16xf32>
    %72 = math.exp %71 : vector<16x16xf32>
    %cst_26 = arith.constant dense<0.000000e+00> : vector<16xf32>
    %73 = vector.multi_reduction <add>, %72, %cst_26 [1] : vector<16x16xf32> to vector<16xf32>
    %74 = vector.shape_cast %73 : vector<16xf32> to vector<16x1xf32>
    %75 = tpu.reciprocal %74 {approx = true} : vector<16x1xf32> -> vector<16x1xf32>
    %76 = vector.broadcast %75 : vector<16x1xf32> to vector<16x16xf32>
    %77 = arith.mulf %72, %76 : vector<16x16xf32>
    %78 = arith.truncf %77 : vector<16x16xf32> to vector<16x16xbf16>
    %cst_27 = arith.constant dense<0.000000e+00> : vector<16x8xf32>
    %79 = tpu.matmul %78, %65, %cst_27 {dimension_numbers = #tpu.dot_dimension_numbers<[1], [0], [0], [1], [0, 0, 1, 1], [], []>} : vector<16x16xbf16>, vector<16x8xbf16>, vector<16x8xf32> -> vector<16x8xf32>
    %80 = vector.extract_strided_slice %16 {offsets = [0, 24], sizes = [16, 8], strides = [1, 1]} : vector<16x32xf32> to vector<16x8xf32>
    %81 = arith.truncf %80 : vector<16x8xf32> to vector<16x8xbf16>
    %82 = vector.extract_strided_slice %17 {offsets = [0, 24], sizes = [16, 8], strides = [1, 1]} : vector<16x64xf32> to vector<16x8xf32>
    %83 = arith.truncf %82 : vector<16x8xf32> to vector<16x8xbf16>
    %84 = vector.extract_strided_slice %17 {offsets = [0, 56], sizes = [16, 8], strides = [1, 1]} : vector<16x64xf32> to vector<16x8xf32>
    %85 = arith.truncf %84 : vector<16x8xf32> to vector<16x8xbf16>
    %cst_28 = arith.constant dense<0.000000e+00> : vector<16x16xf32>
    %86 = tpu.matmul %81, %83, %cst_28 {dimension_numbers = #tpu.dot_dimension_numbers<[1], [1], [0], [0], [0, 0, 1, 0], [], []>} : vector<16x8xbf16>, vector<16x8xbf16>, vector<16x16xf32> -> vector<16x16xf32>
    %87 = arith.addf %86, %4 : vector<16x16xf32>
    %cst_29 = arith.constant dense<0xFF800000> : vector<16xf32>
    %88 = vector.multi_reduction <maximumf>, %87, %cst_29 [1] : vector<16x16xf32> to vector<16xf32>
    %89 = vector.shape_cast %88 : vector<16xf32> to vector<16x1xf32>
    %90 = vector.broadcast %89 : vector<16x1xf32> to vector<16x16xf32>
    %91 = arith.subf %87, %90 : vector<16x16xf32>
    %92 = math.exp %91 : vector<16x16xf32>
    %cst_30 = arith.constant dense<0.000000e+00> : vector<16xf32>
    %93 = vector.multi_reduction <add>, %92, %cst_30 [1] : vector<16x16xf32> to vector<16xf32>
    %94 = vector.shape_cast %93 : vector<16xf32> to vector<16x1xf32>
    %95 = tpu.reciprocal %94 {approx = true} : vector<16x1xf32> -> vector<16x1xf32>
    %96 = vector.broadcast %95 : vector<16x1xf32> to vector<16x16xf32>
    %97 = arith.mulf %92, %96 : vector<16x16xf32>
    %98 = arith.truncf %97 : vector<16x16xf32> to vector<16x16xbf16>
    %cst_31 = arith.constant dense<0.000000e+00> : vector<16x8xf32>
    %99 = tpu.matmul %98, %85, %cst_31 {dimension_numbers = #tpu.dot_dimension_numbers<[1], [0], [0], [1], [0, 0, 1, 1], [], []>} : vector<16x16xbf16>, vector<16x8xbf16>, vector<16x8xf32> -> vector<16x8xf32>
    %100 = tpu.concatenate %39, %59, %79, %99 in 1 : vector<16x8xf32>, vector<16x8xf32>, vector<16x8xf32>, vector<16x8xf32> -> vector<16x32xf32>
    %101 = arith.truncf %100 : vector<16x32xf32> to vector<16x32xbf16>
    %cst_32 = arith.constant dense<0.000000e+00> : vector<16x32xf32>
    %102 = tpu.matmul %101, %18, %cst_32 {dimension_numbers = #tpu.dot_dimension_numbers<[1], [0], [0], [1], [0, 0, 1, 1], [], []>} : vector<16x32xbf16>, vector<32x32xbf16>, vector<16x32xf32> -> vector<16x32xf32>
    %103 = vector.broadcast %19 : vector<1x32xf32> to vector<16x32xf32>
    %104 = arith.addf %102, %103 : vector<16x32xf32>
    %105 = arith.addf %2, %104 : vector<16x32xf32>
    %c5 = arith.constant 5 : index
    %c0_33 = arith.constant 0 : index
    %106 = vector.load %arg6[%c5, %c0_33] : memref<64x128xf32, #tpu.memory_space<vmem>>, vector<1x32xf32>
    %c6 = arith.constant 6 : index
    %c0_34 = arith.constant 0 : index
    %107 = vector.load %arg6[%c6, %c0_34] : memref<64x128xf32, #tpu.memory_space<vmem>>, vector<1x32xf32>
    %cst_35 = arith.constant dense<0.000000e+00> : vector<16xf32>
    %108 = vector.multi_reduction <add>, %105, %cst_35 [1] : vector<16x32xf32> to vector<16xf32>
    %109 = vector.shape_cast %108 : vector<16xf32> to vector<16x1xf32>
    %cst_36 = arith.constant 3.200000e+01 : f32
    %110 = vector.broadcast %cst_36 : f32 to vector<16x1xf32>
    %111 = arith.divf %109, %110 : vector<16x1xf32>
    %112 = vector.broadcast %111 : vector<16x1xf32> to vector<16x32xf32>
    %113 = arith.subf %105, %112 : vector<16x32xf32>
    %114 = vector.broadcast %111 : vector<16x1xf32> to vector<16x32xf32>
    %115 = arith.subf %105, %114 : vector<16x32xf32>
    %116 = arith.mulf %113, %115 : vector<16x32xf32>
    %cst_37 = arith.constant dense<0.000000e+00> : vector<16xf32>
    %117 = vector.multi_reduction <add>, %116, %cst_37 [1] : vector<16x32xf32> to vector<16xf32>
    %118 = vector.shape_cast %117 : vector<16xf32> to vector<16x1xf32>
    %cst_38 = arith.constant 3.200000e+01 : f32
    %119 = vector.broadcast %cst_38 : f32 to vector<16x1xf32>
    %120 = arith.divf %118, %119 : vector<16x1xf32>
    %121 = vector.broadcast %111 : vector<16x1xf32> to vector<16x32xf32>
    %122 = arith.subf %105, %121 : vector<16x32xf32>
    %cst_39 = arith.constant 9.99999974E-6 : f32
    %123 = vector.broadcast %cst_39 : f32 to vector<16x1xf32>
    %124 = arith.addf %120, %123 : vector<16x1xf32>
    %125 = math.rsqrt %124 : vector<16x1xf32>
    %126 = vector.broadcast %125 : vector<16x1xf32> to vector<16x32xf32>
    %127 = arith.mulf %122, %126 : vector<16x32xf32>
    %128 = vector.broadcast %106 : vector<1x32xf32> to vector<16x32xf32>
    %129 = arith.mulf %127, %128 : vector<16x32xf32>
    %130 = vector.broadcast %107 : vector<1x32xf32> to vector<16x32xf32>
    %131 = arith.addf %129, %130 : vector<16x32xf32>
    %132 = arith.truncf %131 : vector<16x32xf32> to vector<16x32xbf16>
    %133 = vector.extract_strided_slice %7 {offsets = [0, 128], sizes = [32, 32], strides = [1, 1]} : vector<32x384xbf16> to vector<32x32xbf16>
    %cst_40 = arith.constant dense<0.000000e+00> : vector<16x32xf32>
    %134 = tpu.matmul %132, %133, %cst_40 {dimension_numbers = #tpu.dot_dimension_numbers<[1], [0], [0], [1], [0, 0, 1, 1], [], []>} : vector<16x32xbf16>, vector<32x32xbf16>, vector<16x32xf32> -> vector<16x32xf32>
    %c2 = arith.constant 2 : index
    %c0_41 = arith.constant 0 : index
    %135 = vector.load %arg6[%c2, %c0_41] : memref<64x128xf32, #tpu.memory_space<vmem>>, vector<1x32xf32>
    %136 = vector.broadcast %135 : vector<1x32xf32> to vector<16x32xf32>
    %137 = arith.addf %134, %136 : vector<16x32xf32>
    %138 = vector.extract_strided_slice %7 {offsets = [0, 160], sizes = [32, 64], strides = [1, 1]} : vector<32x384xbf16> to vector<32x64xbf16>
    %cst_42 = arith.constant dense<0.000000e+00> : vector<16x64xf32>
    %139 = tpu.matmul %3, %138, %cst_42 {dimension_numbers = #tpu.dot_dimension_numbers<[1], [0], [0], [1], [0, 0, 1, 1], [], []>} : vector<16x32xbf16>, vector<32x64xbf16>, vector<16x64xf32> -> vector<16x64xf32>
    %c3 = arith.constant 3 : index
    %c0_43 = arith.constant 0 : index
    %140 = vector.load %arg6[%c3, %c0_43] : memref<64x128xf32, #tpu.memory_space<vmem>>, vector<1x64xf32>
    %141 = vector.broadcast %140 : vector<1x64xf32> to vector<16x64xf32>
    %142 = arith.addf %139, %141 : vector<16x64xf32>
    %143 = vector.extract_strided_slice %7 {offsets = [0, 224], sizes = [32, 32], strides = [1, 1]} : vector<32x384xbf16> to vector<32x32xbf16>
    %c4 = arith.constant 4 : index
    %c0_44 = arith.constant 0 : index
    %144 = vector.load %arg6[%c4, %c0_44] : memref<64x128xf32, #tpu.memory_space<vmem>>, vector<1x32xf32>
    %145 = vector.extract_strided_slice %137 {offsets = [0, 0], sizes = [16, 8], strides = [1, 1]} : vector<16x32xf32> to vector<16x8xf32>
    %146 = arith.truncf %145 : vector<16x8xf32> to vector<16x8xbf16>
    %147 = vector.extract_strided_slice %142 {offsets = [0, 0], sizes = [16, 8], strides = [1, 1]} : vector<16x64xf32> to vector<16x8xf32>
    %148 = arith.truncf %147 : vector<16x8xf32> to vector<16x8xbf16>
    %149 = vector.extract_strided_slice %142 {offsets = [0, 32], sizes = [16, 8], strides = [1, 1]} : vector<16x64xf32> to vector<16x8xf32>
    %150 = arith.truncf %149 : vector<16x8xf32> to vector<16x8xbf16>
    %cst_45 = arith.constant dense<0.000000e+00> : vector<16x16xf32>
    %151 = tpu.matmul %146, %148, %cst_45 {dimension_numbers = #tpu.dot_dimension_numbers<[1], [1], [0], [0], [0, 0, 1, 0], [], []>} : vector<16x8xbf16>, vector<16x8xbf16>, vector<16x16xf32> -> vector<16x16xf32>
    %152 = arith.addf %151, %5 : vector<16x16xf32>
    %cst_46 = arith.constant dense<0xFF800000> : vector<16xf32>
    %153 = vector.multi_reduction <maximumf>, %152, %cst_46 [1] : vector<16x16xf32> to vector<16xf32>
    %154 = vector.shape_cast %153 : vector<16xf32> to vector<16x1xf32>
    %155 = vector.broadcast %154 : vector<16x1xf32> to vector<16x16xf32>
    %156 = arith.subf %152, %155 : vector<16x16xf32>
    %157 = math.exp %156 : vector<16x16xf32>
    %cst_47 = arith.constant dense<0.000000e+00> : vector<16xf32>
    %158 = vector.multi_reduction <add>, %157, %cst_47 [1] : vector<16x16xf32> to vector<16xf32>
    %159 = vector.shape_cast %158 : vector<16xf32> to vector<16x1xf32>
    %160 = tpu.reciprocal %159 {approx = true} : vector<16x1xf32> -> vector<16x1xf32>
    %161 = vector.broadcast %160 : vector<16x1xf32> to vector<16x16xf32>
    %162 = arith.mulf %157, %161 : vector<16x16xf32>
    %163 = arith.truncf %162 : vector<16x16xf32> to vector<16x16xbf16>
    %cst_48 = arith.constant dense<0.000000e+00> : vector<16x8xf32>
    %164 = tpu.matmul %163, %150, %cst_48 {dimension_numbers = #tpu.dot_dimension_numbers<[1], [0], [0], [1], [0, 0, 1, 1], [], []>} : vector<16x16xbf16>, vector<16x8xbf16>, vector<16x8xf32> -> vector<16x8xf32>
    %165 = vector.extract_strided_slice %137 {offsets = [0, 8], sizes = [16, 8], strides = [1, 1]} : vector<16x32xf32> to vector<16x8xf32>
    %166 = arith.truncf %165 : vector<16x8xf32> to vector<16x8xbf16>
    %167 = vector.extract_strided_slice %142 {offsets = [0, 8], sizes = [16, 8], strides = [1, 1]} : vector<16x64xf32> to vector<16x8xf32>
    %168 = arith.truncf %167 : vector<16x8xf32> to vector<16x8xbf16>
    %169 = vector.extract_strided_slice %142 {offsets = [0, 40], sizes = [16, 8], strides = [1, 1]} : vector<16x64xf32> to vector<16x8xf32>
    %170 = arith.truncf %169 : vector<16x8xf32> to vector<16x8xbf16>
    %cst_49 = arith.constant dense<0.000000e+00> : vector<16x16xf32>
    %171 = tpu.matmul %166, %168, %cst_49 {dimension_numbers = #tpu.dot_dimension_numbers<[1], [1], [0], [0], [0, 0, 1, 0], [], []>} : vector<16x8xbf16>, vector<16x8xbf16>, vector<16x16xf32> -> vector<16x16xf32>
    %172 = arith.addf %171, %5 : vector<16x16xf32>
    %cst_50 = arith.constant dense<0xFF800000> : vector<16xf32>
    %173 = vector.multi_reduction <maximumf>, %172, %cst_50 [1] : vector<16x16xf32> to vector<16xf32>
    %174 = vector.shape_cast %173 : vector<16xf32> to vector<16x1xf32>
    %175 = vector.broadcast %174 : vector<16x1xf32> to vector<16x16xf32>
    %176 = arith.subf %172, %175 : vector<16x16xf32>
    %177 = math.exp %176 : vector<16x16xf32>
    %cst_51 = arith.constant dense<0.000000e+00> : vector<16xf32>
    %178 = vector.multi_reduction <add>, %177, %cst_51 [1] : vector<16x16xf32> to vector<16xf32>
    %179 = vector.shape_cast %178 : vector<16xf32> to vector<16x1xf32>
    %180 = tpu.reciprocal %179 {approx = true} : vector<16x1xf32> -> vector<16x1xf32>
    %181 = vector.broadcast %180 : vector<16x1xf32> to vector<16x16xf32>
    %182 = arith.mulf %177, %181 : vector<16x16xf32>
    %183 = arith.truncf %182 : vector<16x16xf32> to vector<16x16xbf16>
    %cst_52 = arith.constant dense<0.000000e+00> : vector<16x8xf32>
    %184 = tpu.matmul %183, %170, %cst_52 {dimension_numbers = #tpu.dot_dimension_numbers<[1], [0], [0], [1], [0, 0, 1, 1], [], []>} : vector<16x16xbf16>, vector<16x8xbf16>, vector<16x8xf32> -> vector<16x8xf32>
    %185 = vector.extract_strided_slice %137 {offsets = [0, 16], sizes = [16, 8], strides = [1, 1]} : vector<16x32xf32> to vector<16x8xf32>
    %186 = arith.truncf %185 : vector<16x8xf32> to vector<16x8xbf16>
    %187 = vector.extract_strided_slice %142 {offsets = [0, 16], sizes = [16, 8], strides = [1, 1]} : vector<16x64xf32> to vector<16x8xf32>
    %188 = arith.truncf %187 : vector<16x8xf32> to vector<16x8xbf16>
    %189 = vector.extract_strided_slice %142 {offsets = [0, 48], sizes = [16, 8], strides = [1, 1]} : vector<16x64xf32> to vector<16x8xf32>
    %190 = arith.truncf %189 : vector<16x8xf32> to vector<16x8xbf16>
    %cst_53 = arith.constant dense<0.000000e+00> : vector<16x16xf32>
    %191 = tpu.matmul %186, %188, %cst_53 {dimension_numbers = #tpu.dot_dimension_numbers<[1], [1], [0], [0], [0, 0, 1, 0], [], []>} : vector<16x8xbf16>, vector<16x8xbf16>, vector<16x16xf32> -> vector<16x16xf32>
    %192 = arith.addf %191, %5 : vector<16x16xf32>
    %cst_54 = arith.constant dense<0xFF800000> : vector<16xf32>
    %193 = vector.multi_reduction <maximumf>, %192, %cst_54 [1] : vector<16x16xf32> to vector<16xf32>
    %194 = vector.shape_cast %193 : vector<16xf32> to vector<16x1xf32>
    %195 = vector.broadcast %194 : vector<16x1xf32> to vector<16x16xf32>
    %196 = arith.subf %192, %195 : vector<16x16xf32>
    %197 = math.exp %196 : vector<16x16xf32>
    %cst_55 = arith.constant dense<0.000000e+00> : vector<16xf32>
    %198 = vector.multi_reduction <add>, %197, %cst_55 [1] : vector<16x16xf32> to vector<16xf32>
    %199 = vector.shape_cast %198 : vector<16xf32> to vector<16x1xf32>
    %200 = tpu.reciprocal %199 {approx = true} : vector<16x1xf32> -> vector<16x1xf32>
    %201 = vector.broadcast %200 : vector<16x1xf32> to vector<16x16xf32>
    %202 = arith.mulf %197, %201 : vector<16x16xf32>
    %203 = arith.truncf %202 : vector<16x16xf32> to vector<16x16xbf16>
    %cst_56 = arith.constant dense<0.000000e+00> : vector<16x8xf32>
    %204 = tpu.matmul %203, %190, %cst_56 {dimension_numbers = #tpu.dot_dimension_numbers<[1], [0], [0], [1], [0, 0, 1, 1], [], []>} : vector<16x16xbf16>, vector<16x8xbf16>, vector<16x8xf32> -> vector<16x8xf32>
    %205 = vector.extract_strided_slice %137 {offsets = [0, 24], sizes = [16, 8], strides = [1, 1]} : vector<16x32xf32> to vector<16x8xf32>
    %206 = arith.truncf %205 : vector<16x8xf32> to vector<16x8xbf16>
    %207 = vector.extract_strided_slice %142 {offsets = [0, 24], sizes = [16, 8], strides = [1, 1]} : vector<16x64xf32> to vector<16x8xf32>
    %208 = arith.truncf %207 : vector<16x8xf32> to vector<16x8xbf16>
    %209 = vector.extract_strided_slice %142 {offsets = [0, 56], sizes = [16, 8], strides = [1, 1]} : vector<16x64xf32> to vector<16x8xf32>
    %210 = arith.truncf %209 : vector<16x8xf32> to vector<16x8xbf16>
    %cst_57 = arith.constant dense<0.000000e+00> : vector<16x16xf32>
    %211 = tpu.matmul %206, %208, %cst_57 {dimension_numbers = #tpu.dot_dimension_numbers<[1], [1], [0], [0], [0, 0, 1, 0], [], []>} : vector<16x8xbf16>, vector<16x8xbf16>, vector<16x16xf32> -> vector<16x16xf32>
    %212 = arith.addf %211, %5 : vector<16x16xf32>
    %cst_58 = arith.constant dense<0xFF800000> : vector<16xf32>
    %213 = vector.multi_reduction <maximumf>, %212, %cst_58 [1] : vector<16x16xf32> to vector<16xf32>
    %214 = vector.shape_cast %213 : vector<16xf32> to vector<16x1xf32>
    %215 = vector.broadcast %214 : vector<16x1xf32> to vector<16x16xf32>
    %216 = arith.subf %212, %215 : vector<16x16xf32>
    %217 = math.exp %216 : vector<16x16xf32>
    %cst_59 = arith.constant dense<0.000000e+00> : vector<16xf32>
    %218 = vector.multi_reduction <add>, %217, %cst_59 [1] : vector<16x16xf32> to vector<16xf32>
    %219 = vector.shape_cast %218 : vector<16xf32> to vector<16x1xf32>
    %220 = tpu.reciprocal %219 {approx = true} : vector<16x1xf32> -> vector<16x1xf32>
    %221 = vector.broadcast %220 : vector<16x1xf32> to vector<16x16xf32>
    %222 = arith.mulf %217, %221 : vector<16x16xf32>
    %223 = arith.truncf %222 : vector<16x16xf32> to vector<16x16xbf16>
    %cst_60 = arith.constant dense<0.000000e+00> : vector<16x8xf32>
    %224 = tpu.matmul %223, %210, %cst_60 {dimension_numbers = #tpu.dot_dimension_numbers<[1], [0], [0], [1], [0, 0, 1, 1], [], []>} : vector<16x16xbf16>, vector<16x8xbf16>, vector<16x8xf32> -> vector<16x8xf32>
    %225 = tpu.concatenate %164, %184, %204, %224 in 1 : vector<16x8xf32>, vector<16x8xf32>, vector<16x8xf32>, vector<16x8xf32> -> vector<16x32xf32>
    %226 = arith.truncf %225 : vector<16x32xf32> to vector<16x32xbf16>
    %cst_61 = arith.constant dense<0.000000e+00> : vector<16x32xf32>
    %227 = tpu.matmul %226, %143, %cst_61 {dimension_numbers = #tpu.dot_dimension_numbers<[1], [0], [0], [1], [0, 0, 1, 1], [], []>} : vector<16x32xbf16>, vector<32x32xbf16>, vector<16x32xf32> -> vector<16x32xf32>
    %228 = vector.broadcast %144 : vector<1x32xf32> to vector<16x32xf32>
    %229 = arith.addf %227, %228 : vector<16x32xf32>
    %230 = arith.addf %131, %229 : vector<16x32xf32>
    %c7 = arith.constant 7 : index
    %c0_62 = arith.constant 0 : index
    %231 = vector.load %arg6[%c7, %c0_62] : memref<64x128xf32, #tpu.memory_space<vmem>>, vector<1x32xf32>
    %c8 = arith.constant 8 : index
    %c0_63 = arith.constant 0 : index
    %232 = vector.load %arg6[%c8, %c0_63] : memref<64x128xf32, #tpu.memory_space<vmem>>, vector<1x32xf32>
    %cst_64 = arith.constant dense<0.000000e+00> : vector<16xf32>
    %233 = vector.multi_reduction <add>, %230, %cst_64 [1] : vector<16x32xf32> to vector<16xf32>
    %234 = vector.shape_cast %233 : vector<16xf32> to vector<16x1xf32>
    %cst_65 = arith.constant 3.200000e+01 : f32
    %235 = vector.broadcast %cst_65 : f32 to vector<16x1xf32>
    %236 = arith.divf %234, %235 : vector<16x1xf32>
    %237 = vector.broadcast %236 : vector<16x1xf32> to vector<16x32xf32>
    %238 = arith.subf %230, %237 : vector<16x32xf32>
    %239 = vector.broadcast %236 : vector<16x1xf32> to vector<16x32xf32>
    %240 = arith.subf %230, %239 : vector<16x32xf32>
    %241 = arith.mulf %238, %240 : vector<16x32xf32>
    %cst_66 = arith.constant dense<0.000000e+00> : vector<16xf32>
    %242 = vector.multi_reduction <add>, %241, %cst_66 [1] : vector<16x32xf32> to vector<16xf32>
    %243 = vector.shape_cast %242 : vector<16xf32> to vector<16x1xf32>
    %cst_67 = arith.constant 3.200000e+01 : f32
    %244 = vector.broadcast %cst_67 : f32 to vector<16x1xf32>
    %245 = arith.divf %243, %244 : vector<16x1xf32>
    %246 = vector.broadcast %236 : vector<16x1xf32> to vector<16x32xf32>
    %247 = arith.subf %230, %246 : vector<16x32xf32>
    %cst_68 = arith.constant 9.99999974E-6 : f32
    %248 = vector.broadcast %cst_68 : f32 to vector<16x1xf32>
    %249 = arith.addf %245, %248 : vector<16x1xf32>
    %250 = math.rsqrt %249 : vector<16x1xf32>
    %251 = vector.broadcast %250 : vector<16x1xf32> to vector<16x32xf32>
    %252 = arith.mulf %247, %251 : vector<16x32xf32>
    %253 = vector.broadcast %231 : vector<1x32xf32> to vector<16x32xf32>
    %254 = arith.mulf %252, %253 : vector<16x32xf32>
    %255 = vector.broadcast %232 : vector<1x32xf32> to vector<16x32xf32>
    %256 = arith.addf %254, %255 : vector<16x32xf32>
    %257 = arith.truncf %256 : vector<16x32xf32> to vector<16x32xbf16>
    %258 = vector.extract_strided_slice %7 {offsets = [0, 256], sizes = [32, 128], strides = [1, 1]} : vector<32x384xbf16> to vector<32x128xbf16>
    %cst_69 = arith.constant dense<0.000000e+00> : vector<16x128xf32>
    %259 = tpu.matmul %257, %258, %cst_69 {dimension_numbers = #tpu.dot_dimension_numbers<[1], [0], [0], [1], [0, 0, 1, 1], [], []>} : vector<16x32xbf16>, vector<32x128xbf16>, vector<16x128xf32> -> vector<16x128xf32>
    %c9 = arith.constant 9 : index
    %c0_70 = arith.constant 0 : index
    %260 = vector.load %arg6[%c9, %c0_70] : memref<64x128xf32, #tpu.memory_space<vmem>>, vector<1x128xf32>
    %261 = vector.broadcast %260 : vector<1x128xf32> to vector<16x128xf32>
    %262 = arith.addf %259, %261 : vector<16x128xf32>
    %cst_71 = arith.constant 0.000000e+00 : f32
    %263 = vector.broadcast %cst_71 : f32 to vector<16x128xf32>
    %264 = arith.maximumf %262, %263 : vector<16x128xf32>
    %265 = arith.truncf %264 : vector<16x128xf32> to vector<16x128xbf16>
    %cst_72 = arith.constant dense<0.000000e+00> : vector<16x32xf32>
    %266 = tpu.matmul %265, %9, %cst_72 {dimension_numbers = #tpu.dot_dimension_numbers<[1], [0], [0], [1], [0, 0, 1, 1], [], []>} : vector<16x128xbf16>, vector<128x32xbf16>, vector<16x32xf32> -> vector<16x32xf32>
    %c10 = arith.constant 10 : index
    %c0_73 = arith.constant 0 : index
    %267 = vector.load %arg6[%c10, %c0_73] : memref<64x128xf32, #tpu.memory_space<vmem>>, vector<1x32xf32>
    %268 = vector.broadcast %267 : vector<1x32xf32> to vector<16x32xf32>
    %269 = arith.addf %266, %268 : vector<16x32xf32>
    %270 = arith.addf %256, %269 : vector<16x32xf32>
    %c11 = arith.constant 11 : index
    %c0_74 = arith.constant 0 : index
    %271 = vector.load %arg6[%c11, %c0_74] : memref<64x128xf32, #tpu.memory_space<vmem>>, vector<1x32xf32>
    %c12 = arith.constant 12 : index
    %c0_75 = arith.constant 0 : index
    %272 = vector.load %arg6[%c12, %c0_75] : memref<64x128xf32, #tpu.memory_space<vmem>>, vector<1x32xf32>
    %cst_76 = arith.constant dense<0.000000e+00> : vector<16xf32>
    %273 = vector.multi_reduction <add>, %270, %cst_76 [1] : vector<16x32xf32> to vector<16xf32>
    %274 = vector.shape_cast %273 : vector<16xf32> to vector<16x1xf32>
    %cst_77 = arith.constant 3.200000e+01 : f32
    %275 = vector.broadcast %cst_77 : f32 to vector<16x1xf32>
    %276 = arith.divf %274, %275 : vector<16x1xf32>
    %277 = vector.broadcast %276 : vector<16x1xf32> to vector<16x32xf32>
    %278 = arith.subf %270, %277 : vector<16x32xf32>
    %279 = vector.broadcast %276 : vector<16x1xf32> to vector<16x32xf32>
    %280 = arith.subf %270, %279 : vector<16x32xf32>
    %281 = arith.mulf %278, %280 : vector<16x32xf32>
    %cst_78 = arith.constant dense<0.000000e+00> : vector<16xf32>
    %282 = vector.multi_reduction <add>, %281, %cst_78 [1] : vector<16x32xf32> to vector<16xf32>
    %283 = vector.shape_cast %282 : vector<16xf32> to vector<16x1xf32>
    %cst_79 = arith.constant 3.200000e+01 : f32
    %284 = vector.broadcast %cst_79 : f32 to vector<16x1xf32>
    %285 = arith.divf %283, %284 : vector<16x1xf32>
    %286 = vector.broadcast %276 : vector<16x1xf32> to vector<16x32xf32>
    %287 = arith.subf %270, %286 : vector<16x32xf32>
    %cst_80 = arith.constant 9.99999974E-6 : f32
    %288 = vector.broadcast %cst_80 : f32 to vector<16x1xf32>
    %289 = arith.addf %285, %288 : vector<16x1xf32>
    %290 = math.rsqrt %289 : vector<16x1xf32>
    %291 = vector.broadcast %290 : vector<16x1xf32> to vector<16x32xf32>
    %292 = arith.mulf %287, %291 : vector<16x32xf32>
    %293 = vector.broadcast %271 : vector<1x32xf32> to vector<16x32xf32>
    %294 = arith.mulf %292, %293 : vector<16x32xf32>
    %295 = vector.broadcast %272 : vector<1x32xf32> to vector<16x32xf32>
    %296 = arith.addf %294, %295 : vector<16x32xf32>
    %c1_81 = arith.constant 1 : index
    %c0_82 = arith.constant 0 : index
    %c0_83 = arith.constant 0 : index
    %297 = vector.load %arg4[%c1_81, %c0_82, %c0_83] : memref<2x32x384xbf16, #tpu.memory_space<vmem>>, vector<1x32x384xbf16>
    %298 = vector.shape_cast %297 : vector<1x32x384xbf16> to vector<32x384xbf16>
    %c1_84 = arith.constant 1 : index
    %c0_85 = arith.constant 0 : index
    %c0_86 = arith.constant 0 : index
    %299 = vector.load %arg5[%c1_84, %c0_85, %c0_86] : memref<2x128x32xbf16, #tpu.memory_space<vmem>>, vector<1x128x32xbf16>
    %300 = vector.shape_cast %299 : vector<1x128x32xbf16> to vector<128x32xbf16>
    %301 = arith.truncf %296 : vector<16x32xf32> to vector<16x32xbf16>
    %302 = vector.extract_strided_slice %298 {offsets = [0, 0], sizes = [32, 96], strides = [1, 1]} : vector<32x384xbf16> to vector<32x96xbf16>
    %cst_87 = arith.constant dense<0.000000e+00> : vector<16x96xf32>
    %303 = tpu.matmul %301, %302, %cst_87 {dimension_numbers = #tpu.dot_dimension_numbers<[1], [0], [0], [1], [0, 0, 1, 1], [], []>} : vector<16x32xbf16>, vector<32x96xbf16>, vector<16x96xf32> -> vector<16x96xf32>
    %c16 = arith.constant 16 : index
    %c0_88 = arith.constant 0 : index
    %304 = vector.load %arg6[%c16, %c0_88] : memref<64x128xf32, #tpu.memory_space<vmem>>, vector<1x96xf32>
    %305 = vector.broadcast %304 : vector<1x96xf32> to vector<16x96xf32>
    %306 = arith.addf %303, %305 : vector<16x96xf32>
    %307 = vector.extract_strided_slice %306 {offsets = [0, 0], sizes = [16, 32], strides = [1, 1]} : vector<16x96xf32> to vector<16x32xf32>
    %308 = vector.extract_strided_slice %306 {offsets = [0, 32], sizes = [16, 64], strides = [1, 1]} : vector<16x96xf32> to vector<16x64xf32>
    %309 = vector.extract_strided_slice %298 {offsets = [0, 96], sizes = [32, 32], strides = [1, 1]} : vector<32x384xbf16> to vector<32x32xbf16>
    %c17 = arith.constant 17 : index
    %c0_89 = arith.constant 0 : index
    %310 = vector.load %arg6[%c17, %c0_89] : memref<64x128xf32, #tpu.memory_space<vmem>>, vector<1x32xf32>
    %311 = vector.extract_strided_slice %307 {offsets = [0, 0], sizes = [16, 8], strides = [1, 1]} : vector<16x32xf32> to vector<16x8xf32>
    %312 = arith.truncf %311 : vector<16x8xf32> to vector<16x8xbf16>
    %313 = vector.extract_strided_slice %308 {offsets = [0, 0], sizes = [16, 8], strides = [1, 1]} : vector<16x64xf32> to vector<16x8xf32>
    %314 = arith.truncf %313 : vector<16x8xf32> to vector<16x8xbf16>
    %315 = vector.extract_strided_slice %308 {offsets = [0, 32], sizes = [16, 8], strides = [1, 1]} : vector<16x64xf32> to vector<16x8xf32>
    %316 = arith.truncf %315 : vector<16x8xf32> to vector<16x8xbf16>
    %cst_90 = arith.constant dense<0.000000e+00> : vector<16x16xf32>
    %317 = tpu.matmul %312, %314, %cst_90 {dimension_numbers = #tpu.dot_dimension_numbers<[1], [1], [0], [0], [0, 0, 1, 0], [], []>} : vector<16x8xbf16>, vector<16x8xbf16>, vector<16x16xf32> -> vector<16x16xf32>
    %318 = arith.addf %317, %4 : vector<16x16xf32>
    %cst_91 = arith.constant dense<0xFF800000> : vector<16xf32>
    %319 = vector.multi_reduction <maximumf>, %318, %cst_91 [1] : vector<16x16xf32> to vector<16xf32>
    %320 = vector.shape_cast %319 : vector<16xf32> to vector<16x1xf32>
    %321 = vector.broadcast %320 : vector<16x1xf32> to vector<16x16xf32>
    %322 = arith.subf %318, %321 : vector<16x16xf32>
    %323 = math.exp %322 : vector<16x16xf32>
    %cst_92 = arith.constant dense<0.000000e+00> : vector<16xf32>
    %324 = vector.multi_reduction <add>, %323, %cst_92 [1] : vector<16x16xf32> to vector<16xf32>
    %325 = vector.shape_cast %324 : vector<16xf32> to vector<16x1xf32>
    %326 = tpu.reciprocal %325 {approx = true} : vector<16x1xf32> -> vector<16x1xf32>
    %327 = vector.broadcast %326 : vector<16x1xf32> to vector<16x16xf32>
    %328 = arith.mulf %323, %327 : vector<16x16xf32>
    %329 = arith.truncf %328 : vector<16x16xf32> to vector<16x16xbf16>
    %cst_93 = arith.constant dense<0.000000e+00> : vector<16x8xf32>
    %330 = tpu.matmul %329, %316, %cst_93 {dimension_numbers = #tpu.dot_dimension_numbers<[1], [0], [0], [1], [0, 0, 1, 1], [], []>} : vector<16x16xbf16>, vector<16x8xbf16>, vector<16x8xf32> -> vector<16x8xf32>
    %331 = vector.extract_strided_slice %307 {offsets = [0, 8], sizes = [16, 8], strides = [1, 1]} : vector<16x32xf32> to vector<16x8xf32>
    %332 = arith.truncf %331 : vector<16x8xf32> to vector<16x8xbf16>
    %333 = vector.extract_strided_slice %308 {offsets = [0, 8], sizes = [16, 8], strides = [1, 1]} : vector<16x64xf32> to vector<16x8xf32>
    %334 = arith.truncf %333 : vector<16x8xf32> to vector<16x8xbf16>
    %335 = vector.extract_strided_slice %308 {offsets = [0, 40], sizes = [16, 8], strides = [1, 1]} : vector<16x64xf32> to vector<16x8xf32>
    %336 = arith.truncf %335 : vector<16x8xf32> to vector<16x8xbf16>
    %cst_94 = arith.constant dense<0.000000e+00> : vector<16x16xf32>
    %337 = tpu.matmul %332, %334, %cst_94 {dimension_numbers = #tpu.dot_dimension_numbers<[1], [1], [0], [0], [0, 0, 1, 0], [], []>} : vector<16x8xbf16>, vector<16x8xbf16>, vector<16x16xf32> -> vector<16x16xf32>
    %338 = arith.addf %337, %4 : vector<16x16xf32>
    %cst_95 = arith.constant dense<0xFF800000> : vector<16xf32>
    %339 = vector.multi_reduction <maximumf>, %338, %cst_95 [1] : vector<16x16xf32> to vector<16xf32>
    %340 = vector.shape_cast %339 : vector<16xf32> to vector<16x1xf32>
    %341 = vector.broadcast %340 : vector<16x1xf32> to vector<16x16xf32>
    %342 = arith.subf %338, %341 : vector<16x16xf32>
    %343 = math.exp %342 : vector<16x16xf32>
    %cst_96 = arith.constant dense<0.000000e+00> : vector<16xf32>
    %344 = vector.multi_reduction <add>, %343, %cst_96 [1] : vector<16x16xf32> to vector<16xf32>
    %345 = vector.shape_cast %344 : vector<16xf32> to vector<16x1xf32>
    %346 = tpu.reciprocal %345 {approx = true} : vector<16x1xf32> -> vector<16x1xf32>
    %347 = vector.broadcast %346 : vector<16x1xf32> to vector<16x16xf32>
    %348 = arith.mulf %343, %347 : vector<16x16xf32>
    %349 = arith.truncf %348 : vector<16x16xf32> to vector<16x16xbf16>
    %cst_97 = arith.constant dense<0.000000e+00> : vector<16x8xf32>
    %350 = tpu.matmul %349, %336, %cst_97 {dimension_numbers = #tpu.dot_dimension_numbers<[1], [0], [0], [1], [0, 0, 1, 1], [], []>} : vector<16x16xbf16>, vector<16x8xbf16>, vector<16x8xf32> -> vector<16x8xf32>
    %351 = vector.extract_strided_slice %307 {offsets = [0, 16], sizes = [16, 8], strides = [1, 1]} : vector<16x32xf32> to vector<16x8xf32>
    %352 = arith.truncf %351 : vector<16x8xf32> to vector<16x8xbf16>
    %353 = vector.extract_strided_slice %308 {offsets = [0, 16], sizes = [16, 8], strides = [1, 1]} : vector<16x64xf32> to vector<16x8xf32>
    %354 = arith.truncf %353 : vector<16x8xf32> to vector<16x8xbf16>
    %355 = vector.extract_strided_slice %308 {offsets = [0, 48], sizes = [16, 8], strides = [1, 1]} : vector<16x64xf32> to vector<16x8xf32>
    %356 = arith.truncf %355 : vector<16x8xf32> to vector<16x8xbf16>
    %cst_98 = arith.constant dense<0.000000e+00> : vector<16x16xf32>
    %357 = tpu.matmul %352, %354, %cst_98 {dimension_numbers = #tpu.dot_dimension_numbers<[1], [1], [0], [0], [0, 0, 1, 0], [], []>} : vector<16x8xbf16>, vector<16x8xbf16>, vector<16x16xf32> -> vector<16x16xf32>
    %358 = arith.addf %357, %4 : vector<16x16xf32>
    %cst_99 = arith.constant dense<0xFF800000> : vector<16xf32>
    %359 = vector.multi_reduction <maximumf>, %358, %cst_99 [1] : vector<16x16xf32> to vector<16xf32>
    %360 = vector.shape_cast %359 : vector<16xf32> to vector<16x1xf32>
    %361 = vector.broadcast %360 : vector<16x1xf32> to vector<16x16xf32>
    %362 = arith.subf %358, %361 : vector<16x16xf32>
    %363 = math.exp %362 : vector<16x16xf32>
    %cst_100 = arith.constant dense<0.000000e+00> : vector<16xf32>
    %364 = vector.multi_reduction <add>, %363, %cst_100 [1] : vector<16x16xf32> to vector<16xf32>
    %365 = vector.shape_cast %364 : vector<16xf32> to vector<16x1xf32>
    %366 = tpu.reciprocal %365 {approx = true} : vector<16x1xf32> -> vector<16x1xf32>
    %367 = vector.broadcast %366 : vector<16x1xf32> to vector<16x16xf32>
    %368 = arith.mulf %363, %367 : vector<16x16xf32>
    %369 = arith.truncf %368 : vector<16x16xf32> to vector<16x16xbf16>
    %cst_101 = arith.constant dense<0.000000e+00> : vector<16x8xf32>
    %370 = tpu.matmul %369, %356, %cst_101 {dimension_numbers = #tpu.dot_dimension_numbers<[1], [0], [0], [1], [0, 0, 1, 1], [], []>} : vector<16x16xbf16>, vector<16x8xbf16>, vector<16x8xf32> -> vector<16x8xf32>
    %371 = vector.extract_strided_slice %307 {offsets = [0, 24], sizes = [16, 8], strides = [1, 1]} : vector<16x32xf32> to vector<16x8xf32>
    %372 = arith.truncf %371 : vector<16x8xf32> to vector<16x8xbf16>
    %373 = vector.extract_strided_slice %308 {offsets = [0, 24], sizes = [16, 8], strides = [1, 1]} : vector<16x64xf32> to vector<16x8xf32>
    %374 = arith.truncf %373 : vector<16x8xf32> to vector<16x8xbf16>
    %375 = vector.extract_strided_slice %308 {offsets = [0, 56], sizes = [16, 8], strides = [1, 1]} : vector<16x64xf32> to vector<16x8xf32>
    %376 = arith.truncf %375 : vector<16x8xf32> to vector<16x8xbf16>
    %cst_102 = arith.constant dense<0.000000e+00> : vector<16x16xf32>
    %377 = tpu.matmul %372, %374, %cst_102 {dimension_numbers = #tpu.dot_dimension_numbers<[1], [1], [0], [0], [0, 0, 1, 0], [], []>} : vector<16x8xbf16>, vector<16x8xbf16>, vector<16x16xf32> -> vector<16x16xf32>
    %378 = arith.addf %377, %4 : vector<16x16xf32>
    %cst_103 = arith.constant dense<0xFF800000> : vector<16xf32>
    %379 = vector.multi_reduction <maximumf>, %378, %cst_103 [1] : vector<16x16xf32> to vector<16xf32>
    %380 = vector.shape_cast %379 : vector<16xf32> to vector<16x1xf32>
    %381 = vector.broadcast %380 : vector<16x1xf32> to vector<16x16xf32>
    %382 = arith.subf %378, %381 : vector<16x16xf32>
    %383 = math.exp %382 : vector<16x16xf32>
    %cst_104 = arith.constant dense<0.000000e+00> : vector<16xf32>
    %384 = vector.multi_reduction <add>, %383, %cst_104 [1] : vector<16x16xf32> to vector<16xf32>
    %385 = vector.shape_cast %384 : vector<16xf32> to vector<16x1xf32>
    %386 = tpu.reciprocal %385 {approx = true} : vector<16x1xf32> -> vector<16x1xf32>
    %387 = vector.broadcast %386 : vector<16x1xf32> to vector<16x16xf32>
    %388 = arith.mulf %383, %387 : vector<16x16xf32>
    %389 = arith.truncf %388 : vector<16x16xf32> to vector<16x16xbf16>
    %cst_105 = arith.constant dense<0.000000e+00> : vector<16x8xf32>
    %390 = tpu.matmul %389, %376, %cst_105 {dimension_numbers = #tpu.dot_dimension_numbers<[1], [0], [0], [1], [0, 0, 1, 1], [], []>} : vector<16x16xbf16>, vector<16x8xbf16>, vector<16x8xf32> -> vector<16x8xf32>
    %391 = tpu.concatenate %330, %350, %370, %390 in 1 : vector<16x8xf32>, vector<16x8xf32>, vector<16x8xf32>, vector<16x8xf32> -> vector<16x32xf32>
    %392 = arith.truncf %391 : vector<16x32xf32> to vector<16x32xbf16>
    %cst_106 = arith.constant dense<0.000000e+00> : vector<16x32xf32>
    %393 = tpu.matmul %392, %309, %cst_106 {dimension_numbers = #tpu.dot_dimension_numbers<[1], [0], [0], [1], [0, 0, 1, 1], [], []>} : vector<16x32xbf16>, vector<32x32xbf16>, vector<16x32xf32> -> vector<16x32xf32>
    %394 = vector.broadcast %310 : vector<1x32xf32> to vector<16x32xf32>
    %395 = arith.addf %393, %394 : vector<16x32xf32>
    %396 = arith.addf %296, %395 : vector<16x32xf32>
    %c21 = arith.constant 21 : index
    %c0_107 = arith.constant 0 : index
    %397 = vector.load %arg6[%c21, %c0_107] : memref<64x128xf32, #tpu.memory_space<vmem>>, vector<1x32xf32>
    %c22 = arith.constant 22 : index
    %c0_108 = arith.constant 0 : index
    %398 = vector.load %arg6[%c22, %c0_108] : memref<64x128xf32, #tpu.memory_space<vmem>>, vector<1x32xf32>
    %cst_109 = arith.constant dense<0.000000e+00> : vector<16xf32>
    %399 = vector.multi_reduction <add>, %396, %cst_109 [1] : vector<16x32xf32> to vector<16xf32>
    %400 = vector.shape_cast %399 : vector<16xf32> to vector<16x1xf32>
    %cst_110 = arith.constant 3.200000e+01 : f32
    %401 = vector.broadcast %cst_110 : f32 to vector<16x1xf32>
    %402 = arith.divf %400, %401 : vector<16x1xf32>
    %403 = vector.broadcast %402 : vector<16x1xf32> to vector<16x32xf32>
    %404 = arith.subf %396, %403 : vector<16x32xf32>
    %405 = vector.broadcast %402 : vector<16x1xf32> to vector<16x32xf32>
    %406 = arith.subf %396, %405 : vector<16x32xf32>
    %407 = arith.mulf %404, %406 : vector<16x32xf32>
    %cst_111 = arith.constant dense<0.000000e+00> : vector<16xf32>
    %408 = vector.multi_reduction <add>, %407, %cst_111 [1] : vector<16x32xf32> to vector<16xf32>
    %409 = vector.shape_cast %408 : vector<16xf32> to vector<16x1xf32>
    %cst_112 = arith.constant 3.200000e+01 : f32
    %410 = vector.broadcast %cst_112 : f32 to vector<16x1xf32>
    %411 = arith.divf %409, %410 : vector<16x1xf32>
    %412 = vector.broadcast %402 : vector<16x1xf32> to vector<16x32xf32>
    %413 = arith.subf %396, %412 : vector<16x32xf32>
    %cst_113 = arith.constant 9.99999974E-6 : f32
    %414 = vector.broadcast %cst_113 : f32 to vector<16x1xf32>
    %415 = arith.addf %411, %414 : vector<16x1xf32>
    %416 = math.rsqrt %415 : vector<16x1xf32>
    %417 = vector.broadcast %416 : vector<16x1xf32> to vector<16x32xf32>
    %418 = arith.mulf %413, %417 : vector<16x32xf32>
    %419 = vector.broadcast %397 : vector<1x32xf32> to vector<16x32xf32>
    %420 = arith.mulf %418, %419 : vector<16x32xf32>
    %421 = vector.broadcast %398 : vector<1x32xf32> to vector<16x32xf32>
    %422 = arith.addf %420, %421 : vector<16x32xf32>
    %423 = arith.truncf %422 : vector<16x32xf32> to vector<16x32xbf16>
    %424 = vector.extract_strided_slice %298 {offsets = [0, 128], sizes = [32, 32], strides = [1, 1]} : vector<32x384xbf16> to vector<32x32xbf16>
    %cst_114 = arith.constant dense<0.000000e+00> : vector<16x32xf32>
    %425 = tpu.matmul %423, %424, %cst_114 {dimension_numbers = #tpu.dot_dimension_numbers<[1], [0], [0], [1], [0, 0, 1, 1], [], []>} : vector<16x32xbf16>, vector<32x32xbf16>, vector<16x32xf32> -> vector<16x32xf32>
    %c18 = arith.constant 18 : index
    %c0_115 = arith.constant 0 : index
    %426 = vector.load %arg6[%c18, %c0_115] : memref<64x128xf32, #tpu.memory_space<vmem>>, vector<1x32xf32>
    %427 = vector.broadcast %426 : vector<1x32xf32> to vector<16x32xf32>
    %428 = arith.addf %425, %427 : vector<16x32xf32>
    %429 = vector.extract_strided_slice %298 {offsets = [0, 160], sizes = [32, 64], strides = [1, 1]} : vector<32x384xbf16> to vector<32x64xbf16>
    %cst_116 = arith.constant dense<0.000000e+00> : vector<16x64xf32>
    %430 = tpu.matmul %3, %429, %cst_116 {dimension_numbers = #tpu.dot_dimension_numbers<[1], [0], [0], [1], [0, 0, 1, 1], [], []>} : vector<16x32xbf16>, vector<32x64xbf16>, vector<16x64xf32> -> vector<16x64xf32>
    %c19 = arith.constant 19 : index
    %c0_117 = arith.constant 0 : index
    %431 = vector.load %arg6[%c19, %c0_117] : memref<64x128xf32, #tpu.memory_space<vmem>>, vector<1x64xf32>
    %432 = vector.broadcast %431 : vector<1x64xf32> to vector<16x64xf32>
    %433 = arith.addf %430, %432 : vector<16x64xf32>
    %434 = vector.extract_strided_slice %298 {offsets = [0, 224], sizes = [32, 32], strides = [1, 1]} : vector<32x384xbf16> to vector<32x32xbf16>
    %c20 = arith.constant 20 : index
    %c0_118 = arith.constant 0 : index
    %435 = vector.load %arg6[%c20, %c0_118] : memref<64x128xf32, #tpu.memory_space<vmem>>, vector<1x32xf32>
    %436 = vector.extract_strided_slice %428 {offsets = [0, 0], sizes = [16, 8], strides = [1, 1]} : vector<16x32xf32> to vector<16x8xf32>
    %437 = arith.truncf %436 : vector<16x8xf32> to vector<16x8xbf16>
    %438 = vector.extract_strided_slice %433 {offsets = [0, 0], sizes = [16, 8], strides = [1, 1]} : vector<16x64xf32> to vector<16x8xf32>
    %439 = arith.truncf %438 : vector<16x8xf32> to vector<16x8xbf16>
    %440 = vector.extract_strided_slice %433 {offsets = [0, 32], sizes = [16, 8], strides = [1, 1]} : vector<16x64xf32> to vector<16x8xf32>
    %441 = arith.truncf %440 : vector<16x8xf32> to vector<16x8xbf16>
    %cst_119 = arith.constant dense<0.000000e+00> : vector<16x16xf32>
    %442 = tpu.matmul %437, %439, %cst_119 {dimension_numbers = #tpu.dot_dimension_numbers<[1], [1], [0], [0], [0, 0, 1, 0], [], []>} : vector<16x8xbf16>, vector<16x8xbf16>, vector<16x16xf32> -> vector<16x16xf32>
    %443 = arith.addf %442, %5 : vector<16x16xf32>
    %cst_120 = arith.constant dense<0xFF800000> : vector<16xf32>
    %444 = vector.multi_reduction <maximumf>, %443, %cst_120 [1] : vector<16x16xf32> to vector<16xf32>
    %445 = vector.shape_cast %444 : vector<16xf32> to vector<16x1xf32>
    %446 = vector.broadcast %445 : vector<16x1xf32> to vector<16x16xf32>
    %447 = arith.subf %443, %446 : vector<16x16xf32>
    %448 = math.exp %447 : vector<16x16xf32>
    %cst_121 = arith.constant dense<0.000000e+00> : vector<16xf32>
    %449 = vector.multi_reduction <add>, %448, %cst_121 [1] : vector<16x16xf32> to vector<16xf32>
    %450 = vector.shape_cast %449 : vector<16xf32> to vector<16x1xf32>
    %451 = tpu.reciprocal %450 {approx = true} : vector<16x1xf32> -> vector<16x1xf32>
    %452 = vector.broadcast %451 : vector<16x1xf32> to vector<16x16xf32>
    %453 = arith.mulf %448, %452 : vector<16x16xf32>
    %454 = arith.truncf %453 : vector<16x16xf32> to vector<16x16xbf16>
    %cst_122 = arith.constant dense<0.000000e+00> : vector<16x8xf32>
    %455 = tpu.matmul %454, %441, %cst_122 {dimension_numbers = #tpu.dot_dimension_numbers<[1], [0], [0], [1], [0, 0, 1, 1], [], []>} : vector<16x16xbf16>, vector<16x8xbf16>, vector<16x8xf32> -> vector<16x8xf32>
    %456 = vector.extract_strided_slice %428 {offsets = [0, 8], sizes = [16, 8], strides = [1, 1]} : vector<16x32xf32> to vector<16x8xf32>
    %457 = arith.truncf %456 : vector<16x8xf32> to vector<16x8xbf16>
    %458 = vector.extract_strided_slice %433 {offsets = [0, 8], sizes = [16, 8], strides = [1, 1]} : vector<16x64xf32> to vector<16x8xf32>
    %459 = arith.truncf %458 : vector<16x8xf32> to vector<16x8xbf16>
    %460 = vector.extract_strided_slice %433 {offsets = [0, 40], sizes = [16, 8], strides = [1, 1]} : vector<16x64xf32> to vector<16x8xf32>
    %461 = arith.truncf %460 : vector<16x8xf32> to vector<16x8xbf16>
    %cst_123 = arith.constant dense<0.000000e+00> : vector<16x16xf32>
    %462 = tpu.matmul %457, %459, %cst_123 {dimension_numbers = #tpu.dot_dimension_numbers<[1], [1], [0], [0], [0, 0, 1, 0], [], []>} : vector<16x8xbf16>, vector<16x8xbf16>, vector<16x16xf32> -> vector<16x16xf32>
    %463 = arith.addf %462, %5 : vector<16x16xf32>
    %cst_124 = arith.constant dense<0xFF800000> : vector<16xf32>
    %464 = vector.multi_reduction <maximumf>, %463, %cst_124 [1] : vector<16x16xf32> to vector<16xf32>
    %465 = vector.shape_cast %464 : vector<16xf32> to vector<16x1xf32>
    %466 = vector.broadcast %465 : vector<16x1xf32> to vector<16x16xf32>
    %467 = arith.subf %463, %466 : vector<16x16xf32>
    %468 = math.exp %467 : vector<16x16xf32>
    %cst_125 = arith.constant dense<0.000000e+00> : vector<16xf32>
    %469 = vector.multi_reduction <add>, %468, %cst_125 [1] : vector<16x16xf32> to vector<16xf32>
    %470 = vector.shape_cast %469 : vector<16xf32> to vector<16x1xf32>
    %471 = tpu.reciprocal %470 {approx = true} : vector<16x1xf32> -> vector<16x1xf32>
    %472 = vector.broadcast %471 : vector<16x1xf32> to vector<16x16xf32>
    %473 = arith.mulf %468, %472 : vector<16x16xf32>
    %474 = arith.truncf %473 : vector<16x16xf32> to vector<16x16xbf16>
    %cst_126 = arith.constant dense<0.000000e+00> : vector<16x8xf32>
    %475 = tpu.matmul %474, %461, %cst_126 {dimension_numbers = #tpu.dot_dimension_numbers<[1], [0], [0], [1], [0, 0, 1, 1], [], []>} : vector<16x16xbf16>, vector<16x8xbf16>, vector<16x8xf32> -> vector<16x8xf32>
    %476 = vector.extract_strided_slice %428 {offsets = [0, 16], sizes = [16, 8], strides = [1, 1]} : vector<16x32xf32> to vector<16x8xf32>
    %477 = arith.truncf %476 : vector<16x8xf32> to vector<16x8xbf16>
    %478 = vector.extract_strided_slice %433 {offsets = [0, 16], sizes = [16, 8], strides = [1, 1]} : vector<16x64xf32> to vector<16x8xf32>
    %479 = arith.truncf %478 : vector<16x8xf32> to vector<16x8xbf16>
    %480 = vector.extract_strided_slice %433 {offsets = [0, 48], sizes = [16, 8], strides = [1, 1]} : vector<16x64xf32> to vector<16x8xf32>
    %481 = arith.truncf %480 : vector<16x8xf32> to vector<16x8xbf16>
    %cst_127 = arith.constant dense<0.000000e+00> : vector<16x16xf32>
    %482 = tpu.matmul %477, %479, %cst_127 {dimension_numbers = #tpu.dot_dimension_numbers<[1], [1], [0], [0], [0, 0, 1, 0], [], []>} : vector<16x8xbf16>, vector<16x8xbf16>, vector<16x16xf32> -> vector<16x16xf32>
    %483 = arith.addf %482, %5 : vector<16x16xf32>
    %cst_128 = arith.constant dense<0xFF800000> : vector<16xf32>
    %484 = vector.multi_reduction <maximumf>, %483, %cst_128 [1] : vector<16x16xf32> to vector<16xf32>
    %485 = vector.shape_cast %484 : vector<16xf32> to vector<16x1xf32>
    %486 = vector.broadcast %485 : vector<16x1xf32> to vector<16x16xf32>
    %487 = arith.subf %483, %486 : vector<16x16xf32>
    %488 = math.exp %487 : vector<16x16xf32>
    %cst_129 = arith.constant dense<0.000000e+00> : vector<16xf32>
    %489 = vector.multi_reduction <add>, %488, %cst_129 [1] : vector<16x16xf32> to vector<16xf32>
    %490 = vector.shape_cast %489 : vector<16xf32> to vector<16x1xf32>
    %491 = tpu.reciprocal %490 {approx = true} : vector<16x1xf32> -> vector<16x1xf32>
    %492 = vector.broadcast %491 : vector<16x1xf32> to vector<16x16xf32>
    %493 = arith.mulf %488, %492 : vector<16x16xf32>
    %494 = arith.truncf %493 : vector<16x16xf32> to vector<16x16xbf16>
    %cst_130 = arith.constant dense<0.000000e+00> : vector<16x8xf32>
    %495 = tpu.matmul %494, %481, %cst_130 {dimension_numbers = #tpu.dot_dimension_numbers<[1], [0], [0], [1], [0, 0, 1, 1], [], []>} : vector<16x16xbf16>, vector<16x8xbf16>, vector<16x8xf32> -> vector<16x8xf32>
    %496 = vector.extract_strided_slice %428 {offsets = [0, 24], sizes = [16, 8], strides = [1, 1]} : vector<16x32xf32> to vector<16x8xf32>
    %497 = arith.truncf %496 : vector<16x8xf32> to vector<16x8xbf16>
    %498 = vector.extract_strided_slice %433 {offsets = [0, 24], sizes = [16, 8], strides = [1, 1]} : vector<16x64xf32> to vector<16x8xf32>
    %499 = arith.truncf %498 : vector<16x8xf32> to vector<16x8xbf16>
    %500 = vector.extract_strided_slice %433 {offsets = [0, 56], sizes = [16, 8], strides = [1, 1]} : vector<16x64xf32> to vector<16x8xf32>
    %501 = arith.truncf %500 : vector<16x8xf32> to vector<16x8xbf16>
    %cst_131 = arith.constant dense<0.000000e+00> : vector<16x16xf32>
    %502 = tpu.matmul %497, %499, %cst_131 {dimension_numbers = #tpu.dot_dimension_numbers<[1], [1], [0], [0], [0, 0, 1, 0], [], []>} : vector<16x8xbf16>, vector<16x8xbf16>, vector<16x16xf32> -> vector<16x16xf32>
    %503 = arith.addf %502, %5 : vector<16x16xf32>
    %cst_132 = arith.constant dense<0xFF800000> : vector<16xf32>
    %504 = vector.multi_reduction <maximumf>, %503, %cst_132 [1] : vector<16x16xf32> to vector<16xf32>
    %505 = vector.shape_cast %504 : vector<16xf32> to vector<16x1xf32>
    %506 = vector.broadcast %505 : vector<16x1xf32> to vector<16x16xf32>
    %507 = arith.subf %503, %506 : vector<16x16xf32>
    %508 = math.exp %507 : vector<16x16xf32>
    %cst_133 = arith.constant dense<0.000000e+00> : vector<16xf32>
    %509 = vector.multi_reduction <add>, %508, %cst_133 [1] : vector<16x16xf32> to vector<16xf32>
    %510 = vector.shape_cast %509 : vector<16xf32> to vector<16x1xf32>
    %511 = tpu.reciprocal %510 {approx = true} : vector<16x1xf32> -> vector<16x1xf32>
    %512 = vector.broadcast %511 : vector<16x1xf32> to vector<16x16xf32>
    %513 = arith.mulf %508, %512 : vector<16x16xf32>
    %514 = arith.truncf %513 : vector<16x16xf32> to vector<16x16xbf16>
    %cst_134 = arith.constant dense<0.000000e+00> : vector<16x8xf32>
    %515 = tpu.matmul %514, %501, %cst_134 {dimension_numbers = #tpu.dot_dimension_numbers<[1], [0], [0], [1], [0, 0, 1, 1], [], []>} : vector<16x16xbf16>, vector<16x8xbf16>, vector<16x8xf32> -> vector<16x8xf32>
    %516 = tpu.concatenate %455, %475, %495, %515 in 1 : vector<16x8xf32>, vector<16x8xf32>, vector<16x8xf32>, vector<16x8xf32> -> vector<16x32xf32>
    %517 = arith.truncf %516 : vector<16x32xf32> to vector<16x32xbf16>
    %cst_135 = arith.constant dense<0.000000e+00> : vector<16x32xf32>
    %518 = tpu.matmul %517, %434, %cst_135 {dimension_numbers = #tpu.dot_dimension_numbers<[1], [0], [0], [1], [0, 0, 1, 1], [], []>} : vector<16x32xbf16>, vector<32x32xbf16>, vector<16x32xf32> -> vector<16x32xf32>
    %519 = vector.broadcast %435 : vector<1x32xf32> to vector<16x32xf32>
    %520 = arith.addf %518, %519 : vector<16x32xf32>
    %521 = arith.addf %422, %520 : vector<16x32xf32>
    %c23 = arith.constant 23 : index
    %c0_136 = arith.constant 0 : index
    %522 = vector.load %arg6[%c23, %c0_136] : memref<64x128xf32, #tpu.memory_space<vmem>>, vector<1x32xf32>
    %c24 = arith.constant 24 : index
    %c0_137 = arith.constant 0 : index
    %523 = vector.load %arg6[%c24, %c0_137] : memref<64x128xf32, #tpu.memory_space<vmem>>, vector<1x32xf32>
    %cst_138 = arith.constant dense<0.000000e+00> : vector<16xf32>
    %524 = vector.multi_reduction <add>, %521, %cst_138 [1] : vector<16x32xf32> to vector<16xf32>
    %525 = vector.shape_cast %524 : vector<16xf32> to vector<16x1xf32>
    %cst_139 = arith.constant 3.200000e+01 : f32
    %526 = vector.broadcast %cst_139 : f32 to vector<16x1xf32>
    %527 = arith.divf %525, %526 : vector<16x1xf32>
    %528 = vector.broadcast %527 : vector<16x1xf32> to vector<16x32xf32>
    %529 = arith.subf %521, %528 : vector<16x32xf32>
    %530 = vector.broadcast %527 : vector<16x1xf32> to vector<16x32xf32>
    %531 = arith.subf %521, %530 : vector<16x32xf32>
    %532 = arith.mulf %529, %531 : vector<16x32xf32>
    %cst_140 = arith.constant dense<0.000000e+00> : vector<16xf32>
    %533 = vector.multi_reduction <add>, %532, %cst_140 [1] : vector<16x32xf32> to vector<16xf32>
    %534 = vector.shape_cast %533 : vector<16xf32> to vector<16x1xf32>
    %cst_141 = arith.constant 3.200000e+01 : f32
    %535 = vector.broadcast %cst_141 : f32 to vector<16x1xf32>
    %536 = arith.divf %534, %535 : vector<16x1xf32>
    %537 = vector.broadcast %527 : vector<16x1xf32> to vector<16x32xf32>
    %538 = arith.subf %521, %537 : vector<16x32xf32>
    %cst_142 = arith.constant 9.99999974E-6 : f32
    %539 = vector.broadcast %cst_142 : f32 to vector<16x1xf32>
    %540 = arith.addf %536, %539 : vector<16x1xf32>
    %541 = math.rsqrt %540 : vector<16x1xf32>
    %542 = vector.broadcast %541 : vector<16x1xf32> to vector<16x32xf32>
    %543 = arith.mulf %538, %542 : vector<16x32xf32>
    %544 = vector.broadcast %522 : vector<1x32xf32> to vector<16x32xf32>
    %545 = arith.mulf %543, %544 : vector<16x32xf32>
    %546 = vector.broadcast %523 : vector<1x32xf32> to vector<16x32xf32>
    %547 = arith.addf %545, %546 : vector<16x32xf32>
    %548 = arith.truncf %547 : vector<16x32xf32> to vector<16x32xbf16>
    %549 = vector.extract_strided_slice %298 {offsets = [0, 256], sizes = [32, 128], strides = [1, 1]} : vector<32x384xbf16> to vector<32x128xbf16>
    %cst_143 = arith.constant dense<0.000000e+00> : vector<16x128xf32>
    %550 = tpu.matmul %548, %549, %cst_143 {dimension_numbers = #tpu.dot_dimension_numbers<[1], [0], [0], [1], [0, 0, 1, 1], [], []>} : vector<16x32xbf16>, vector<32x128xbf16>, vector<16x128xf32> -> vector<16x128xf32>
    %c25 = arith.constant 25 : index
    %c0_144 = arith.constant 0 : index
    %551 = vector.load %arg6[%c25, %c0_144] : memref<64x128xf32, #tpu.memory_space<vmem>>, vector<1x128xf32>
    %552 = vector.broadcast %551 : vector<1x128xf32> to vector<16x128xf32>
    %553 = arith.addf %550, %552 : vector<16x128xf32>
    %cst_145 = arith.constant 0.000000e+00 : f32
    %554 = vector.broadcast %cst_145 : f32 to vector<16x128xf32>
    %555 = arith.maximumf %553, %554 : vector<16x128xf32>
    %556 = arith.truncf %555 : vector<16x128xf32> to vector<16x128xbf16>
    %cst_146 = arith.constant dense<0.000000e+00> : vector<16x32xf32>
    %557 = tpu.matmul %556, %300, %cst_146 {dimension_numbers = #tpu.dot_dimension_numbers<[1], [0], [0], [1], [0, 0, 1, 1], [], []>} : vector<16x128xbf16>, vector<128x32xbf16>, vector<16x32xf32> -> vector<16x32xf32>
    %c26 = arith.constant 26 : index
    %c0_147 = arith.constant 0 : index
    %558 = vector.load %arg6[%c26, %c0_147] : memref<64x128xf32, #tpu.memory_space<vmem>>, vector<1x32xf32>
    %559 = vector.broadcast %558 : vector<1x32xf32> to vector<16x32xf32>
    %560 = arith.addf %557, %559 : vector<16x32xf32>
    %561 = arith.addf %547, %560 : vector<16x32xf32>
    %c27 = arith.constant 27 : index
    %c0_148 = arith.constant 0 : index
    %562 = vector.load %arg6[%c27, %c0_148] : memref<64x128xf32, #tpu.memory_space<vmem>>, vector<1x32xf32>
    %c28 = arith.constant 28 : index
    %c0_149 = arith.constant 0 : index
    %563 = vector.load %arg6[%c28, %c0_149] : memref<64x128xf32, #tpu.memory_space<vmem>>, vector<1x32xf32>
    %cst_150 = arith.constant dense<0.000000e+00> : vector<16xf32>
    %564 = vector.multi_reduction <add>, %561, %cst_150 [1] : vector<16x32xf32> to vector<16xf32>
    %565 = vector.shape_cast %564 : vector<16xf32> to vector<16x1xf32>
    %cst_151 = arith.constant 3.200000e+01 : f32
    %566 = vector.broadcast %cst_151 : f32 to vector<16x1xf32>
    %567 = arith.divf %565, %566 : vector<16x1xf32>
    %568 = vector.broadcast %567 : vector<16x1xf32> to vector<16x32xf32>
    %569 = arith.subf %561, %568 : vector<16x32xf32>
    %570 = vector.broadcast %567 : vector<16x1xf32> to vector<16x32xf32>
    %571 = arith.subf %561, %570 : vector<16x32xf32>
    %572 = arith.mulf %569, %571 : vector<16x32xf32>
    %cst_152 = arith.constant dense<0.000000e+00> : vector<16xf32>
    %573 = vector.multi_reduction <add>, %572, %cst_152 [1] : vector<16x32xf32> to vector<16xf32>
    %574 = vector.shape_cast %573 : vector<16xf32> to vector<16x1xf32>
    %cst_153 = arith.constant 3.200000e+01 : f32
    %575 = vector.broadcast %cst_153 : f32 to vector<16x1xf32>
    %576 = arith.divf %574, %575 : vector<16x1xf32>
    %577 = vector.broadcast %567 : vector<16x1xf32> to vector<16x32xf32>
    %578 = arith.subf %561, %577 : vector<16x32xf32>
    %cst_154 = arith.constant 9.99999974E-6 : f32
    %579 = vector.broadcast %cst_154 : f32 to vector<16x1xf32>
    %580 = arith.addf %576, %579 : vector<16x1xf32>
    %581 = math.rsqrt %580 : vector<16x1xf32>
    %582 = vector.broadcast %581 : vector<16x1xf32> to vector<16x32xf32>
    %583 = arith.mulf %578, %582 : vector<16x32xf32>
    %584 = vector.broadcast %562 : vector<1x32xf32> to vector<16x32xf32>
    %585 = arith.mulf %583, %584 : vector<16x32xf32>
    %586 = vector.broadcast %563 : vector<1x32xf32> to vector<16x32xf32>
    %587 = arith.addf %585, %586 : vector<16x32xf32>
    %c0_155 = arith.constant 0 : index
    %c0_156 = arith.constant 0 : index
    %588 = vector.load %arg7[%c0_155, %c0_156] : memref<16x32xf32, #tpu.memory_space<vmem>>, vector<16x32xf32>
    tpu.vector_store %arg7[%c0_155, %c0_156], %587 {strides = array<i32>} : memref<16x32xf32, #tpu.memory_space<vmem>>, vector<16x32xf32>,
    return
  }
  func.func @transform_0(%arg0: i32) -> (i32, i32) {
    %c0_i32 = arith.constant 0 : i32
    %c0_i32_0 = arith.constant 0 : i32
    %c0_i32_1 = arith.constant 0 : i32
    return %c0_i32, %c0_i32_0 : i32, i32
  }
  func.func @transform_1(%arg0: i32) -> (i32, i32) {
    %c0_i32 = arith.constant 0 : i32
    %c0_i32_0 = arith.constant 0 : i32
    %c0_i32_1 = arith.constant 0 : i32
    return %c0_i32, %c0_i32_0 : i32, i32
  }
  func.func @transform_2(%arg0: i32) -> (i32, i32) {
    %c0_i32 = arith.constant 0 : i32
    %c0_i32_0 = arith.constant 0 : i32
    %c0_i32_1 = arith.constant 0 : i32
    return %c0_i32, %c0_i32_0 : i32, i32
  }
  func.func @transform_3(%arg0: i32) -> (i32, i32, i32) {
    %c0_i32 = arith.constant 0 : i32
    %c0_i32_0 = arith.constant 0 : i32
    %c0_i32_1 = arith.constant 0 : i32
    %c0_i32_2 = arith.constant 0 : i32
    return %c0_i32, %c0_i32_0, %c0_i32_1 : i32, i32, i32
  }
  func.func @transform_4(%arg0: i32) -> (i32, i32, i32) {
    %c0_i32 = arith.constant 0 : i32
    %c0_i32_0 = arith.constant 0 : i32
    %c0_i32_1 = arith.constant 0 : i32
    %c0_i32_2 = arith.constant 0 : i32
    return %c0_i32, %c0_i32_0, %c0_i32_1 : i32, i32, i32
  }
  func.func @transform_5(%arg0: i32) -> (i32, i32) {
    %c0_i32 = arith.constant 0 : i32
    %c0_i32_0 = arith.constant 0 : i32
    %c0_i32_1 = arith.constant 0 : i32
    return %c0_i32, %c0_i32_0 : i32, i32
  }
  func.func @transform_6(%arg0: i32) -> (i32, i32) {
    %c0_i32 = arith.constant 0 : i32
    %c0_i32_0 = arith.constant 0 : i32
    %c0_i32_1 = arith.constant 0 : i32
    return %c0_i32, %c0_i32_0 : i32, i32
  }
}

</mosaic_0001>

<bundles_post_ra>
// kernel: decoder_forward.1
= control target key start
LH: loop header
LB: loop body
LE: loop exit
PB: predicated region body
PF: predicated region fallthrough
CT: control target
= control target key end

     0   :  { %11 = vsyncpa [#allocation3], 0  ;;  %s3382_s0 = inlined_call_operand.vmem [shape: f32[16,32], index: 0, kind: input, shape index: {}]   ;;  %s3383_s1 = inlined_call_operand.hbm [shape: f32[16,32], index: 1, kind: input, shape index: {}]   ;;  %s3384_s2 = inlined_call_operand.vmem [shape: bf16[16,32], index: 2, kind: input, shape index: {}]   ;;  %s3385_s3 = inlined_call_operand.vmem [shape: bf16[2,32,384], index: 3, kind: input, shape index: {}]   ;;  %s3386_s4 = inlined_call_operand.vmem [shape: bf16[2,128,32], index: 4, kind: input, shape index: {}]   ;;  %s3387_s5 = inlined_call_operand.vmem [shape: f32[64,128], index: 5, kind: input, shape index: {}]   ;;  %s3388_s6 = inlined_call_operand.hbm [shape: f32[16,32], index: 6, kind: output, shape index: {}]  }
   0x1   :  { %12 = vsyncpa [#allocation4], 0  ;;  %s19_s23 = sshll.u32 %s3383_s1, 4  ;;  %s2654_s24 = smov [#allocation2]   ;;  %s20_s23 = int_to_ptr.hbm [resolvable:$true] %s19_s23 }
   0x2   :  { %s21_s25 = sshll.u32 %s2654_s24, 4  ;;  %s2655_s26 = smov 128   ;;  %s22_s25 = int_to_ptr.vmem [resolvable:$true] %s21_s25 }
   0x3   :  { %s2656_s27 = smov 8  }
   0x4   :  { %27 = dma.hbm_to_vmem [thread:$0]  %s20_s23, 256, %s22_s25, [#allocation3], %s2655_s26, %s2655_s26, %s2656_s27  }
   0x5   :  { %2650 = dma.done.wait [#allocation3], 256  }
   0x6   :  { %2651 = vsyncadd [#allocation3], 4294967040  ;;  %v2131_v0 = vld [vmem:[%s3385_s3 + $0x18] sm:$0xf]  ;;  %v2314_v1 = vld [vmem:[%s3385_s3 + $0x20] sm:$0xf0] }
   0x7   :  { %v2127_v2 = vld [vmem:[%s3385_s3] sm:$0xf]  ;;  %v2723_v3 = vor.u32 %v2314_v1, %v2131_v0  ;;  %v2311_v4 = vld [vmem:[%s3385_s3 + $0x8] sm:$0xf0]  ;;  %vm92_vm0 = vcmask 261120   ;;  %s2657_s16 = smov 104  }
   0x8   :  { %v41_v5 = vld [vmem:[%s3382_s0] sm:$0xff]  ;;  %v42_v6 = vld [vmem:[%s3382_s0 + $0x8] sm:$0xff]  ;;  %v2735_v9 = vor.u32 %v2311_v4, %v2127_v2  ;;  %s2658_s17 = smov 120   ;;  %s2659_s18 = smov 96   ;;  %vm115_vm1 = vcmask 64512   ;;  %vm136_vm2 = vcmask 130048  }
   0x9   :  { %v43_v7 = vld [vmem:[#allocation2] sm:$0xff]  ;;  %v44_v8 = vld [vmem:[#allocation2 + $0x8] sm:$0xff]  ;;  %102 = vmatpush.bf16.msra.mxu0 %v2723_v3  ;;  %s2660_s19 = smov 80   ;;  %s2661_s20 = smov 72   ;;  %vm409_vm3 = vcmask 195584  }
   0xa   :  { %v2737_v10 = vadd.f32 %v43_v7, %v41_v5  ;;  %v2739_v11 = vadd.f32 %v44_v8, %v42_v6  ;;  %v2417_v14 = vld [vmem:[%s3387_s5] ss:$0 sm:$0xff]  ;;  %s2662_s21 = smov 88   ;;  %s2663_s22 = smov 112   ;;  %v50_v37 = vld [vmem:[%s3387_s5 + $0x28] sm:$0xff] }
   0xb   :  { %v49_v30 = vld [vmem:[%s3387_s5 + $0x20] sm:$0xff]  ;;  %s2664_s29 = smov 64   ;;  %s2665_s30 = smov 56  }
   0xc   :  { %v77_v12 = vpack.c.bf16 %v2739_v11, %v2737_v10  ;;  %s2666_s7 = smov 40   ;;  %s2667_s1 = smov 48  }
   0xd   :  { %103 = vmatpush.bf16.msra.mxu0 %v2735_v9  ;;  %s2668_s8 = smov 32   ;;  %s2669_s9 = smov 16  }
   0xe   :  { %s2670_s10 = smov 24   ;;  %s2672_s13 = smov [#allocation5]  }
   0xf   :  { %s2110_s14 = sshll.u32 %s2672_s13, 4  ;;  %s2112_s15 = sshll.u32 %s3388_s6, 4  ;;  %s2111_s14 = int_to_ptr.vmem [resolvable:$true] %s2110_s14  ;;  %s2113_s15 = int_to_ptr.hbm [resolvable:$true] %s2112_s15 }
  0x10   :  { %2133 = vmatmul.msk.bf16.vlgmr.msra.gmra.mxu0 %vm92_vm0, %v77_v12 }
  0x8d   :  { %v105_v13 = vpop.f32.mrf.mxu0 }
  0x8e   :  { %v106_v16 = vadd.f32 %v2417_v14, %v105_v13 }
  0x95   :  { %v107_v15 = vpop.f32.mrf.mxu0 }
  0x96   :  { %v108_v17 = vadd.f32 %v2417_v14, %v107_v15 }
  0x98   :  { %v2748_v18 = vpack.c.bf16 %v108_v17, %v106_v16 }
  0x9a   :  { %314 = vrot.lane.b32.xlu2 %v2748_v18, %s2657_s16  ;;  %180 = vrot.lane.b32.xlu1 %v2748_v18, %s2658_s17 }
  0x9b   :  { %113 = vrot.lane.b32.xlu0 %v2748_v18, %s2659_s18 }
  0xa2   :  { %249 = vrot.lane.b32.xlu2 %v2748_v18, %s2660_s19  ;;  %316 = vrot.lane.b32.xlu1 %v2748_v18, %s2661_s20 }
  0xa3   :  { %182 = vrot.lane.b32.xlu0 %v2748_v18, %s2662_s21 }
  0xab   :  { %247 = vrot.lane.b32.xlu0 %v2748_v18, %s2663_s22 }
  0xf4   :  { %v315_v19 = vpop.permute.xlu2 %314 }
  0xfc   :  { %v250_v20 = vpop.permute.xlu2 %249 }
  0xfd   :  { %v255_v21 = vsel %vm115_vm1, %v250_v20, 0 }
  0xfe   :  { %264 = vmatpush.bf16.xpose.msrb.mxu0 %v255_v21 }
 0x10c   :  { %v181_v22 = vpop.permute.xlu1 %180 }
 0x10d   :  { %v114_v23 = vpop.permute.xlu0 %113 }
 0x10e   :  { %v120_v24 = vsel %vm115_vm1, %v114_v23, 0 }
 0x10f   :  { %129 = vmatpush.bf16.xpose.msra.mxu3 %v120_v24 }
 0x114   :  { %v317_v25 = vpop.permute.xlu1 %316 }
 0x115   :  { %v322_v26 = vsel %vm115_vm1, %v317_v25, 0  ;;  %v183_v27 = vpop.permute.xlu0 %182 }
 0x116   :  { %2134 = vmatmul.msk.bf16.vlgmr.msra.gmra.mxu3 %vm115_vm1, %v2748_v18  ;;  %v188_v28 = vsel %vm115_vm1, %v183_v27, 0 }
 0x117   :  { %197 = vmatpush.bf16.xpose.msrb.mxu3 %v188_v28 }
 0x11d   :  { %v248_v29 = vpop.permute.xlu0 %247 }
 0x11e   :  { %2138 = vmatmul.msk.bf16.vlgmr.msrb.gmra.mxu0 %vm115_vm1, %v248_v29 }
 0x11f   :  { %331 = vmatpush.bf16.xpose.msra.mxu3 %v322_v26 }
 0x126   :  { %2136 = vmatmul.msk.bf16.vlgmr.msrb.gmra.mxu3 %vm115_vm1, %v181_v22 }
 0x136   :  { %2140 = vmatmul.msk.bf16.vlgmr.msra.gmra.mxu3 %vm115_vm1, %v315_v19 }
 0x199   :  { %v131_v31 = vpop.f32.mrf.mxu3 }
 0x19a   :  { %v132_v32 = vadd.f32 %v131_v31, %v49_v30 }
 0x19b   :  { %v266_v33 = vpop.f32.mrf.mxu0 }
 0x19c   :  { %v267_v34 = vadd.f32 %v266_v33, %v49_v30  ;;  %v137_v35 = vsel %vm136_vm2, %v132_v32, -inf }
 0x19d   :  { %138 = vmax.xlane.f32.xlu1 %v137_v35 }
 0x19e   :  { %v271_v36 = vsel %vm136_vm2, %v267_v34, -inf }
 0x19f   :  { %272 = vmax.xlane.f32.xlu0 %v271_v36 }
 0x1a1   :  { %v133_v38 = vpop.f32.mrf.mxu3 }
 0x1a2   :  { %v134_v39 = vadd.f32 %v133_v38, %v50_v37 }
 0x1a3   :  { %v268_v40 = vpop.f32.mrf.mxu0 }
 0x1a4   :  { %v269_v41 = vadd.f32 %v268_v40, %v50_v37  ;;  %v140_v42 = vsel %vm136_vm2, %v134_v39, -inf }
 0x1a5   :  { %141 = vmax.xlane.f32.xlu2 %v140_v42 }
 0x1a6   :  { %v274_v43 = vsel %vm136_vm2, %v269_v41, -inf }
 0x1a7   :  { %275 = vmax.xlane.f32.xlu1 %v274_v43 }
 0x1a9   :  { %v199_v44 = vpop.f32.mrf.mxu3 }
 0x1aa   :  { %v200_v45 = vadd.f32 %v199_v44, %v49_v30 }
 0x1ac   :  { %v204_v46 = vsel %vm136_vm2, %v200_v45, -inf }
 0x1ad   :  { %205 = vmax.xlane.f32.xlu0 %v204_v46 }
 0x1b1   :  { %v201_v47 = vpop.f32.mrf.mxu3 }
 0x1b2   :  { %v202_v48 = vadd.f32 %v201_v47, %v50_v37 }
 0x1b4   :  { %v207_v49 = vsel %vm136_vm2, %v202_v48, -inf }
 0x1b5   :  { %208 = vmax.xlane.f32.xlu2 %v207_v49 }
 0x1b9   :  { %v333_v50 = vpop.f32.mrf.mxu3 }
 0x1ba   :  { %v334_v51 = vadd.f32 %v333_v50, %v49_v30 }
 0x1bc   :  { %v338_v52 = vsel %vm136_vm2, %v334_v51, -inf }
 0x1bd   :  { %339 = vmax.xlane.f32.xlu1 %v338_v52 }
 0x1c1   :  { %v335_v53 = vpop.f32.mrf.mxu3 }
 0x1c2   :  { %v336_v54 = vadd.f32 %v335_v53, %v50_v37 }
 0x1c4   :  { %v341_v55 = vsel %vm136_vm2, %v336_v54, -inf }
 0x1c5   :  { %342 = vmax.xlane.f32.xlu2 %v341_v55 }
 0x1d6   :  { %160 = vrot.lane.b32.xlu1 %v2748_v18, %s2664_s29 }
 0x1dd   :  { %227 = vrot.lane.b32.xlu2 %v2748_v18, %s2665_s30 }
 0x210   :  { %v139_v56 = vpop.xlane.xlu1 %138 }
 0x211   :  { %v143_v57 = vsub.f32 %v132_v32, %v139_v56 }
 0x212   :  { %v273_v58 = vpop.xlane.xlu0 %272 }
 0x213   :  { %v145_v59 = vmul.f32 1.442695, %v143_v57  ;;  %v277_v60 = vsub.f32 %v267_v34, %v273_v58 }
 0x215   :  { %2443 = vpow2.f32 %v145_v59  ;;  %v279_v61 = vmul.f32 1.442695, %v277_v60 }
 0x217   :  { %2445 = vpow2.f32 %v279_v61 }
 0x218   :  { %v142_v62 = vpop.xlane.xlu2 %141 }
 0x219   :  { %v144_v2 = vsub.f32 %v134_v39, %v142_v62 }
 0x21a   :  { %v276_v63 = vpop.xlane.xlu1 %275 }
 0x21b   :  { %v2791_v0 = vpop.eup %2443  ;;  %v278_v1 = vsub.f32 %v269_v41, %v276_v63  ;;  %v147_v8 = vmul.f32 1.442695, %v144_v2 }
 0x21c   :  { %v149_v4 = vsel %vm136_vm2, %v2791_v0, 0.0 }
 0x21d   :  { %v2795_v5 = vpop.eup %2445  ;;  %v281_v6 = vmul.f32 1.442695, %v278_v1  ;;  %150 = vadd.xlane.f32.xlu2 %v149_v4 }
 0x21e   :  { %v283_v7 = vsel %vm136_vm2, %v2795_v5, 0.0 }
 0x21f   :  { %2447 = vpow2.f32 %v281_v6  ;;  %284 = vadd.xlane.f32.xlu1 %v283_v7 }
 0x220   :  { %v206_v12 = vpop.xlane.xlu0 %205  ;;  %2449 = vpow2.f32 %v147_v8 }
 0x221   :  { %v210_v13 = vsub.f32 %v200_v45, %v206_v12 }
 0x223   :  { %v212_v14 = vmul.f32 1.442695, %v210_v13 }
 0x225   :  { %v2799_v15 = vpop.eup %2447  ;;  %2451 = vpow2.f32 %v212_v14 }
 0x226   :  { %v286_v16 = vsel %vm136_vm2, %v2799_v15, 0.0  ;;  %v2450_v20 = vpop.eup %2449 }
 0x227   :  { %287 = vadd.xlane.f32.xlu0 %v286_v16  ;;  %v152_v24 = vsel %vm136_vm2, %v2450_v20, 0.0 }
 0x228   :  { %v209_v17 = vpop.xlane.xlu2 %208 }
 0x229   :  { %v211_v19 = vsub.f32 %v202_v48, %v209_v17 }
 0x22b   :  { %v2452_v21 = vpop.eup %2451  ;;  %v214_v22 = vmul.f32 1.442695, %v211_v19 }
 0x22c   :  { %v216_v23 = vsel %vm136_vm2, %v2452_v21, 0.0 }
 0x22d   :  { %2453 = vpow2.f32 %v214_v22  ;;  %217 = vadd.xlane.f32.xlu2 %v216_v23 }
 0x22f   :  { %153 = vadd.xlane.f32.xlu0 %v152_v24 }
 0x230   :  { %v340_v25 = vpop.xlane.xlu1 %339 }
 0x231   :  { %v344_v26 = vsub.f32 %v334_v51, %v340_v25 }
 0x233   :  { %v2454_v27 = vpop.eup %2453  ;;  %v346_v28 = vmul.f32 1.442695, %v344_v26 }
 0x234   :  { %v219_v29 = vsel %vm136_vm2, %v2454_v27, 0.0 }
 0x235   :  { %2455 = vpow2.f32 %v346_v28 }
 0x237   :  { %220 = vadd.xlane.f32.xlu0 %v219_v29 }
 0x238   :  { %v343_v30 = vpop.xlane.xlu2 %342  ;;  %414 = vrot.lane.b32.xlu1 %v2735_v9, %s2668_s8 }
 0x239   :  { %v345_v31 = vsub.f32 %v336_v54, %v343_v30 }
 0x23b   :  { %v2456_v32 = vpop.eup %2455  ;;  %v348_v33 = vmul.f32 1.442695, %v345_v31 }
 0x23c   :  { %v350_v34 = vsel %vm136_vm2, %v2456_v32, 0.0 }
 0x23d   :  { %2457 = vpow2.f32 %v348_v33 }
 0x23f   :  { %351 = vadd.xlane.f32.xlu0 %v350_v34 }
 0x240   :  { %v228_v38 = vpop.permute.xlu2 %227 }
 0x243   :  { %v2458_v35 = vpop.eup %2457 }
 0x244   :  { %v353_v36 = vsel %vm136_vm2, %v2458_v35, 0.0 }
 0x245   :  { %361 = vrot.lane.b32.xlu2 %v2748_v18, %s2666_s7 }
 0x247   :  { %354 = vadd.xlane.f32.xlu0 %v353_v36  ;;  %v2418_v36 = vld [vmem:[%s3387_s5 + $0x1] ss:$0 sm:$0xff] }
 0x248   :  { %v161_v37 = vpop.permute.xlu1 %160 }
 0x249   :  { %173 = vmatpush.bf16.msra.mxu2 %v161_v37 }
 0x24d   :  { %240 = vmatpush.bf16.msrb.mxu2 %v228_v38  ;;  %416 = vrot.lane.b32.xlu2 %v2723_v3, %s2668_s8 }
 0x25b   :  { %294 = vrot.lane.b32.xlu0 %v2748_v18, %s2667_s1 }
 0x290   :  { %v151_v40 = vpop.xlane.xlu2 %150 }
 0x291   :  { %2459 = vrcp.f32 %v151_v40 }
 0x292   :  { %v285_v56 = vpop.xlane.xlu1 %284 }
 0x297   :  { %v2460_v43 = vpop.eup %2459 }
 0x298   :  { %v157_v46 = vmul.f32 %v2460_v43, %v2791_v0 }
 0x29a   :  { %v288_v39 = vpop.xlane.xlu0 %287 }
 0x2a0   :  { %v218_v42 = vpop.xlane.xlu2 %217 }
 0x2a2   :  { %v154_v41 = vpop.xlane.xlu0 %153 }
 0x2a3   :  { %2461 = vrcp.f32 %v154_v41 }
 0x2a8   :  { %v362_v49 = vpop.permute.xlu2 %361 }
 0x2a9   :  { %v2462_v44 = vpop.eup %2461 }
 0x2aa   :  { %v221_v45 = vpop.xlane.xlu0 %220  ;;  %v158_v47 = vmul.f32 %v2462_v44, %v2450_v20  ;;  %v415_v19 = vpop.permute.xlu1 %414 }
 0x2ab   :  { %2463 = vrcp.f32 %v221_v45  ;;  %v2671_v45 = vmov 32.0  }
 0x2ac   :  { %v159_v48 = vpack.c.bf16 %v158_v47, %v157_v46  ;;  %2465 = vrcp.f32 %v218_v42 }
 0x2ae   :  { %2135 = vmatmul.msk.bf16.vlgmr.msra.gmra.mxu2 %vm136_vm2, %v159_v48 }
 0x2af   :  { %374 = vmatpush.bf16.msra.mxu2 %v362_v49 }
 0x2b0   :  { %v417_v6 = vpop.permute.xlu2 %416 }
 0x2b1   :  { %v2464_v50 = vpop.eup %2463  ;;  %429 = vmatpush.bf16.msra.mxu0 %v417_v6 }
 0x2b2   :  { %v352_v18 = vpop.xlane.xlu0 %351  ;;  %v2466_v51 = vpop.eup %2465  ;;  %v225_v52 = vmul.f32 %v2464_v50, %v2454_v27 }
 0x2b3   :  { %v224_v53 = vmul.f32 %v2466_v51, %v2452_v21 }
 0x2b5   :  { %v226_v55 = vpack.c.bf16 %v225_v52, %v224_v53  ;;  %430 = vmatpush.bf16.msra.mxu0 %v415_v19  ;;  %v2147_v53 = vld [vmem:[%s3385_s3 + $0x24] sm:$0xf0] }
 0x2ba   :  { %v355_v54 = vpop.xlane.xlu0 %354 }
 0x2bb   :  { %2467 = vrcp.f32 %v355_v54 }
 0x2bc   :  { %2469 = vrcp.f32 %v352_v18 }
 0x2bd   :  { %2471 = vrcp.f32 %v288_v39 }
 0x2be   :  { %2137 = vmatmul.msk.bf16.vlgmr.msrb.gmra.mxu2 %vm136_vm2, %v226_v55  ;;  %2473 = vrcp.f32 %v285_v56  ;;  %v2310_v56 = vld [vmem:[%s3385_s3 + $0x4] sm:$0xf] }
 0x2bf   :  { %2475 = vrcp.f32 %v2671_v45 }
 0x2c1   :  { %v2468_v57 = vpop.eup %2467 }
 0x2c2   :  { %v2470_v58 = vpop.eup %2469  ;;  %v359_v60 = vmul.f32 %v2468_v57, %v2458_v35  ;;  %v2143_v57 = vld [vmem:[%s3385_s3 + $0xc] sm:$0xf0] }
 0x2c3   :  { %v2472_v59 = vpop.eup %2471  ;;  %v358_v62 = vmul.f32 %v2470_v58, %v2456_v32 }
 0x2c4   :  { %v2474_v61 = vpop.eup %2473  ;;  %v292_v63 = vmul.f32 %v2472_v59, %v2799_v15 }
 0x2c5   :  { %v360_v0 = vpack.c.bf16 %v359_v60, %v358_v62  ;;  %v291_v2 = vmul.f32 %v2474_v61, %v2795_v5  ;;  %v2476_v46 = vpop.eup %2475  ;;  %v2862_v61 = vor.u32 %v2310_v56, %v2143_v57  ;;  %v51_v56 = vld [vmem:[%s3387_s5 + $0x30] sm:$0xff] }
 0x2c6   :  { %v448_v47 = vmul.f32 32.0, %v2476_v46  ;;  %vm452_vm4 = vweird.f32 %v2476_v46 }
 0x2c7   :  { %v293_v3 = vpack.c.bf16 %v292_v63, %v291_v2 }
 0x2c8   :  { %v449_v48 = vsub.f32 1.0, %v448_v47 }
 0x2ca   :  { %v450_v49 = vmul.f32 %v2476_v46, %v449_v48 }
 0x2cc   :  { %v451_v18 = vadd.f32 %v2476_v46, %v450_v49 }
 0x2cd   :  { %v295_v1 = vpop.permute.xlu0 %294 }
 0x2ce   :  { %307 = vmatpush.bf16.msra.mxu1 %v295_v1  ;;  %2141 = vmatmul.msk.bf16.vlgmr.msra.gmra.mxu2 %vm136_vm2, %v360_v0  ;;  %v2840_v50 = vsel %vm452_vm4, %v2476_v46, %v451_v18 }
 0x2d1   :  { %2139 = vmatmul.msk.bf16.vlgmr.msra.gmra.mxu1 %vm136_vm2, %v293_v3 }
 0x331   :  { %v175_v9 = vpop.f32.mrf.mxu2 }
 0x339   :  { %v177_v4 = vpop.f32.mrf.mxu2 }
 0x341   :  { %v242_v7 = vpop.f32.mrf.mxu2 }
 0x349   :  { %v244_v8 = vpop.f32.mrf.mxu2 }
 0x34a   :  { %v2362_v12 = vpack.i.bf16 %v244_v8, %v242_v7 }
 0x34c   :  { %2363 = vrot.lane.b32.xlu2 %v2362_v12, %s2656_s27 }
 0x34e   :  { %v309_v13 = vpop.f32.mrf.mxu1 }
 0x351   :  { %v376_v14 = vpop.f32.mrf.mxu2 }
 0x356   :  { %v311_v15 = vpop.f32.mrf.mxu1 }
 0x357   :  { %v2357_v16 = vpack.i.bf16 %v311_v15, %v309_v13 }
 0x359   :  { %v378_v5 = vpop.f32.mrf.mxu2  ;;  %2358 = vrot.lane.b32.xlu0 %v2357_v16, %s2669_s9 }
 0x35a   :  { %v2367_v17 = vpack.i.bf16 %v378_v5, %v376_v14 }
 0x35c   :  { %2368 = vrot.lane.b32.xlu2 %v2367_v17, %s2670_s10 }
 0x3a6   :  { %v2364_v20 = vpop.permute.xlu2 %2363 }
 0x3a7   :  { %v2366_v21 = vunpack.i.h.bf16 %v2364_v20  ;;  %v2365_v22 = vunpack.i.l.bf16 %v2364_v20 }
 0x3a9   :  { %v406_v27 = vsel %vm115_vm1, %v177_v4, %v2366_v21  ;;  %v405_v28 = vsel %vm115_vm1, %v175_v9, %v2365_v22 }
 0x3b6   :  { %v2369_v23 = vpop.permute.xlu2 %2368 }
 0x3b7   :  { %v2371_v29 = vunpack.i.h.bf16 %v2369_v23  ;;  %v2370_v30 = vunpack.i.l.bf16 %v2369_v23 }
 0x3cb   :  { %v2359_v24 = vpop.permute.xlu0 %2358 }
 0x3cc   :  { %v2361_v25 = vunpack.i.h.bf16 %v2359_v24  ;;  %v2360_v26 = vunpack.i.l.bf16 %v2359_v24 }
 0x3ce   :  { %v408_v31 = vsel %vm136_vm2, %v406_v27, %v2361_v25  ;;  %v407_v32 = vsel %vm136_vm2, %v405_v28, %v2360_v26  ;;  %v2309_v25 = vld [vmem:[%s3384_s2] sm:$0xff] }
 0x3cf   :  { %v411_v33 = vsel %vm409_vm3, %v408_v31, %v2371_v29  ;;  %v410_v34 = vsel %vm409_vm3, %v407_v32, %v2370_v30  ;;  %v2419_v26 = vld [vmem:[%s3387_s5 + $0x5] ss:$0 sm:$0xff]  ;;  %v2420_v31 = vld [vmem:[%s3387_s5 + $0x6] ss:$0 sm:$0xff] }
 0x3d0   :  { %v412_v35 = vpack.c.bf16 %v411_v33, %v410_v34 }
 0x3d2   :  { %2142 = vmatmul.msk.bf16.vlgmr.msra.gmra.mxu0 %vm92_vm0, %v412_v35 }
 0x44f   :  { %v432_v37 = vpop.f32.mrf.mxu0 }
 0x450   :  { %v433_v38 = vadd.f32 %v2418_v36, %v432_v37 }
 0x452   :  { %v437_v39 = vadd.f32 %v433_v38, %v2737_v10  ;;  %v2421_v38 = vld [vmem:[%s3387_s5 + $0x3] ss:$0 sm:$0xff] }
 0x454   :  { %v441_v40 = vsel %vm92_vm0, %v437_v39, 0.0 }
 0x455   :  { %442 = vadd.xlane.f32.xlu0 %v441_v40 }
 0x457   :  { %v434_v41 = vpop.f32.mrf.mxu0 }
 0x458   :  { %v435_v42 = vadd.f32 %v2418_v36, %v434_v41 }
 0x45a   :  { %v438_v43 = vadd.f32 %v435_v42, %v2739_v11  ;;  %v2313_v11 = vld [vmem:[%s3385_s3 + $0x1c] sm:$0xf] }
 0x45b   :  { %v2849_v55 = vor.u32 %v2313_v11, %v2147_v53 }
 0x45c   :  { %v444_v44 = vsel %vm92_vm0, %v438_v43, 0.0 }
 0x45d   :  { %445 = vadd.xlane.f32.xlu2 %v444_v44  ;;  %518 = vmatpush.bf16.msrb.mxu1 %v2849_v55 }
 0x461   :  { %519 = vmatpush.bf16.msrb.mxu1 %v2862_v61 }
 0x475   :  { %535 = vrot.lane.b32.xlu2 %v2849_v55, %s2659_s18 }
 0x4c8   :  { %v443_v10 = vpop.xlane.xlu0 %442 }
 0x4c9   :  { %v454_v51 = vmul.f32 %v2840_v50, %v443_v10 }
 0x4cb   :  { %v456_v52 = vsub.f32 %v437_v39, %v454_v51  ;;  %v2422_v39 = vld [vmem:[%s3387_s5 + $0x2] ss:$0 sm:$0xff] }
 0x4cd   :  { %v458_v54 = vmul.f32 %v456_v52, %v456_v52 }
 0x4cf   :  { %v460_v58 = vsel %vm92_vm0, %v458_v54, 0.0 }
 0x4d0   :  { %v446_v59 = vpop.xlane.xlu2 %445  ;;  %461 = vadd.xlane.f32.xlu1 %v460_v58 }
 0x4d1   :  { %v455_v60 = vmul.f32 %v2840_v50, %v446_v59 }
 0x4d3   :  { %v457_v62 = vsub.f32 %v438_v43, %v455_v60 }
 0x4d5   :  { %v459_v63 = vmul.f32 %v457_v62, %v457_v62 }
 0x4d7   :  { %v463_v0 = vsel %vm92_vm0, %v459_v63, 0.0 }
 0x4d8   :  { %464 = vadd.xlane.f32.xlu0 %v463_v0  ;;  %v536_v1 = vpop.permute.xlu2 %535 }
 0x4d9   :  { %548 = vmatpush.bf16.msrb.mxu3 %v536_v1 }
 0x4ec   :  { %533 = vrot.lane.b32.xlu0 %v2862_v61, %s2659_s18 }
 0x543   :  { %v462_v2 = vpop.xlane.xlu1 %461 }
 0x544   :  { %v466_v3 = vmul.f32 %v462_v2, %v2840_v50 }
 0x546   :  { %v468_v9 = vadd.f32 1e-05, %v466_v3 }
 0x548   :  { %2477 = vrsqrt.f32 %v468_v9  ;;  %vm476_vm6 = vweird.f32 %v468_v9 }
 0x54b   :  { %v465_v4 = vpop.xlane.xlu0 %464 }
 0x54c   :  { %v467_v6 = vmul.f32 %v465_v4, %v2840_v50 }
 0x54e   :  { %v2478_v7 = vpop.eup %2477  ;;  %v469_v8 = vadd.f32 1e-05, %v467_v6 }
 0x54f   :  { %v471_v12 = vmul.f32 %v2478_v7, %v468_v9  ;;  %vm477_vm5 = vweird.f32 %v2478_v7 }
 0x550   :  { %2479 = vrsqrt.f32 %v469_v8  ;;  %vm478_vm7 = vmor %vm476_vm6, %vm477_vm5  ;;  %vm486_vm9 = vweird.f32 %v469_v8 }
 0x551   :  { %v472_v13 = vmul.f32 %v2478_v7, %v471_v12 }
 0x553   :  { %v473_v14 = vmul.f32 0.5, %v472_v13 }
 0x555   :  { %v474_v15 = vsub.f32 1.5, %v473_v14 }
 0x556   :  { %v2480_v16 = vpop.eup %2479 }
 0x557   :  { %v475_v5 = vmul.f32 %v2478_v7, %v474_v15  ;;  %v481_v17 = vmul.f32 %v2480_v16, %v469_v8  ;;  %vm487_vm8 = vweird.f32 %v2480_v16 }
 0x558   :  { %vm488_vm10 = vmor %vm486_vm9, %vm487_vm8 }
 0x559   :  { %v482_v19 = vmul.f32 %v2480_v16, %v481_v17  ;;  %v479_v20 = vsel %vm478_vm7, %v2478_v7, %v475_v5 }
 0x55a   :  { %v490_v23 = vmul.f32 %v479_v20, %v456_v52 }
 0x55b   :  { %v483_v21 = vmul.f32 0.5, %v482_v19 }
 0x55c   :  { %v493_v30 = vmul.f32 %v2419_v26, %v490_v23 }
 0x55d   :  { %v484_v22 = vsub.f32 1.5, %v483_v21 }
 0x55e   :  { %v534_v24 = vpop.permute.xlu0 %533  ;;  %v2880_v33 = vadd.f32 %v2420_v31, %v493_v30 }
 0x55f   :  { %v485_v27 = vmul.f32 %v2480_v16, %v484_v22  ;;  %549 = vmatpush.bf16.msrb.mxu3 %v534_v24 }
 0x561   :  { %v489_v28 = vsel %vm488_vm10, %v2480_v16, %v485_v27 }
 0x562   :  { %v491_v29 = vmul.f32 %v489_v28, %v457_v62  ;;  %2156 = vmatmul.msk.bf16.vlgmr.msrb.gmra.mxu3 %vm92_vm0, %v2309_v25  ;;  %v52_v62 = vld [vmem:[%s3387_s5 + $0x38] sm:$0xff] }
 0x564   :  { %v494_v32 = vmul.f32 %v2419_v26, %v491_v29 }
 0x566   :  { %v2882_v34 = vadd.f32 %v2420_v31, %v494_v32 }
 0x568   :  { %v498_v35 = vpack.c.bf16 %v2882_v34, %v2880_v33 }
 0x56a   :  { %2151 = vmatmul.msk.bf16.vlgmr.msrb.gmra.mxu1 %vm92_vm0, %v498_v35 }
 0x5e5   :  { %v551_v36 = vpop.f32.mrf.mxu3 }
 0x5e6   :  { %v552_v41 = vadd.f32 %v2421_v38, %v551_v36 }
 0x5e7   :  { %v521_v37 = vpop.f32.mrf.mxu1 }
 0x5e8   :  { %v522_v44 = vadd.f32 %v2422_v39, %v521_v37 }
 0x5ed   :  { %v553_v40 = vpop.f32.mrf.mxu3 }
 0x5ee   :  { %v554_v42 = vadd.f32 %v2421_v38, %v553_v40 }
 0x5ef   :  { %v523_v43 = vpop.f32.mrf.mxu1 }
 0x5f0   :  { %v2893_v45 = vpack.c.bf16 %v554_v42, %v552_v41  ;;  %v524_v46 = vadd.f32 %v2422_v39, %v523_v43 }
 0x5f2   :  { %v557_v47 = vpack.c.bf16 %v524_v46, %v522_v44  ;;  %693 = vrot.lane.b32.xlu0 %v2893_v45, %s2663_s22  ;;  %626 = vrot.lane.b32.xlu1 %v2893_v45, %s2658_s17  ;;  %v563_v48 = vsel %vm115_vm1, %v2893_v45, 0 }
 0x5f3   :  { %572 = vmatpush.bf16.xpose.msrb.mxu2 %v563_v48 }
 0x5f4   :  { %624 = vrot.lane.b32.xlu2 %v557_v47, %s2658_s17 }
 0x5fa   :  { %691 = vrot.lane.b32.xlu0 %v557_v47, %s2663_s22  ;;  %2157 = vmatmul.msk.bf16.vlgmr.msrb.gmra.mxu2 %vm115_vm1, %v557_v47 }
 0x5fc   :  { %760 = vrot.lane.b32.xlu2 %v2893_v45, %s2657_s16 }
 0x604   :  { %758 = vrot.lane.b32.xlu2 %v557_v47, %s2657_s16 }
 0x64e   :  { %v625_v49 = vpop.permute.xlu2 %624 }
 0x656   :  { %v761_v18 = vpop.permute.xlu2 %760 }
 0x657   :  { %v766_v53 = vsel %vm115_vm1, %v761_v18, 0 }
 0x65e   :  { %v759_v57 = vpop.permute.xlu2 %758 }
 0x664   :  { %v694_v10 = vpop.permute.xlu0 %693  ;;  %v627_v51 = vpop.permute.xlu1 %626 }
 0x665   :  { %v699_v52 = vsel %vm115_vm1, %v694_v10, 0  ;;  %v632_v11 = vsel %vm115_vm1, %v627_v51, 0 }
 0x666   :  { %641 = vmatpush.bf16.xpose.msra.mxu1 %v632_v11  ;;  %708 = vmatpush.bf16.xpose.msra.mxu2 %v699_v52 }
 0x66c   :  { %v692_v54 = vpop.permute.xlu0 %691 }
 0x66d   :  { %2159 = vmatmul.msk.bf16.vlgmr.msra.gmra.mxu1 %vm115_vm1, %v625_v49  ;;  %2161 = vmatmul.msk.bf16.vlgmr.msra.gmra.mxu2 %vm115_vm1, %v692_v54 }
 0x66e   :  { %775 = vmatpush.bf16.xpose.msrb.mxu1 %v766_v53 }
 0x67d   :  { %v574_v58 = vpop.f32.mrf.mxu2  ;;  %2163 = vmatmul.msk.bf16.vlgmr.msrb.gmra.mxu1 %vm115_vm1, %v759_v57 }
 0x67e   :  { %v575_v59 = vadd.f32 %v574_v58, %v51_v56 }
 0x680   :  { %v579_v60 = vsel %vm136_vm2, %v575_v59, -inf }
 0x681   :  { %580 = vmax.xlane.f32.xlu2 %v579_v60 }
 0x685   :  { %v576_v63 = vpop.f32.mrf.mxu2 }
 0x686   :  { %v577_v0 = vadd.f32 %v576_v63, %v52_v62 }
 0x688   :  { %v582_v1 = vsel %vm136_vm2, %v577_v0, -inf }
 0x689   :  { %583 = vmax.xlane.f32.xlu0 %v582_v1 }
 0x6ea   :  { %v643_v2 = vpop.f32.mrf.mxu1 }
 0x6eb   :  { %v644_v3 = vadd.f32 %v643_v2, %v51_v56 }
 0x6ed   :  { %v648_v9 = vsel %vm136_vm2, %v644_v3, -inf }
 0x6ee   :  { %649 = vmax.xlane.f32.xlu0 %v648_v9 }
 0x6f0   :  { %v710_v4 = vpop.f32.mrf.mxu2 }
 0x6f1   :  { %v2922_v6 = vadd.f32 %v710_v4, %v51_v56 }
 0x6f2   :  { %v645_v7 = vpop.f32.mrf.mxu1 }
 0x6f3   :  { %v646_v8 = vadd.f32 %v645_v7, %v52_v62  ;;  %v715_v13 = vsel %vm136_vm2, %v2922_v6, -inf }
 0x6f4   :  { %v581_v14 = vpop.xlane.xlu2 %580 }
 0x6f5   :  { %v651_v12 = vsel %vm136_vm2, %v646_v8, -inf  ;;  %v585_v17 = vsub.f32 %v575_v59, %v581_v14 }
 0x6f6   :  { %652 = vmax.xlane.f32.xlu1 %v651_v12  ;;  %716 = vmax.xlane.f32.xlu0 %v715_v13 }
 0x6f7   :  { %v587_v22 = vmul.f32 1.442695, %v585_v17 }
 0x6f8   :  { %v712_v15 = vpop.f32.mrf.mxu2 }
 0x6f9   :  { %v713_v16 = vadd.f32 %v712_v15, %v52_v62  ;;  %2481 = vpow2.f32 %v587_v22 }
 0x6fa   :  { %v777_v5 = vpop.f32.mrf.mxu1 }
 0x6fb   :  { %v718_v21 = vsel %vm136_vm2, %v713_v16, -inf  ;;  %v778_v24 = vadd.f32 %v777_v5, %v51_v56 }
 0x6fc   :  { %v584_v19 = vpop.xlane.xlu0 %583 }
 0x6fd   :  { %v586_v20 = vsub.f32 %v577_v0, %v584_v19  ;;  %v782_v27 = vsel %vm136_vm2, %v778_v24, -inf }
 0x6fe   :  { %719 = vmax.xlane.f32.xlu1 %v718_v21 }
 0x6ff   :  { %v589_v23 = vmul.f32 1.442695, %v586_v20  ;;  %v2482_v29 = vpop.eup %2481 }
 0x700   :  { %v591_v32 = vsel %vm136_vm2, %v2482_v29, 0.0 }
 0x701   :  { %2483 = vpow2.f32 %v589_v23 }
 0x702   :  { %v779_v25 = vpop.f32.mrf.mxu1 }
 0x703   :  { %v780_v26 = vadd.f32 %v779_v25, %v52_v62 }
 0x705   :  { %v785_v28 = vsel %vm136_vm2, %v780_v26, -inf }
 0x706   :  { %783 = vmax.xlane.f32.xlu1 %v782_v27  ;;  %786 = vmax.xlane.f32.xlu2 %v785_v28 }
 0x707   :  { %v2484_v30 = vpop.eup %2483 }
 0x708   :  { %v594_v31 = vsel %vm136_vm2, %v2484_v30, 0.0 }
 0x70e   :  { %595 = vadd.xlane.f32.xlu2 %v594_v31  ;;  %592 = vadd.xlane.f32.xlu1 %v591_v32 }
 0x727   :  { %603 = vrot.lane.b32.xlu1 %v2893_v45, %s2659_s18 }
 0x72f   :  { %738 = vrot.lane.b32.xlu1 %v2893_v45, %s2660_s19 }
 0x737   :  { %859 = vrot.lane.b32.xlu1 %v2849_v55, %s2668_s8 }
 0x761   :  { %v650_v35 = vpop.xlane.xlu0 %649 }
 0x762   :  { %v654_v36 = vsub.f32 %v644_v3, %v650_v35 }
 0x764   :  { %v656_v37 = vmul.f32 1.442695, %v654_v36 }
 0x766   :  { %2485 = vpow2.f32 %v656_v37 }
 0x769   :  { %v653_v38 = vpop.xlane.xlu1 %652  ;;  %v717_v9 = vpop.xlane.xlu0 %716 }
 0x76a   :  { %v655_v39 = vsub.f32 %v646_v8, %v653_v38  ;;  %v721_v7 = vsub.f32 %v2922_v6, %v717_v9 }
 0x76c   :  { %v2486_v40 = vpop.eup %2485  ;;  %v658_v41 = vmul.f32 1.442695, %v655_v39  ;;  %v723_v8 = vmul.f32 1.442695, %v721_v7 }
 0x76d   :  { %v660_v42 = vsel %vm136_vm2, %v2486_v40, 0.0 }
 0x76e   :  { %2487 = vpow2.f32 %v658_v41  ;;  %661 = vadd.xlane.f32.xlu2 %v660_v42 }
 0x771   :  { %v720_v43 = vpop.xlane.xlu1 %719 }
 0x772   :  { %v722_v44 = vsub.f32 %v713_v16, %v720_v43 }
 0x774   :  { %v2488_v46 = vpop.eup %2487  ;;  %v725_v47 = vmul.f32 1.442695, %v722_v44 }
 0x775   :  { %v663_v48 = vsel %vm136_vm2, %v2488_v46, 0.0 }
 0x776   :  { %2489 = vpow2.f32 %v725_v47  ;;  %664 = vadd.xlane.f32.xlu0 %v663_v48 }
 0x779   :  { %v784_v55 = vpop.xlane.xlu1 %783  ;;  %v787_v49 = vpop.xlane.xlu2 %786 }
 0x77a   :  { %v788_v18 = vsub.f32 %v778_v24, %v784_v55  ;;  %v789_v52 = vsub.f32 %v780_v26, %v787_v49 }
 0x77c   :  { %v2940_v10 = vpop.eup %2489  ;;  %v790_v51 = vmul.f32 1.442695, %v788_v18  ;;  %v792_v53 = vmul.f32 1.442695, %v789_v52 }
 0x77d   :  { %v730_v11 = vsel %vm136_vm2, %v2940_v10, 0.0 }
 0x77e   :  { %2491 = vpow2.f32 %v790_v51  ;;  %731 = vadd.xlane.f32.xlu2 %v730_v11 }
 0x77f   :  { %2493 = vpow2.f32 %v792_v53 }
 0x781   :  { %v593_v58 = vpop.xlane.xlu1 %592  ;;  %v596_v59 = vpop.xlane.xlu2 %595 }
 0x782   :  { %2495 = vrcp.f32 %v593_v58 }
 0x783   :  { %2497 = vrcp.f32 %v596_v59 }
 0x784   :  { %v2492_v54 = vpop.eup %2491  ;;  %2499 = vpow2.f32 %v723_v8 }
 0x785   :  { %v794_v56 = vsel %vm136_vm2, %v2492_v54, 0.0  ;;  %v2494_v57 = vpop.eup %2493 }
 0x786   :  { %795 = vadd.xlane.f32.xlu2 %v794_v56  ;;  %v797_v60 = vsel %vm136_vm2, %v2494_v57, 0.0 }
 0x788   :  { %v2496_v62 = vpop.eup %2495 }
 0x789   :  { %v2498_v63 = vpop.eup %2497  ;;  %v599_v0 = vmul.f32 %v2496_v62, %v2482_v29 }
 0x78a   :  { %671 = vrot.lane.b32.xlu0 %v2893_v45, %s2662_s21  ;;  %v600_v1 = vmul.f32 %v2498_v63, %v2484_v30  ;;  %v2500_v12 = vpop.eup %2499 }
 0x78b   :  { %v727_v13 = vsel %vm136_vm2, %v2500_v12, 0.0 }
 0x78c   :  { %v601_v3 = vpack.c.bf16 %v600_v1, %v599_v0  ;;  %v2423_v1 = vld [vmem:[%s3387_s5 + $0x4] ss:$0 sm:$0xff] }
 0x78e   :  { %798 = vadd.xlane.f32.xlu2 %v797_v60 }
 0x799   :  { %v604_v2 = vpop.permute.xlu1 %603 }
 0x79a   :  { %616 = vmatpush.bf16.msrb.mxu0 %v604_v2 }
 0x79d   :  { %2158 = vmatmul.msk.bf16.vlgmr.msrb.gmra.mxu0 %vm136_vm2, %v601_v3 }
 0x7a1   :  { %v739_v4 = vpop.permute.xlu1 %738 }
 0x7a2   :  { %751 = vmatpush.bf16.msra.mxu0 %v739_v4 }
 0x7a6   :  { %805 = vrot.lane.b32.xlu2 %v2893_v45, %s2661_s20 }
 0x7a9   :  { %v860_v44 = vpop.permute.xlu1 %859 }
 0x7aa   :  { %872 = vmatpush.bf16.msrb.mxu2 %v860_v44 }
 0x7b4   :  { %728 = vadd.xlane.f32.xlu0 %v727_v13 }
 0x7e1   :  { %v662_v14 = vpop.xlane.xlu2 %661 }
 0x7e9   :  { %v665_v15 = vpop.xlane.xlu0 %664 }
 0x7ea   :  { %2501 = vrcp.f32 %v665_v15 }
 0x7eb   :  { %2503 = vrcp.f32 %v662_v14 }
 0x7f0   :  { %v2502_v5 = vpop.eup %2501 }
 0x7f1   :  { %v732_v16 = vpop.xlane.xlu2 %731  ;;  %v2504_v17 = vpop.eup %2503  ;;  %v669_v20 = vmul.f32 %v2502_v5, %v2488_v46 }
 0x7f2   :  { %v668_v6 = vmul.f32 %v2504_v17, %v2486_v40 }
 0x7f4   :  { %v670_v22 = vpack.c.bf16 %v669_v20, %v668_v6 }
 0x7f9   :  { %v796_v19 = vpop.xlane.xlu2 %795 }
 0x7fc   :  { %v672_v21 = vpop.permute.xlu0 %671 }
 0x7fd   :  { %684 = vmatpush.bf16.msra.mxu3 %v672_v21 }
 0x800   :  { %2160 = vmatmul.msk.bf16.vlgmr.msra.gmra.mxu3 %vm136_vm2, %v670_v22  ;;  %v2315_v22 = vld [vmem:[%s3385_s3 + $0x28] sm:$0xf0] }
 0x801   :  { %v799_v45 = vpop.xlane.xlu2 %798 }
 0x802   :  { %2505 = vrcp.f32 %v799_v45 }
 0x803   :  { %2507 = vrcp.f32 %v796_v19 }
 0x804   :  { %2509 = vrcp.f32 %v732_v16 }
 0x808   :  { %v2506_v23 = vpop.eup %2505 }
 0x809   :  { %v2508_v24 = vpop.eup %2507  ;;  %v806_v25 = vpop.permute.xlu2 %805  ;;  %v803_v26 = vmul.f32 %v2506_v23, %v2494_v57 }
 0x80a   :  { %818 = vmatpush.bf16.msrb.mxu3 %v806_v25  ;;  %v802_v27 = vmul.f32 %v2508_v24, %v2492_v54  ;;  %v2510_v30 = vpop.eup %2509  ;;  %v2168_v25 = vld [vmem:[%s3385_s3 + $0x8] sm:$0xf] }
 0x80b   :  { %v736_v32 = vmul.f32 %v2510_v30, %v2940_v10 }
 0x80c   :  { %v804_v28 = vpack.c.bf16 %v803_v26, %v802_v27  ;;  %v2312_v26 = vld [vmem:[%s3385_s3 + $0x10] sm:$0xf0] }
 0x810   :  { %2164 = vmatmul.msk.bf16.vlgmr.msrb.gmra.mxu3 %vm136_vm2, %v804_v28  ;;  %v2169_v28 = vor.u32 %v2312_v26, %v2168_v25 }
 0x81a   :  { %v618_v43 = vpop.f32.mrf.mxu0 }
 0x822   :  { %v620_v46 = vpop.f32.mrf.mxu0 }
 0x827   :  { %v729_v29 = vpop.xlane.xlu0 %728 }
 0x828   :  { %2511 = vrcp.f32 %v729_v29  ;;  %v2323_v29 = vld [vmem:[%s3386_s4 + $0x38] sm:$0xff] }
 0x829   :  { %1019 = vmatpush.bf16.msra.mxu1 %v2323_v29 }
 0x82e   :  { %v2512_v31 = vpop.eup %2511 }
 0x82f   :  { %v735_v35 = vmul.f32 %v2512_v31, %v2500_v12 }
 0x831   :  { %v737_v36 = vpack.c.bf16 %v736_v32, %v735_v35  ;;  %v2322_v32 = vld [vmem:[%s3386_s4 + $0x30] sm:$0xff] }
 0x832   :  { %1020 = vmatpush.bf16.msra.mxu1 %v2322_v32  ;;  %v2233_v32 = vld [vmem:[%s3385_s3 + $0x30] sm:$0xf] }
 0x833   :  { %2162 = vmatmul.msk.bf16.vlgmr.msra.gmra.mxu0 %vm136_vm2, %v737_v36 }
 0x883   :  { %v686_v37 = vpop.f32.mrf.mxu3 }
 0x88b   :  { %v688_v38 = vpop.f32.mrf.mxu3 }
 0x88c   :  { %v2372_v39 = vpack.i.bf16 %v688_v38, %v686_v37  ;;  %v2321_v38 = vld [vmem:[%s3386_s4 + $0x28] sm:$0xff] }
 0x88d   :  { %1021 = vmatpush.bf16.msra.mxu1 %v2321_v38 }
 0x88e   :  { %2373 = vrot.lane.b32.xlu1 %v2372_v39, %s2656_s27 }
 0x893   :  { %v820_v40 = vpop.f32.mrf.mxu3 }
 0x89b   :  { %v822_v41 = vpop.f32.mrf.mxu3 }
 0x89c   :  { %v2382_v42 = vpack.i.bf16 %v822_v41, %v820_v40  ;;  %v2320_v41 = vld [vmem:[%s3386_s4 + $0x20] sm:$0xff] }
 0x89d   :  { %1022 = vmatpush.bf16.msra.mxu1 %v2320_v41 }
 0x89e   :  { %2383 = vrot.lane.b32.xlu1 %v2382_v42, %s2670_s10 }
 0x8b0   :  { %v753_v47 = vpop.f32.mrf.mxu0 }
 0x8b8   :  { %v755_v48 = vpop.f32.mrf.mxu0 }
 0x8b9   :  { %v2377_v55 = vpack.i.bf16 %v755_v48, %v753_v47 }
 0x8bb   :  { %2378 = vrot.lane.b32.xlu2 %v2377_v55, %s2669_s9 }
 0x8c3   :  { %857 = vrot.lane.b32.xlu2 %v2862_v61, %s2668_s8 }
 0x900   :  { %v2374_v49 = vpop.permute.xlu1 %2373 }
 0x901   :  { %v2376_v18 = vunpack.i.h.bf16 %v2374_v49  ;;  %v2375_v10 = vunpack.i.l.bf16 %v2374_v49 }
 0x903   :  { %v850_v54 = vsel %vm115_vm1, %v620_v46, %v2376_v18  ;;  %v849_v56 = vsel %vm115_vm1, %v618_v43, %v2375_v10  ;;  %v2424_v18 = vld [vmem:[%s3387_s5 + $0x7] ss:$0 sm:$0xff] }
 0x910   :  { %v2384_v53 = vpop.permute.xlu1 %2383 }
 0x911   :  { %v2386_v59 = vunpack.i.h.bf16 %v2384_v53  ;;  %v2385_v60 = vunpack.i.l.bf16 %v2384_v53 }
 0x915   :  { %v2379_v51 = vpop.permute.xlu2 %2378 }
 0x916   :  { %v2381_v52 = vunpack.i.h.bf16 %v2379_v51  ;;  %v2380_v11 = vunpack.i.l.bf16 %v2379_v51 }
 0x918   :  { %v852_v57 = vsel %vm136_vm2, %v850_v54, %v2381_v52  ;;  %v851_v58 = vsel %vm136_vm2, %v849_v56, %v2380_v11  ;;  %v2425_v11 = vld [vmem:[%s3387_s5 + $0x8] ss:$0 sm:$0xff] }
 0x919   :  { %v854_v62 = vsel %vm409_vm3, %v852_v57, %v2386_v59  ;;  %v853_v61 = vsel %vm409_vm3, %v851_v58, %v2385_v60  ;;  %v2319_v60 = vld [vmem:[%s3386_s4 + $0x18] sm:$0xff] }
 0x91a   :  { %v855_v0 = vpack.c.bf16 %v854_v62, %v853_v61  ;;  %1023 = vmatpush.bf16.msra.mxu1 %v2319_v60  ;;  %v2318_v62 = vld [vmem:[%s3386_s4 + $0x10] sm:$0xff]  ;;  %v2317_v61 = vld [vmem:[%s3386_s4 + $0x8] sm:$0xff] }
 0x91d   :  { %v858_v63 = vpop.permute.xlu2 %857 }
 0x91e   :  { %873 = vmatpush.bf16.msrb.mxu2 %v858_v63  ;;  %1024 = vmatpush.bf16.msra.mxu1 %v2318_v62  ;;  %v2316_v63 = vld [vmem:[%s3386_s4] sm:$0xff] }
 0x921   :  { %2165 = vmatmul.msk.bf16.vlgmr.msrb.gmra.mxu2 %vm92_vm0, %v855_v0 }
 0x922   :  { %1025 = vmatpush.bf16.msra.mxu1 %v2317_v61 }
 0x926   :  { %1026 = vmatpush.bf16.msra.mxu1 %v2316_v63 }
 0x9a4   :  { %v875_v2 = vpop.f32.mrf.mxu2 }
 0x9a5   :  { %v876_v3 = vadd.f32 %v2423_v1, %v875_v2 }
 0x9a7   :  { %v880_v9 = vadd.f32 %v876_v3, %v2880_v33 }
 0x9a9   :  { %v884_v4 = vsel %vm92_vm0, %v880_v9, 0.0 }
 0x9aa   :  { %885 = vadd.xlane.f32.xlu0 %v884_v4 }
 0x9ac   :  { %v877_v7 = vpop.f32.mrf.mxu2 }
 0x9ad   :  { %v878_v8 = vadd.f32 %v2423_v1, %v877_v7  ;;  %v2426_v1 = vld [vmem:[%s3387_s5 + $0x9] ss:$0 sm:$0xff] }
 0x9af   :  { %v881_v12 = vadd.f32 %v878_v8, %v2882_v34  ;;  %v2172_v34 = vld [vmem:[%s3385_s3 + $0x20] sm:$0xf] }
 0x9b0   :  { %v2173_v45 = vor.u32 %v2315_v22, %v2172_v34 }
 0x9b1   :  { %v887_v13 = vsel %vm92_vm0, %v881_v12, 0.0 }
 0x9b2   :  { %888 = vadd.xlane.f32.xlu1 %v887_v13  ;;  %958 = vmatpush.bf16.msrb.mxu0 %v2173_v45 }
 0x9b6   :  { %959 = vmatpush.bf16.msrb.mxu0 %v2169_v28  ;;  %v2328_v28 = vld [vmem:[%s3385_s3 + $0x50] sm:$0xf0] }
 0xa1d   :  { %v886_v14 = vpop.xlane.xlu0 %885 }
 0xa1e   :  { %v890_v15 = vmul.f32 %v886_v14, %v2840_v50 }
 0xa20   :  { %v892_v16 = vsub.f32 %v880_v9, %v890_v15 }
 0xa22   :  { %v894_v5 = vmul.f32 %v892_v16, %v892_v16 }
 0xa24   :  { %v896_v17 = vsel %vm92_vm0, %v894_v5, 0.0 }
 0xa25   :  { %v889_v19 = vpop.xlane.xlu1 %888  ;;  %897 = vadd.xlane.f32.xlu2 %v896_v17 }
 0xa26   :  { %v891_v33 = vmul.f32 %v889_v19, %v2840_v50 }
 0xa28   :  { %v893_v20 = vsub.f32 %v881_v12, %v891_v33  ;;  %v2427_v12 = vld [vmem:[%s3387_s5 + $0xa] ss:$0 sm:$0xff] }
 0xa2a   :  { %v895_v6 = vmul.f32 %v893_v20, %v893_v20 }
 0xa2c   :  { %v899_v21 = vsel %vm92_vm0, %v895_v6, 0.0 }
 0xa2d   :  { %900 = vadd.xlane.f32.xlu0 %v899_v21 }
 0xa98   :  { %v898_v23 = vpop.xlane.xlu2 %897 }
 0xa99   :  { %v902_v24 = vmul.f32 %v898_v23, %v2840_v50 }
 0xa9b   :  { %v904_v27 = vadd.f32 1e-05, %v902_v24 }
 0xa9d   :  { %2513 = vrsqrt.f32 %v904_v27  ;;  %vm912_vm12 = vweird.f32 %v904_v27 }
 0xaa0   :  { %v901_v30 = vpop.xlane.xlu0 %900 }
 0xaa1   :  { %v903_v31 = vmul.f32 %v901_v30, %v2840_v50 }
 0xaa3   :  { %v2514_v35 = vpop.eup %2513  ;;  %v905_v36 = vadd.f32 1e-05, %v903_v31 }
 0xaa4   :  { %v907_v37 = vmul.f32 %v2514_v35, %v904_v27  ;;  %vm913_vm11 = vweird.f32 %v2514_v35  ;;  %v2237_v27 = vld [vmem:[%s3385_s3 + $0x48] sm:$0xf] }
 0xaa5   :  { %2515 = vrsqrt.f32 %v905_v36  ;;  %vm914_vm13 = vmor %vm912_vm12, %vm913_vm11  ;;  %vm922_vm15 = vweird.f32 %v905_v36  ;;  %v3043_v29 = vor.u32 %v2328_v28, %v2237_v27 }
 0xaa6   :  { %v908_v39 = vmul.f32 %v2514_v35, %v907_v37 }
 0xaa7   :  { %1137 = vmatpush.bf16.msra.mxu3 %v3043_v29 }
 0xaa8   :  { %v909_v40 = vmul.f32 0.5, %v908_v39 }
 0xaaa   :  { %v910_v42 = vsub.f32 1.5, %v909_v40 }
 0xaab   :  { %v2516_v43 = vpop.eup %2515 }
 0xaac   :  { %v911_v44 = vmul.f32 %v2514_v35, %v910_v42  ;;  %v917_v46 = vmul.f32 %v2516_v43, %v905_v36  ;;  %vm923_vm14 = vweird.f32 %v2516_v43 }
 0xaad   :  { %vm924_vm4 = vmor %vm922_vm15, %vm923_vm14 }
 0xaae   :  { %v918_v47 = vmul.f32 %v2516_v43, %v917_v46  ;;  %v915_v48 = vsel %vm914_vm13, %v2514_v35, %v911_v44  ;;  %v2325_v35 = vld [vmem:[%s3385_s3 + $0x38] sm:$0xf0] }
 0xaaf   :  { %v926_v10 = vmul.f32 %v915_v48, %v892_v16  ;;  %v3053_v37 = vor.u32 %v2325_v35, %v2233_v32 }
 0xab0   :  { %v919_v55 = vmul.f32 0.5, %v918_v47 }
 0xab1   :  { %v929_v53 = vmul.f32 %v2424_v18, %v926_v10  ;;  %1138 = vmatpush.bf16.msra.mxu3 %v3053_v37 }
 0xab2   :  { %v920_v49 = vsub.f32 1.5, %v919_v55 }
 0xab3   :  { %v932_v57 = vadd.f32 %v2425_v11, %v929_v53 }
 0xab4   :  { %v921_v51 = vmul.f32 %v2516_v43, %v920_v49 }
 0xab6   :  { %v925_v52 = vsel %vm924_vm4, %v2516_v43, %v921_v51 }
 0xab7   :  { %v927_v54 = vmul.f32 %v925_v52, %v893_v20  ;;  %v2428_v52 = vld [vmem:[%s3387_s5 + $0xb] ss:$0 sm:$0xff] }
 0xab9   :  { %v930_v56 = vmul.f32 %v2424_v18, %v927_v54 }
 0xabb   :  { %v933_v58 = vadd.f32 %v2425_v11, %v930_v56  ;;  %v2429_v56 = vld [vmem:[%s3387_s5 + $0xc] ss:$0 sm:$0xff] }
 0xabd   :  { %v934_v59 = vpack.c.bf16 %v933_v58, %v932_v57 }
 0xabf   :  { %2174 = vmatmul.msk.bf16.vlgmr.msrb.gmra.mxu0 %vm92_vm0, %v934_v59 }
 0xb3c   :  { %v961_v0 = vpop.f32.mrf.mxu0 }
 0xb3d   :  { %v962_v2 = vadd.f32 %v2426_v1, %v961_v0  ;;  %v2430_v0 = vld [vmem:[%s3387_s5 + $0x10] ss:$0 sm:$0xff] }
 0xb3f   :  { %v966_v4 = vmax.f32 %v962_v2, 0.0 }
 0xb44   :  { %v963_v3 = vpop.f32.mrf.mxu0 }
 0xb45   :  { %v964_v9 = vadd.f32 %v2426_v1, %v963_v3 }
 0xb47   :  { %v967_v7 = vmax.f32 %v964_v9, 0.0 }
 0xb49   :  { %v968_v8 = vpack.c.bf16 %v967_v7, %v966_v4 }
 0xb4b   :  { %1027 = vmatmul.bf16.vlgmr.msra.gmra.mxu1 %v968_v8 }
 0xbc8   :  { %v1028_v13 = vpop.f32.mrf.mxu1 }
 0xbc9   :  { %v1029_v14 = vadd.f32 %v2427_v12, %v1028_v13 }
 0xbcb   :  { %v1033_v15 = vadd.f32 %v1029_v14, %v932_v57 }
 0xbcd   :  { %v1037_v16 = vsel %vm92_vm0, %v1033_v15, 0.0 }
 0xbce   :  { %1038 = vadd.xlane.f32.xlu0 %v1037_v16  ;;  %v3096_v16 = vld [vmem:[%s3387_s5 + $0x28] sm:$0xff] }
 0xbd0   :  { %v1030_v5 = vpop.f32.mrf.mxu1 }
 0xbd1   :  { %v1031_v17 = vadd.f32 %v2427_v12, %v1030_v5  ;;  %v3089_v12 = vld [vmem:[%s3387_s5 + $0x20] sm:$0xff] }
 0xbd3   :  { %v1034_v19 = vadd.f32 %v1031_v17, %v933_v58 }
 0xbd5   :  { %v1040_v33 = vsel %vm92_vm0, %v1034_v19, 0.0 }
 0xbd6   :  { %1041 = vadd.xlane.f32.xlu0 %v1040_v33 }
 0xc41   :  { %v1039_v20 = vpop.xlane.xlu0 %1038 }
 0xc42   :  { %v1043_v6 = vmul.f32 %v1039_v20, %v2840_v50 }
 0xc44   :  { %v1045_v21 = vsub.f32 %v1033_v15, %v1043_v6 }
 0xc46   :  { %v1047_v34 = vmul.f32 %v1045_v21, %v1045_v21 }
 0xc48   :  { %v1049_v22 = vsel %vm92_vm0, %v1047_v34, 0.0 }
 0xc49   :  { %1050 = vadd.xlane.f32.xlu0 %v1049_v22  ;;  %v1042_v45 = vpop.xlane.xlu0 %1041 }
 0xc4a   :  { %v1044_v23 = vmul.f32 %v1042_v45, %v2840_v50 }
 0xc4c   :  { %v1046_v24 = vsub.f32 %v1034_v19, %v1044_v23 }
 0xc4e   :  { %v1048_v25 = vmul.f32 %v1046_v24, %v1046_v24 }
 0xc50   :  { %v1052_v26 = vsel %vm92_vm0, %v1048_v25, 0.0 }
 0xc51   :  { %1053 = vadd.xlane.f32.xlu0 %v1052_v26 }
 0xcbc   :  { %v1051_v30 = vpop.xlane.xlu0 %1050 }
 0xcbd   :  { %v1055_v31 = vmul.f32 %v1051_v30, %v2840_v50 }
 0xcbf   :  { %v1057_v36 = vadd.f32 1e-05, %v1055_v31 }
 0xcc1   :  { %2517 = vrsqrt.f32 %v1057_v36  ;;  %vm1065_vm6 = vweird.f32 %v1057_v36 }
 0xcc4   :  { %v1054_v38 = vpop.xlane.xlu0 %1053 }
 0xcc5   :  { %v1056_v39 = vmul.f32 %v1054_v38, %v2840_v50 }
 0xcc7   :  { %v2518_v40 = vpop.eup %2517  ;;  %v1058_v41 = vadd.f32 1e-05, %v1056_v39 }
 0xcc8   :  { %v1060_v42 = vmul.f32 %v2518_v40, %v1057_v36  ;;  %vm1066_vm5 = vweird.f32 %v2518_v40 }
 0xcc9   :  { %2519 = vrsqrt.f32 %v1058_v41  ;;  %vm1067_vm7 = vmor %vm1065_vm6, %vm1066_vm5  ;;  %vm1075_vm9 = vweird.f32 %v1058_v41 }
 0xcca   :  { %v1061_v43 = vmul.f32 %v2518_v40, %v1060_v42 }
 0xccc   :  { %v1062_v44 = vmul.f32 0.5, %v1061_v43 }
 0xcce   :  { %v1063_v46 = vsub.f32 1.5, %v1062_v44 }
 0xccf   :  { %v2520_v47 = vpop.eup %2519 }
 0xcd0   :  { %v1064_v48 = vmul.f32 %v2518_v40, %v1063_v46  ;;  %v1070_v55 = vmul.f32 %v2520_v47, %v1058_v41  ;;  %vm1076_vm8 = vweird.f32 %v2520_v47 }
 0xcd1   :  { %vm1077_vm10 = vmor %vm1075_vm9, %vm1076_vm8 }
 0xcd2   :  { %v1071_v49 = vmul.f32 %v2520_v47, %v1070_v55  ;;  %v1068_v18 = vsel %vm1067_vm7, %v2518_v40, %v1064_v48 }
 0xcd3   :  { %v1079_v11 = vmul.f32 %v1068_v18, %v1045_v21 }
 0xcd4   :  { %v1072_v10 = vmul.f32 0.5, %v1071_v49 }
 0xcd5   :  { %v1082_v57 = vmul.f32 %v2428_v52, %v1079_v11 }
 0xcd6   :  { %v1073_v51 = vsub.f32 1.5, %v1072_v10 }
 0xcd7   :  { %v3063_v60 = vadd.f32 %v2429_v56, %v1082_v57 }
 0xcd8   :  { %v1074_v53 = vmul.f32 %v2520_v47, %v1073_v51 }
 0xcda   :  { %v1078_v54 = vsel %vm1077_vm10, %v2520_v47, %v1074_v53 }
 0xcdb   :  { %v1080_v58 = vmul.f32 %v1078_v54, %v1046_v24 }
 0xcdd   :  { %v1083_v59 = vmul.f32 %v2428_v52, %v1080_v58 }
 0xcdf   :  { %v3065_v62 = vadd.f32 %v2429_v56, %v1083_v59 }
 0xce1   :  { %v1113_v61 = vpack.c.bf16 %v3065_v62, %v3063_v60 }
 0xce3   :  { %2239 = vmatmul.msk.bf16.vlgmr.msra.gmra.mxu3 %vm92_vm0, %v1113_v61 }
 0xd66   :  { %v1140_v63 = vpop.f32.mrf.mxu3 }
 0xd67   :  { %v1141_v2 = vadd.f32 %v2430_v0, %v1140_v63 }
 0xd6e   :  { %v1142_v1 = vpop.f32.mrf.mxu3 }
 0xd6f   :  { %v1143_v3 = vadd.f32 %v2430_v0, %v1142_v1 }
 0xd71   :  { %v3073_v9 = vpack.c.bf16 %v1143_v3, %v1141_v2 }
 0xd73   :  { %1148 = vrot.lane.b32.xlu1 %v3073_v9, %s2659_s18 }
 0xd7b   :  { %1213 = vrot.lane.b32.xlu1 %v3073_v9, %s2658_s17 }
 0xd83   :  { %1349 = vrot.lane.b32.xlu1 %v3073_v9, %s2661_s20 }
 0xd8b   :  { %1282 = vrot.lane.b32.xlu1 %v3073_v9, %s2660_s19 }
 0xde5   :  { %v1149_v4 = vpop.permute.xlu1 %1148 }
 0xde6   :  { %v1154_v7 = vsel %vm115_vm1, %v1149_v4, 0 }
 0xde7   :  { %1163 = vmatpush.bf16.xpose.msra.mxu2 %v1154_v7 }
 0xded   :  { %v1214_v6 = vpop.permute.xlu1 %1213 }
 0xdee   :  { %2240 = vmatmul.msk.bf16.vlgmr.msra.gmra.mxu2 %vm115_vm1, %v3073_v9 }
 0xdf5   :  { %v1350_v24 = vpop.permute.xlu1 %1349 }
 0xdf6   :  { %v1355_v30 = vsel %vm115_vm1, %v1350_v24, 0 }
 0xdfd   :  { %v1283_v38 = vpop.permute.xlu1 %1282 }
 0xdfe   :  { %v1288_v43 = vsel %vm115_vm1, %v1283_v38, 0 }
 0xe71   :  { %v1165_v8 = vpop.f32.mrf.mxu2 }
 0xe72   :  { %v1166_v13 = vadd.f32 %v3089_v12, %v1165_v8 }
 0xe74   :  { %v1170_v14 = vsel %vm136_vm2, %v1166_v13, -inf }
 0xe75   :  { %1171 = vmax.xlane.f32.xlu0 %v1170_v14 }
 0xe79   :  { %v1167_v15 = vpop.f32.mrf.mxu2 }
 0xe7a   :  { %v1168_v5 = vadd.f32 %v3096_v16, %v1167_v15 }
 0xe7c   :  { %v1173_v17 = vsel %vm136_vm2, %v1168_v5, -inf }
 0xe7d   :  { %1174 = vmax.xlane.f32.xlu2 %v1173_v17 }
 0xe89   :  { %1215 = vrot.lane.b32.xlu0 %v3073_v9, %s2662_s21 }
 0xe91   :  { %1347 = vrot.lane.b32.xlu0 %v3073_v9, %s2657_s16 }
 0xe99   :  { %1280 = vrot.lane.b32.xlu0 %v3073_v9, %s2663_s22 }
 0xee8   :  { %v1172_v19 = vpop.xlane.xlu0 %1171 }
 0xee9   :  { %v1176_v33 = vsub.f32 %v1166_v13, %v1172_v19 }
 0xeeb   :  { %v1178_v20 = vmul.f32 1.442695, %v1176_v33 }
 0xeed   :  { %2521 = vpow2.f32 %v1178_v20 }
 0xef0   :  { %v1175_v21 = vpop.xlane.xlu2 %1174 }
 0xef1   :  { %v1177_v34 = vsub.f32 %v1168_v5, %v1175_v21 }
 0xef3   :  { %v2522_v22 = vpop.eup %2521  ;;  %v1180_v45 = vmul.f32 1.442695, %v1177_v34 }
 0xef4   :  { %v1182_v23 = vsel %vm136_vm2, %v2522_v22, 0.0 }
 0xef5   :  { %2523 = vpow2.f32 %v1180_v45  ;;  %1183 = vadd.xlane.f32.xlu2 %v1182_v23 }
 0xefb   :  { %v2524_v25 = vpop.eup %2523  ;;  %v1216_v26 = vpop.permute.xlu0 %1215 }
 0xefc   :  { %v1221_v27 = vsel %vm115_vm1, %v1216_v26, 0  ;;  %v1185_v28 = vsel %vm136_vm2, %v2524_v25, 0.0 }
 0xefd   :  { %1186 = vadd.xlane.f32.xlu2 %v1185_v28  ;;  %1230 = vmatpush.bf16.xpose.msrb.mxu3 %v1221_v27 }
 0xf03   :  { %v1348_v31 = vpop.permute.xlu0 %1347 }
 0xf04   :  { %2242 = vmatmul.msk.bf16.vlgmr.msrb.gmra.mxu3 %vm115_vm1, %v1214_v6 }
 0xf05   :  { %1364 = vmatpush.bf16.xpose.msra.mxu3 %v1355_v30 }
 0xf0b   :  { %v1281_v55 = vpop.permute.xlu0 %1280 }
 0xf14   :  { %2246 = vmatmul.msk.bf16.vlgmr.msra.gmra.mxu3 %vm115_vm1, %v1348_v31 }
 0xf15   :  { %1193 = vrot.lane.b32.xlu2 %v3073_v9, %s2664_s29 }
 0xf68   :  { %v1184_v32 = vpop.xlane.xlu2 %1183 }
 0xf69   :  { %2525 = vrcp.f32 %v1184_v32 }
 0xf6f   :  { %v2526_v36 = vpop.eup %2525 }
 0xf70   :  { %v1187_v35 = vpop.xlane.xlu2 %1186  ;;  %v1190_v40 = vmul.f32 %v2526_v36, %v2522_v22 }
 0xf71   :  { %2527 = vrcp.f32 %v1187_v35 }
 0xf77   :  { %v2528_v39 = vpop.eup %2527 }
 0xf78   :  { %v1191_v41 = vmul.f32 %v2528_v39, %v2524_v25  ;;  %v1194_v42 = vpop.permute.xlu2 %1193 }
 0xf79   :  { %1206 = vmatpush.bf16.msra.mxu0 %v1194_v42 }
 0xf7a   :  { %v1192_v44 = vpack.c.bf16 %v1191_v41, %v1190_v40 }
 0xf7c   :  { %2241 = vmatmul.msk.bf16.vlgmr.msra.gmra.mxu0 %vm136_vm2, %v1192_v44 }
 0xf7d   :  { %1297 = vmatpush.bf16.xpose.msrb.mxu0 %v1288_v43 }
 0xf87   :  { %v1232_v46 = vpop.f32.mrf.mxu3 }
 0xf88   :  { %v1233_v47 = vadd.f32 %v3089_v12, %v1232_v46 }
 0xf8a   :  { %v1237_v48 = vsel %vm136_vm2, %v1233_v47, -inf }
 0xf8b   :  { %1238 = vmax.xlane.f32.xlu1 %v1237_v48 }
 0xf8c   :  { %2244 = vmatmul.msk.bf16.vlgmr.msrb.gmra.mxu0 %vm115_vm1, %v1281_v55 }
 0xf8f   :  { %v1234_v49 = vpop.f32.mrf.mxu3 }
 0xf90   :  { %v1235_v18 = vadd.f32 %v3096_v16, %v1234_v49 }
 0xf92   :  { %v1240_v10 = vsel %vm136_vm2, %v1235_v18, -inf }
 0xf93   :  { %1241 = vmax.xlane.f32.xlu0 %v1240_v10 }
 0xf97   :  { %v1366_v51 = vpop.f32.mrf.mxu3 }
 0xf98   :  { %v1367_v52 = vadd.f32 %v3089_v12, %v1366_v51 }
 0xf9a   :  { %v1371_v11 = vsel %vm136_vm2, %v1367_v52, -inf }
 0xf9b   :  { %1372 = vmax.xlane.f32.xlu2 %v1371_v11 }
 0xf9f   :  { %v1368_v53 = vpop.f32.mrf.mxu3 }
 0xfa0   :  { %v1369_v54 = vadd.f32 %v3096_v16, %v1368_v53 }
 0xfa2   :  { %v1374_v56 = vsel %vm136_vm2, %v1369_v54, -inf }
 0xfa3   :  { %1375 = vmax.xlane.f32.xlu1 %v1374_v56 }
 0xff9   :  { %v3125_v57 = vpop.f32.mrf.mxu0 }
 0xffe   :  { %v1239_v58 = vpop.xlane.xlu1 %1238 }
 0xfff   :  { %v1243_v59 = vsub.f32 %v1233_v47, %v1239_v58 }
0x1001   :  { %v1245_v61 = vmul.f32 1.442695, %v1243_v59  ;;  %v3127_v63 = vpop.f32.mrf.mxu0 }
0x1003   :  { %2529 = vpow2.f32 %v1245_v61 }
0x1006   :  { %v1242_v0 = vpop.xlane.xlu0 %1241 }
0x1007   :  { %v1244_v1 = vsub.f32 %v1235_v18, %v1242_v0 }
0x1009   :  { %v2530_v2 = vpop.eup %2529  ;;  %v1247_v3 = vmul.f32 1.442695, %v1244_v1  ;;  %v1299_v4 = vpop.f32.mrf.mxu0 }
0x100a   :  { %v1300_v7 = vadd.f32 %v3089_v12, %v1299_v4  ;;  %v1249_v8 = vsel %vm136_vm2, %v2530_v2, 0.0 }
0x100b   :  { %2531 = vpow2.f32 %v1247_v3  ;;  %1250 = vadd.xlane.f32.xlu1 %v1249_v8 }
0x100c   :  { %v1304_v13 = vsel %vm136_vm2, %v1300_v7, -inf }
0x100d   :  { %1305 = vmax.xlane.f32.xlu0 %v1304_v13 }
0x100e   :  { %v1373_v14 = vpop.xlane.xlu2 %1372 }
0x100f   :  { %v1377_v15 = vsub.f32 %v1367_v52, %v1373_v14 }
0x1011   :  { %v2532_v5 = vpop.eup %2531  ;;  %v1379_v17 = vmul.f32 1.442695, %v1377_v15  ;;  %v1301_v19 = vpop.f32.mrf.mxu0 }
0x1012   :  { %v1302_v33 = vadd.f32 %v3096_v16, %v1301_v19  ;;  %v1252_v6 = vsel %vm136_vm2, %v2532_v5, 0.0 }
0x1013   :  { %2533 = vpow2.f32 %v1379_v17 }
0x1014   :  { %v1307_v20 = vsel %vm136_vm2, %v1302_v33, -inf }
0x1015   :  { %1308 = vmax.xlane.f32.xlu2 %v1307_v20  ;;  %1253 = vadd.xlane.f32.xlu0 %v1252_v6 }
0x1016   :  { %v1376_v12 = vpop.xlane.xlu1 %1375 }
0x1017   :  { %v1378_v21 = vsub.f32 %v1369_v54, %v1376_v12 }
0x1019   :  { %v2534_v34 = vpop.eup %2533  ;;  %v1381_v22 = vmul.f32 1.442695, %v1378_v21 }
0x101a   :  { %v1383_v45 = vsel %vm136_vm2, %v2534_v34, 0.0 }
0x101b   :  { %2535 = vpow2.f32 %v1381_v22  ;;  %1384 = vadd.xlane.f32.xlu1 %v1383_v45 }
0x1021   :  { %v2536_v23 = vpop.eup %2535 }
0x1022   :  { %v1386_v24 = vsel %vm136_vm2, %v2536_v23, 0.0 }
0x1023   :  { %1387 = vadd.xlane.f32.xlu0 %v1386_v24 }
0x102d   :  { %1260 = vrot.lane.b32.xlu2 %v3073_v9, %s2665_s30 }
0x1035   :  { %1448 = vrot.lane.b32.xlu2 %v3043_v29, %s2668_s8 }
0x107e   :  { %v1251_v27 = vpop.xlane.xlu1 %1250 }
0x1080   :  { %v1306_v16 = vpop.xlane.xlu0 %1305 }
0x1081   :  { %v1310_v25 = vsub.f32 %v1300_v7, %v1306_v16 }
0x1083   :  { %v1312_v26 = vmul.f32 1.442695, %v1310_v25 }
0x1085   :  { %2537 = vpow2.f32 %v1312_v26 }
0x1086   :  { %2539 = vrcp.f32 %v1251_v27 }
0x1088   :  { %v1309_v28 = vpop.xlane.xlu2 %1308  ;;  %v1254_v30 = vpop.xlane.xlu0 %1253 }
0x1089   :  { %v1311_v31 = vsub.f32 %v1302_v33, %v1309_v28  ;;  %2541 = vrcp.f32 %v1254_v30 }
0x108b   :  { %v2538_v32 = vpop.eup %2537  ;;  %v1314_v35 = vmul.f32 1.442695, %v1311_v31 }
0x108c   :  { %v1316_v36 = vsel %vm136_vm2, %v2538_v32, 0.0  ;;  %v2540_v38 = vpop.eup %2539 }
0x108d   :  { %2543 = vpow2.f32 %v1314_v35  ;;  %1317 = vadd.xlane.f32.xlu1 %v1316_v36  ;;  %v1257_v40 = vmul.f32 %v2540_v38, %v2530_v2  ;;  %v2327_v36 = vld [vmem:[%s3385_s3 + $0x4c] sm:$0xf]  ;;  %v2253_v38 = vld [vmem:[%s3385_s3 + $0x54] sm:$0xf0] }
0x108e   :  { %v1385_v48 = vpop.xlane.xlu1 %1384 }
0x108f   :  { %v2542_v39 = vpop.eup %2541 }
0x1090   :  { %v1258_v29 = vmul.f32 %v2542_v39, %v2532_v5  ;;  %v1261_v41 = vpop.permute.xlu2 %1260  ;;  %v3177_v39 = vor.u32 %v2327_v36, %v2253_v38 }
0x1091   :  { %1273 = vmatpush.bf16.msrb.mxu2 %v1261_v41 }
0x1092   :  { %v1259_v42 = vpack.c.bf16 %v1258_v29, %v1257_v40 }
0x1093   :  { %v2544_v43 = vpop.eup %2543 }
0x1094   :  { %2243 = vmatmul.msk.bf16.vlgmr.msrb.gmra.mxu2 %vm136_vm2, %v1259_v42  ;;  %v1319_v44 = vsel %vm136_vm2, %v2544_v43, 0.0 }
0x1095   :  { %1320 = vadd.xlane.f32.xlu0 %v1319_v44 }
0x1096   :  { %v1388_v47 = vpop.xlane.xlu0 %1387 }
0x1097   :  { %2545 = vrcp.f32 %v1388_v47 }
0x1098   :  { %v1449_v46 = vpop.permute.xlu2 %1448  ;;  %2547 = vrcp.f32 %v1385_v48 }
0x1099   :  { %1461 = vmatpush.bf16.msra.mxu0 %v1449_v46 }
0x109d   :  { %v2546_v18 = vpop.eup %2545 }
0x109e   :  { %v2548_v10 = vpop.eup %2547  ;;  %v1392_v52 = vmul.f32 %v2546_v18, %v2536_v23 }
0x10a6   :  { %1394 = vrot.lane.b32.xlu1 %v3073_v9, %s2666_s7 }
0x10a9   :  { %1327 = vrot.lane.b32.xlu0 %v3073_v9, %s2667_s1  ;;  %v1391_v9 = vmul.f32 %v2548_v10, %v2534_v34 }
0x10ae   :  { %1446 = vrot.lane.b32.xlu1 %v3053_v37, %s2668_s8  ;;  %v1393_v37 = vpack.c.bf16 %v1392_v52, %v1391_v9 }
0x1100   :  { %v1318_v49 = vpop.xlane.xlu1 %1317 }
0x1108   :  { %v1321_v55 = vpop.xlane.xlu0 %1320 }
0x1109   :  { %2549 = vrcp.f32 %v1321_v55 }
0x110a   :  { %2551 = vrcp.f32 %v1318_v49 }
0x110f   :  { %v2550_v51 = vpop.eup %2549 }
0x1110   :  { %v2552_v53 = vpop.eup %2551  ;;  %v1325_v56 = vmul.f32 %v2550_v51, %v2544_v43 }
0x1111   :  { %v1324_v58 = vmul.f32 %v2552_v53, %v2538_v32 }
0x1113   :  { %v1326_v61 = vpack.c.bf16 %v1325_v56, %v1324_v58 }
0x1117   :  { %v1275_v11 = vpop.f32.mrf.mxu2 }
0x1118   :  { %v1395_v54 = vpop.permute.xlu1 %1394 }
0x1119   :  { %1407 = vmatpush.bf16.msra.mxu2 %v1395_v54 }
0x111b   :  { %v1328_v59 = vpop.permute.xlu0 %1327 }
0x111c   :  { %1340 = vmatpush.bf16.msrb.mxu1 %v1328_v59  ;;  %2247 = vmatmul.msk.bf16.vlgmr.msra.gmra.mxu2 %vm136_vm2, %v1393_v37 }
0x111f   :  { %v1277_v0 = vpop.f32.mrf.mxu2  ;;  %2245 = vmatmul.msk.bf16.vlgmr.msrb.gmra.mxu1 %vm136_vm2, %v1326_v61 }
0x1120   :  { %v2387_v1 = vpack.i.bf16 %v1277_v0, %v1275_v11  ;;  %v1447_v14 = vpop.permute.xlu1 %1446  ;;  %1543 = vmatpush.bf16.msra.mxu1 %v3177_v39 }
0x1121   :  { %1462 = vmatpush.bf16.msra.mxu0 %v1447_v14 }
0x1122   :  { %2388 = vrot.lane.b32.xlu2 %v2387_v1, %s2656_s27 }
0x117c   :  { %v2389_v15 = vpop.permute.xlu2 %2388 }
0x117d   :  { %v2391_v17 = vunpack.i.h.bf16 %v2389_v15  ;;  %v2390_v19 = vunpack.i.l.bf16 %v2389_v15 }
0x117f   :  { %v1439_v12 = vsel %vm115_vm1, %v3127_v63, %v2391_v17  ;;  %v1438_v21 = vsel %vm115_vm1, %v3125_v57, %v2390_v19  ;;  %v2431_v63 = vld [vmem:[%s3387_s5 + $0x11] ss:$0 sm:$0xff]  ;;  %v2433_v19 = vld [vmem:[%s3387_s5 + $0x16] ss:$0 sm:$0xff] }
0x119c   :  { %v1342_v2 = vpop.f32.mrf.mxu1 }
0x119f   :  { %v1409_v3 = vpop.f32.mrf.mxu2 }
0x11a4   :  { %v1344_v4 = vpop.f32.mrf.mxu1 }
0x11a5   :  { %v2392_v7 = vpack.i.bf16 %v1344_v4, %v1342_v2 }
0x11a7   :  { %2393 = vrot.lane.b32.xlu2 %v2392_v7, %s2669_s9  ;;  %v1411_v8 = vpop.f32.mrf.mxu2 }
0x11a8   :  { %v2397_v13 = vpack.i.bf16 %v1411_v8, %v1409_v3 }
0x11aa   :  { %2398 = vrot.lane.b32.xlu0 %v2397_v13, %s2670_s10  ;;  %v2432_v13 = vld [vmem:[%s3387_s5 + $0x15] ss:$0 sm:$0xff] }
0x1201   :  { %v2394_v5 = vpop.permute.xlu2 %2393 }
0x1202   :  { %v2396_v33 = vunpack.i.h.bf16 %v2394_v5  ;;  %v2395_v20 = vunpack.i.l.bf16 %v2394_v5  ;;  %v2599_v5 = vld [vmem:[%s3384_s2] sm:$0xff] }
0x1204   :  { %v1441_v45 = vsel %vm136_vm2, %v1439_v12, %v2396_v33  ;;  %v1440_v23 = vsel %vm136_vm2, %v1438_v21, %v2395_v20 }
0x121c   :  { %v2399_v6 = vpop.permute.xlu0 %2398 }
0x121d   :  { %v2401_v34 = vunpack.i.h.bf16 %v2399_v6  ;;  %v2400_v22 = vunpack.i.l.bf16 %v2399_v6 }
0x121f   :  { %v1443_v24 = vsel %vm409_vm3, %v1441_v45, %v2401_v34  ;;  %v1442_v16 = vsel %vm409_vm3, %v1440_v23, %v2400_v22  ;;  %v2434_v45 = vld [vmem:[%s3387_s5 + $0x13] ss:$0 sm:$0xff] }
0x1220   :  { %v1444_v25 = vpack.c.bf16 %v1443_v24, %v1442_v16 }
0x1222   :  { %2248 = vmatmul.msk.bf16.vlgmr.msra.gmra.mxu0 %vm92_vm0, %v1444_v25 }
0x129f   :  { %v1464_v26 = vpop.f32.mrf.mxu0 }
0x12a0   :  { %v1465_v27 = vadd.f32 %v2431_v63, %v1464_v26 }
0x12a2   :  { %v1469_v57 = vadd.f32 %v1465_v27, %v3063_v60  ;;  %v2324_v60 = vld [vmem:[%s3385_s3 + $0x34] sm:$0xf] }
0x12a4   :  { %v1473_v28 = vsel %vm92_vm0, %v1469_v57, 0.0 }
0x12a5   :  { %1474 = vadd.xlane.f32.xlu2 %v1473_v28 }
0x12a7   :  { %v1466_v30 = vpop.f32.mrf.mxu0 }
0x12a8   :  { %v1467_v31 = vadd.f32 %v2431_v63, %v1466_v30  ;;  %v2435_v63 = vld [vmem:[%s3387_s5 + $0x12] ss:$0 sm:$0xff] }
0x12aa   :  { %v1470_v32 = vadd.f32 %v1467_v31, %v3065_v62  ;;  %v2249_v62 = vld [vmem:[%s3385_s3 + $0x3c] sm:$0xf0] }
0x12ab   :  { %v3188_v40 = vor.u32 %v2324_v60, %v2249_v62 }
0x12ac   :  { %v1476_v35 = vsel %vm92_vm0, %v1470_v32, 0.0 }
0x12ad   :  { %1477 = vadd.xlane.f32.xlu0 %v1476_v35  ;;  %1544 = vmatpush.bf16.msra.mxu1 %v3188_v40 }
0x12c1   :  { %1555 = vrot.lane.b32.xlu0 %v3177_v39, %s2659_s18 }
0x1318   :  { %v1475_v29 = vpop.xlane.xlu2 %1474 }
0x1319   :  { %v1479_v41 = vmul.f32 %v1475_v29, %v2840_v50 }
0x131b   :  { %v1481_v42 = vsub.f32 %v1469_v57, %v1479_v41 }
0x131d   :  { %v1483_v43 = vmul.f32 %v1481_v42, %v1481_v42 }
0x131f   :  { %v1485_v44 = vsel %vm92_vm0, %v1483_v43, 0.0 }
0x1320   :  { %v1478_v46 = vpop.xlane.xlu0 %1477  ;;  %1486 = vadd.xlane.f32.xlu1 %v1485_v44  ;;  %v2600_v44 = vld [vmem:[%s3387_s5 + $0x30] sm:$0xff] }
0x1321   :  { %v1480_v47 = vmul.f32 %v1478_v46, %v2840_v50 }
0x1323   :  { %v1482_v48 = vsub.f32 %v1470_v32, %v1480_v47 }
0x1325   :  { %v1484_v55 = vmul.f32 %v1482_v48, %v1482_v48 }
0x1327   :  { %v1488_v49 = vsel %vm92_vm0, %v1484_v55, 0.0  ;;  %v2601_v55 = vld [vmem:[%s3387_s5 + $0x38] sm:$0xff] }
0x1328   :  { %1489 = vadd.xlane.f32.xlu2 %v1488_v49 }
0x1333   :  { %v1556_v18 = vpop.permute.xlu0 %1555 }
0x1334   :  { %1565 = vmatpush.bf16.msrb.mxu3 %v1556_v18 }
0x1339   :  { %1553 = vrot.lane.b32.xlu1 %v3188_v40, %s2659_s18 }
0x1393   :  { %v1487_v10 = vpop.xlane.xlu1 %1486 }
0x1394   :  { %v1491_v51 = vmul.f32 %v1487_v10, %v2840_v50 }
0x1396   :  { %v1493_v52 = vadd.f32 1e-05, %v1491_v51 }
0x1398   :  { %2553 = vrsqrt.f32 %v1493_v52  ;;  %vm1501_vm12 = vweird.f32 %v1493_v52 }
0x139b   :  { %v1490_v11 = vpop.xlane.xlu2 %1489 }
0x139c   :  { %v1492_v53 = vmul.f32 %v1490_v11, %v2840_v50 }
0x139e   :  { %v2554_v9 = vpop.eup %2553  ;;  %v1494_v54 = vadd.f32 1e-05, %v1492_v53 }
0x139f   :  { %v1496_v56 = vmul.f32 %v2554_v9, %v1493_v52  ;;  %vm1502_vm11 = vweird.f32 %v2554_v9 }
0x13a0   :  { %2555 = vrsqrt.f32 %v1494_v54  ;;  %vm1503_vm13 = vmor %vm1501_vm12, %vm1502_vm11  ;;  %vm1511_vm15 = vweird.f32 %v1494_v54 }
0x13a1   :  { %v1497_v37 = vmul.f32 %v2554_v9, %v1496_v56 }
0x13a3   :  { %v1498_v58 = vmul.f32 0.5, %v1497_v37 }
0x13a5   :  { %v1499_v59 = vsub.f32 1.5, %v1498_v58 }
0x13a6   :  { %v2556_v61 = vpop.eup %2555 }
0x13a7   :  { %v1500_v0 = vmul.f32 %v2554_v9, %v1499_v59  ;;  %v1506_v1 = vmul.f32 %v2556_v61, %v1494_v54  ;;  %vm1512_vm14 = vweird.f32 %v2556_v61 }
0x13a8   :  { %vm1513_vm4 = vmor %vm1511_vm15, %vm1512_vm14 }
0x13a9   :  { %v1507_v2 = vmul.f32 %v2556_v61, %v1506_v1  ;;  %v1504_v3 = vsel %vm1503_vm13, %v2554_v9, %v1500_v0 }
0x13aa   :  { %v1515_v14 = vmul.f32 %v1504_v3, %v1481_v42 }
0x13ab   :  { %v1508_v4 = vmul.f32 0.5, %v1507_v2  ;;  %v1554_v7 = vpop.permute.xlu1 %1553 }
0x13ac   :  { %1566 = vmatpush.bf16.msrb.mxu3 %v1554_v7  ;;  %v1518_v33 = vmul.f32 %v2432_v13, %v1515_v14 }
0x13ad   :  { %v1509_v8 = vsub.f32 1.5, %v1508_v4 }
0x13ae   :  { %v3209_v12 = vadd.f32 %v2433_v19, %v1518_v33 }
0x13af   :  { %v1510_v15 = vmul.f32 %v2556_v61, %v1509_v8  ;;  %2258 = vmatmul.msk.bf16.vlgmr.msrb.gmra.mxu3 %vm92_vm0, %v2599_v5 }
0x13b1   :  { %v1514_v17 = vsel %vm1513_vm4, %v2556_v61, %v1510_v15 }
0x13b2   :  { %v1516_v20 = vmul.f32 %v1514_v17, %v1482_v48 }
0x13b4   :  { %v1519_v6 = vmul.f32 %v2432_v13, %v1516_v20 }
0x13b6   :  { %v3211_v21 = vadd.f32 %v2433_v19, %v1519_v6 }
0x13b8   :  { %v1523_v34 = vpack.c.bf16 %v3211_v21, %v3209_v12 }
0x13ba   :  { %2257 = vmatmul.msk.bf16.vlgmr.msra.gmra.mxu1 %vm92_vm0, %v1523_v34 }
0x1432   :  { %v1568_v22 = vpop.f32.mrf.mxu3 }
0x1433   :  { %v1569_v24 = vadd.f32 %v2434_v45, %v1568_v22 }
0x1437   :  { %v1546_v23 = vpop.f32.mrf.mxu1 }
0x1438   :  { %v1547_v28 = vadd.f32 %v2435_v63, %v1546_v23 }
0x143a   :  { %v1570_v16 = vpop.f32.mrf.mxu3 }
0x143b   :  { %v1571_v25 = vadd.f32 %v2434_v45, %v1570_v16 }
0x143d   :  { %v3222_v26 = vpack.c.bf16 %v1571_v25, %v1569_v24 }
0x143f   :  { %1643 = vrot.lane.b32.xlu2 %v3222_v26, %s2658_s17  ;;  %v1548_v27 = vpop.f32.mrf.mxu1  ;;  %v1580_v57 = vsel %vm115_vm1, %v3222_v26, 0  ;;  %1777 = vrot.lane.b32.xlu1 %v3222_v26, %s2657_s16 }
0x1440   :  { %v1549_v30 = vadd.f32 %v2435_v63, %v1548_v27  ;;  %1589 = vmatpush.bf16.xpose.msrb.mxu2 %v1580_v57 }
0x1442   :  { %v1574_v31 = vpack.c.bf16 %v1549_v30, %v1547_v28 }
0x1444   :  { %1641 = vrot.lane.b32.xlu0 %v1574_v31, %s2658_s17 }
0x1447   :  { %1708 = vrot.lane.b32.xlu2 %v1574_v31, %s2663_s22  ;;  %2259 = vmatmul.msk.bf16.vlgmr.msrb.gmra.mxu2 %vm115_vm1, %v1574_v31 }
0x144c   :  { %1710 = vrot.lane.b32.xlu0 %v3222_v26, %s2663_s22 }
0x1454   :  { %1775 = vrot.lane.b32.xlu0 %v1574_v31, %s2657_s16 }
0x1499   :  { %v1644_v32 = vpop.permute.xlu2 %1643 }
0x149a   :  { %v1649_v35 = vsel %vm115_vm1, %v1644_v32, 0 }
0x149b   :  { %1658 = vmatpush.bf16.xpose.msrb.mxu1 %v1649_v35 }
0x14a1   :  { %v1709_v41 = vpop.permute.xlu2 %1708 }
0x14b1   :  { %v1778_v36 = vpop.permute.xlu1 %1777 }
0x14b2   :  { %v1783_v38 = vsel %vm115_vm1, %v1778_v36, 0 }
0x14b3   :  { %1792 = vmatpush.bf16.xpose.msra.mxu1 %v1783_v38 }
0x14b6   :  { %v1642_v60 = vpop.permute.xlu0 %1641 }
0x14b7   :  { %2261 = vmatmul.msk.bf16.vlgmr.msrb.gmra.mxu1 %vm115_vm1, %v1642_v60 }
0x14be   :  { %v1711_v62 = vpop.permute.xlu0 %1710 }
0x14bf   :  { %v1716_v29 = vsel %vm115_vm1, %v1711_v62, 0 }
0x14c0   :  { %1725 = vmatpush.bf16.xpose.msra.mxu2 %v1716_v29 }
0x14c6   :  { %v1776_v42 = vpop.permute.xlu0 %1775 }
0x14c7   :  { %2263 = vmatmul.msk.bf16.vlgmr.msra.gmra.mxu2 %vm115_vm1, %v1709_v41  ;;  %2265 = vmatmul.msk.bf16.vlgmr.msra.gmra.mxu1 %vm115_vm1, %v1776_v42 }
0x14ca   :  { %v1591_v43 = vpop.f32.mrf.mxu2 }
0x14cb   :  { %v1592_v46 = vadd.f32 %v2600_v44, %v1591_v43 }
0x14cd   :  { %v1596_v47 = vsel %vm136_vm2, %v1592_v46, -inf }
0x14ce   :  { %1597 = vmax.xlane.f32.xlu0 %v1596_v47 }
0x14d2   :  { %v1593_v48 = vpop.f32.mrf.mxu2 }
0x14d3   :  { %v1594_v49 = vadd.f32 %v2601_v55, %v1593_v48 }
0x14d5   :  { %v1599_v18 = vsel %vm136_vm2, %v1594_v49, -inf }
0x14d6   :  { %1600 = vmax.xlane.f32.xlu1 %v1599_v18 }
0x1534   :  { %v1660_v10 = vpop.f32.mrf.mxu1 }
0x1535   :  { %v1661_v51 = vadd.f32 %v2600_v44, %v1660_v10 }
0x1537   :  { %v1665_v52 = vsel %vm136_vm2, %v1661_v51, -inf }
0x1538   :  { %1666 = vmax.xlane.f32.xlu1 %v1665_v52 }
0x153c   :  { %v1662_v11 = vpop.f32.mrf.mxu1 }
0x153d   :  { %v1663_v53 = vadd.f32 %v2601_v55, %v1662_v11 }
0x153f   :  { %v1668_v9 = vsel %vm136_vm2, %v1663_v53, -inf }
0x1540   :  { %1669 = vmax.xlane.f32.xlu2 %v1668_v9 }
0x1541   :  { %v1598_v4 = vpop.xlane.xlu0 %1597 }
0x1542   :  { %v1602_v14 = vsub.f32 %v1592_v46, %v1598_v4 }
0x1544   :  { %v1794_v54 = vpop.f32.mrf.mxu1  ;;  %v1604_v17 = vmul.f32 1.442695, %v1602_v14 }
0x1545   :  { %v1795_v19 = vadd.f32 %v2600_v44, %v1794_v54 }
0x1547   :  { %v1799_v33 = vsel %vm136_vm2, %v1795_v19, -inf }
0x1549   :  { %v1601_v56 = vpop.xlane.xlu1 %1600 }
0x154a   :  { %v1603_v37 = vsub.f32 %v1594_v49, %v1601_v56  ;;  %v1727_v58 = vpop.f32.mrf.mxu2 }
0x154b   :  { %v1728_v59 = vadd.f32 %v2600_v44, %v1727_v58 }
0x154c   :  { %v1606_v61 = vmul.f32 1.442695, %v1603_v37  ;;  %v1796_v0 = vpop.f32.mrf.mxu1 }
0x154d   :  { %v1797_v1 = vadd.f32 %v2601_v55, %v1796_v0  ;;  %v1732_v2 = vsel %vm136_vm2, %v1728_v59, -inf }
0x154e   :  { %2557 = vpow2.f32 %v1606_v61  ;;  %1733 = vmax.xlane.f32.xlu1 %v1732_v2 }
0x154f   :  { %v1802_v3 = vsel %vm136_vm2, %v1797_v1, -inf  ;;  %2559 = vpow2.f32 %v1604_v17 }
0x1550   :  { %1803 = vmax.xlane.f32.xlu0 %v1802_v3 }
0x1552   :  { %v1729_v7 = vpop.f32.mrf.mxu2 }
0x1553   :  { %v1730_v8 = vadd.f32 %v2601_v55, %v1729_v7 }
0x1554   :  { %v3254_v13 = vpop.eup %2557 }
0x1555   :  { %v1735_v15 = vsel %vm136_vm2, %v1730_v8, -inf  ;;  %v1611_v5 = vsel %vm136_vm2, %v3254_v13, 0.0  ;;  %v2560_v20 = vpop.eup %2559 }
0x1556   :  { %1736 = vmax.xlane.f32.xlu2 %v1735_v15  ;;  %v1608_v6 = vsel %vm136_vm2, %v2560_v20, 0.0 }
0x1558   :  { %1612 = vadd.xlane.f32.xlu0 %v1611_v5 }
0x155e   :  { %1800 = vmax.xlane.f32.xlu2 %v1799_v33 }
0x1566   :  { %1609 = vadd.xlane.f32.xlu2 %v1608_v6 }
0x1567   :  { %1688 = vrot.lane.b32.xlu1 %v3222_v26, %s2662_s21 }
0x157e   :  { %1620 = vrot.lane.b32.xlu2 %v3222_v26, %s2659_s18 }
0x15ab   :  { %v1667_v34 = vpop.xlane.xlu1 %1666 }
0x15ac   :  { %v1671_v22 = vsub.f32 %v1661_v51, %v1667_v34 }
0x15ae   :  { %v1673_v45 = vmul.f32 1.442695, %v1671_v22 }
0x15b0   :  { %2561 = vpow2.f32 %v1673_v45 }
0x15b3   :  { %v1670_v23 = vpop.xlane.xlu2 %1669 }
0x15b4   :  { %v1672_v24 = vsub.f32 %v1663_v53, %v1670_v23 }
0x15b6   :  { %v2562_v16 = vpop.eup %2561  ;;  %v1675_v25 = vmul.f32 1.442695, %v1672_v24 }
0x15b7   :  { %v1677_v63 = vsel %vm136_vm2, %v2562_v16, 0.0 }
0x15b8   :  { %2563 = vpow2.f32 %v1675_v25  ;;  %1678 = vadd.xlane.f32.xlu0 %v1677_v63 }
0x15be   :  { %v2564_v27 = vpop.eup %2563 }
0x15bf   :  { %v1680_v57 = vsel %vm136_vm2, %v2564_v27, 0.0 }
0x15c0   :  { %1681 = vadd.xlane.f32.xlu1 %v1680_v57 }
0x15c1   :  { %v1734_v28 = vpop.xlane.xlu1 %1733 }
0x15c2   :  { %v1738_v30 = vsub.f32 %v1728_v59, %v1734_v28 }
0x15c3   :  { %v1804_v36 = vpop.xlane.xlu0 %1803 }
0x15c4   :  { %v1740_v31 = vmul.f32 1.442695, %v1738_v30  ;;  %v1806_v43 = vsub.f32 %v1797_v1, %v1804_v36 }
0x15c6   :  { %2565 = vpow2.f32 %v1740_v31  ;;  %v1809_v48 = vmul.f32 1.442695, %v1806_v43 }
0x15c9   :  { %v1737_v32 = vpop.xlane.xlu2 %1736 }
0x15ca   :  { %v1739_v35 = vsub.f32 %v1730_v8, %v1737_v32 }
0x15cb   :  { %v1613_v46 = vpop.xlane.xlu0 %1612 }
0x15cc   :  { %v3267_v38 = vpop.eup %2565  ;;  %v1742_v60 = vmul.f32 1.442695, %v1739_v35 }
0x15cd   :  { %v1744_v62 = vsel %vm136_vm2, %v3267_v38, 0.0 }
0x15ce   :  { %2567 = vpow2.f32 %v1742_v60  ;;  %1745 = vadd.xlane.f32.xlu0 %v1744_v62 }
0x15d1   :  { %v1801_v29 = vpop.xlane.xlu2 %1800 }
0x15d2   :  { %v1805_v41 = vsub.f32 %v1795_v19, %v1801_v29 }
0x15d4   :  { %v2568_v42 = vpop.eup %2567  ;;  %v1807_v44 = vmul.f32 1.442695, %v1805_v41 }
0x15d5   :  { %v1747_v47 = vsel %vm136_vm2, %v2568_v42, 0.0 }
0x15d6   :  { %2569 = vpow2.f32 %v1807_v44  ;;  %1748 = vadd.xlane.f32.xlu2 %v1747_v47 }
0x15d7   :  { %2571 = vrcp.f32 %v1613_v46 }
0x15d9   :  { %v1689_v55 = vpop.permute.xlu1 %1688  ;;  %1822 = vrot.lane.b32.xlu1 %v3222_v26, %s2661_s20  ;;  %v1610_v49 = vpop.xlane.xlu2 %1609 }
0x15da   :  { %2573 = vrcp.f32 %v1610_v49  ;;  %1701 = vmatpush.bf16.msra.mxu3 %v1689_v55 }
0x15db   :  { %2575 = vpow2.f32 %v1809_v48 }
0x15dc   :  { %v2570_v18 = vpop.eup %2569 }
0x15dd   :  { %v1811_v10 = vsel %vm136_vm2, %v2570_v18, 0.0  ;;  %v2572_v51 = vpop.eup %2571 }
0x15de   :  { %1812 = vadd.xlane.f32.xlu0 %v1811_v10  ;;  %v1617_v11 = vmul.f32 %v2572_v51, %v3254_v13  ;;  %v2436_v10 = vld [vmem:[%s3387_s5 + $0x14] ss:$0 sm:$0xff] }
0x15e0   :  { %v2574_v52 = vpop.eup %2573 }
0x15e1   :  { %v1616_v53 = vmul.f32 %v2574_v52, %v2560_v20  ;;  %v1621_v9 = vpop.permute.xlu2 %1620  ;;  %1876 = vrot.lane.b32.xlu1 %v3177_v39, %s2668_s8  ;;  %v2576_v54 = vpop.eup %2575 }
0x15e2   :  { %1633 = vmatpush.bf16.msrb.mxu0 %v1621_v9  ;;  %v1814_v37 = vsel %vm136_vm2, %v2576_v54, 0.0 }
0x15e3   :  { %v1618_v56 = vpack.c.bf16 %v1617_v11, %v1616_v53 }
0x15e5   :  { %2260 = vmatmul.msk.bf16.vlgmr.msrb.gmra.mxu0 %vm136_vm2, %v1618_v56 }
0x15e6   :  { %1815 = vadd.xlane.f32.xlu0 %v1814_v37 }
0x15fa   :  { %1755 = vrot.lane.b32.xlu0 %v3222_v26, %s2660_s19 }
0x162b   :  { %v1679_v58 = vpop.xlane.xlu0 %1678 }
0x162c   :  { %2577 = vrcp.f32 %v1679_v58 }
0x1632   :  { %v2578_v61 = vpop.eup %2577 }
0x1633   :  { %v1682_v59 = vpop.xlane.xlu1 %1681  ;;  %v1685_v1 = vmul.f32 %v2578_v61, %v2562_v16 }
0x1634   :  { %2579 = vrcp.f32 %v1682_v59 }
0x163a   :  { %v2580_v0 = vpop.eup %2579 }
0x163b   :  { %v1686_v2 = vmul.f32 %v2580_v0, %v2564_v27 }
0x163d   :  { %v1687_v39 = vpack.c.bf16 %v1686_v2, %v1685_v1 }
0x163f   :  { %2262 = vmatmul.msk.bf16.vlgmr.msra.gmra.mxu3 %vm136_vm2, %v1687_v39 }
0x1641   :  { %v1746_v3 = vpop.xlane.xlu0 %1745 }
0x1649   :  { %v1749_v26 = vpop.xlane.xlu2 %1748 }
0x164b   :  { %v1823_v4 = vpop.permute.xlu1 %1822 }
0x164c   :  { %1835 = vmatpush.bf16.msrb.mxu3 %v1823_v4 }
0x1651   :  { %v1813_v7 = vpop.xlane.xlu0 %1812 }
0x1652   :  { %2581 = vrcp.f32 %v1813_v7  ;;  %v2329_v7 = vld [vmem:[%s3385_s3 + $0x58] sm:$0xf0] }
0x1653   :  { %v1877_v25 = vpop.permute.xlu1 %1876 }
0x1654   :  { %1889 = vmatpush.bf16.msrb.mxu2 %v1877_v25  ;;  %v2334_v25 = vld [vmem:[%s3386_s4 + $0x60] sm:$0xff] }
0x1658   :  { %v2582_v13 = vpop.eup %2581 }
0x1659   :  { %v1816_v8 = vpop.xlane.xlu0 %1815  ;;  %v1819_v15 = vmul.f32 %v2582_v13, %v2570_v18 }
0x165a   :  { %2583 = vrcp.f32 %v1816_v8 }
0x165b   :  { %2585 = vrcp.f32 %v1749_v26 }
0x165c   :  { %2587 = vrcp.f32 %v1746_v3 }
0x1660   :  { %v2584_v14 = vpop.eup %2583 }
0x1661   :  { %v1820_v5 = vmul.f32 %v2584_v14, %v2576_v54  ;;  %v2586_v19 = vpop.eup %2585  ;;  %v2270_v14 = vld [vmem:[%s3385_s3 + $0x38] sm:$0xf] }
0x1662   :  { %v2588_v33 = vpop.eup %2587  ;;  %v1753_v20 = vmul.f32 %v2586_v19, %v2568_v42  ;;  %v1635_v16 = vpop.f32.mrf.mxu0  ;;  %v2337_v19 = vld [vmem:[%s3386_s4 + $0x78] sm:$0xff] }
0x1663   :  { %v1821_v17 = vpack.c.bf16 %v1820_v5, %v1819_v15  ;;  %v1752_v6 = vmul.f32 %v2588_v33, %v3267_v38  ;;  %v2326_v15 = vld [vmem:[%s3385_s3 + $0x40] sm:$0xf0]  ;;  %2036 = vmatpush.bf16.msrb.mxu1 %v2337_v19 }
0x1665   :  { %2266 = vmatmul.msk.bf16.vlgmr.msrb.gmra.mxu3 %vm136_vm2, %v1821_v17  ;;  %v1754_v22 = vpack.c.bf16 %v1753_v20, %v1752_v6  ;;  %v2271_v17 = vor.u32 %v2326_v15, %v2270_v14  ;;  %v2336_v6 = vld [vmem:[%s3386_s4 + $0x70] sm:$0xff] }
0x1667   :  { %2037 = vmatpush.bf16.msrb.mxu1 %v2336_v6 }
0x166a   :  { %v1637_v63 = vpop.f32.mrf.mxu0 }
0x166c   :  { %v1756_v34 = vpop.permute.xlu0 %1755 }
0x166d   :  { %1768 = vmatpush.bf16.msra.mxu0 %v1756_v34 }
0x1670   :  { %2264 = vmatmul.msk.bf16.vlgmr.msra.gmra.mxu0 %vm136_vm2, %v1754_v22 }
0x16c2   :  { %v1703_v45 = vpop.f32.mrf.mxu3 }
0x16ca   :  { %v1705_v23 = vpop.f32.mrf.mxu3 }
0x16cb   :  { %v2402_v24 = vpack.i.bf16 %v1705_v23, %v1703_v45  ;;  %v2335_v23 = vld [vmem:[%s3386_s4 + $0x68] sm:$0xff] }
0x16cc   :  { %2038 = vmatpush.bf16.msrb.mxu1 %v2335_v23 }
0x16cd   :  { %2403 = vrot.lane.b32.xlu1 %v2402_v24, %s2656_s27 }
0x16d0   :  { %2039 = vmatpush.bf16.msrb.mxu1 %v2334_v25 }
0x16e8   :  { %v1837_v27 = vpop.f32.mrf.mxu3 }
0x16ed   :  { %v1770_v57 = vpop.f32.mrf.mxu0 }
0x16f0   :  { %v1839_v28 = vpop.f32.mrf.mxu3 }
0x16f1   :  { %v2412_v30 = vpack.i.bf16 %v1839_v28, %v1837_v27 }
0x16f3   :  { %2413 = vrot.lane.b32.xlu0 %v2412_v30, %s2670_s10 }
0x16f5   :  { %v1772_v31 = vpop.f32.mrf.mxu0 }
0x16f6   :  { %v2407_v32 = vpack.i.bf16 %v1772_v31, %v1770_v57 }
0x16f8   :  { %2408 = vrot.lane.b32.xlu1 %v2407_v32, %s2669_s9 }
0x1700   :  { %1874 = vrot.lane.b32.xlu1 %v3188_v40, %s2668_s8 }
0x173f   :  { %v2404_v35 = vpop.permute.xlu1 %2403 }
0x1740   :  { %v2406_v36 = vunpack.i.h.bf16 %v2404_v35  ;;  %v2405_v38 = vunpack.i.l.bf16 %v2404_v35 }
0x1742   :  { %v1866_v42 = vsel %vm115_vm1, %v1635_v16, %v2405_v38  ;;  %v1867_v43 = vsel %vm115_vm1, %v1637_v63, %v2406_v36  ;;  %v2437_v36 = vld [vmem:[%s3387_s5 + $0x17] ss:$0 sm:$0xff] }
0x1765   :  { %v2414_v41 = vpop.permute.xlu0 %2413 }
0x1766   :  { %v2416_v47 = vunpack.i.h.bf16 %v2414_v41  ;;  %v2415_v48 = vunpack.i.l.bf16 %v2414_v41 }
0x176a   :  { %v2409_v60 = vpop.permute.xlu1 %2408 }
0x176b   :  { %v2411_v62 = vunpack.i.h.bf16 %v2409_v60  ;;  %v2410_v29 = vunpack.i.l.bf16 %v2409_v60 }
0x176d   :  { %v1869_v44 = vsel %vm136_vm2, %v1867_v43, %v2411_v62  ;;  %v1868_v46 = vsel %vm136_vm2, %v1866_v42, %v2410_v29  ;;  %v2438_v29 = vld [vmem:[%s3387_s5 + $0x18] ss:$0 sm:$0xff] }
0x176e   :  { %v1871_v55 = vsel %vm409_vm3, %v1869_v44, %v2416_v47  ;;  %v1870_v40 = vsel %vm409_vm3, %v1868_v46, %v2415_v48  ;;  %v2333_v48 = vld [vmem:[%s3386_s4 + $0x58] sm:$0xff] }
0x176f   :  { %v1872_v18 = vpack.c.bf16 %v1871_v55, %v1870_v40  ;;  %2040 = vmatpush.bf16.msrb.mxu1 %v2333_v48  ;;  %v2332_v55 = vld [vmem:[%s3386_s4 + $0x50] sm:$0xff]  ;;  %v2331_v40 = vld [vmem:[%s3386_s4 + $0x48] sm:$0xff] }
0x1772   :  { %v1875_v49 = vpop.permute.xlu1 %1874 }
0x1773   :  { %1890 = vmatpush.bf16.msrb.mxu2 %v1875_v49  ;;  %2041 = vmatpush.bf16.msrb.mxu1 %v2332_v55  ;;  %v2330_v49 = vld [vmem:[%s3386_s4 + $0x40] sm:$0xff] }
0x1776   :  { %2267 = vmatmul.msk.bf16.vlgmr.msrb.gmra.mxu2 %vm92_vm0, %v1872_v18 }
0x1777   :  { %2042 = vmatpush.bf16.msrb.mxu1 %v2331_v40 }
0x177b   :  { %2043 = vmatpush.bf16.msrb.mxu1 %v2330_v49 }
0x17f9   :  { %v1892_v51 = vpop.f32.mrf.mxu2 }
0x17fa   :  { %v1893_v52 = vadd.f32 %v2436_v10, %v1892_v51 }
0x17fc   :  { %v1897_v11 = vadd.f32 %v1893_v52, %v3209_v12 }
0x17fe   :  { %v1901_v53 = vsel %vm92_vm0, %v1897_v11, 0.0 }
0x17ff   :  { %1902 = vadd.xlane.f32.xlu0 %v1901_v53 }
0x1801   :  { %v1894_v9 = vpop.f32.mrf.mxu2 }
0x1802   :  { %v1895_v54 = vadd.f32 %v2436_v10, %v1894_v9  ;;  %v2439_v10 = vld [vmem:[%s3387_s5 + $0x19] ss:$0 sm:$0xff] }
0x1804   :  { %v1898_v56 = vadd.f32 %v1895_v54, %v3211_v21  ;;  %v2274_v21 = vld [vmem:[%s3385_s3 + $0x50] sm:$0xf] }
0x1805   :  { %v2275_v8 = vor.u32 %v2329_v7, %v2274_v21 }
0x1806   :  { %v1904_v37 = vsel %vm92_vm0, %v1898_v56, 0.0 }
0x1807   :  { %1905 = vadd.xlane.f32.xlu1 %v1904_v37  ;;  %1975 = vmatpush.bf16.msrb.mxu0 %v2275_v8 }
0x180b   :  { %1976 = vmatpush.bf16.msrb.mxu0 %v2271_v17 }
0x1872   :  { %v1903_v58 = vpop.xlane.xlu0 %1902 }
0x1873   :  { %v1907_v59 = vmul.f32 %v1903_v58, %v2840_v50 }
0x1875   :  { %v1909_v61 = vsub.f32 %v1897_v11, %v1907_v59 }
0x1877   :  { %v1911_v0 = vmul.f32 %v1909_v61, %v1909_v61 }
0x1879   :  { %v1913_v1 = vsel %vm92_vm0, %v1911_v0, 0.0 }
0x187a   :  { %v1906_v2 = vpop.xlane.xlu1 %1905  ;;  %1914 = vadd.xlane.f32.xlu2 %v1913_v1 }
0x187b   :  { %v1908_v12 = vmul.f32 %v1906_v2, %v2840_v50 }
0x187d   :  { %v1910_v39 = vsub.f32 %v1898_v56, %v1908_v12  ;;  %v2440_v56 = vld [vmem:[%s3387_s5 + $0x1a] ss:$0 sm:$0xff] }
0x187f   :  { %v1912_v3 = vmul.f32 %v1910_v39, %v1910_v39 }
0x1881   :  { %v1916_v4 = vsel %vm92_vm0, %v1912_v3, 0.0 }
0x1882   :  { %1917 = vadd.xlane.f32.xlu2 %v1916_v4 }
0x18ed   :  { %v1915_v13 = vpop.xlane.xlu2 %1914 }
0x18ee   :  { %v1919_v26 = vmul.f32 %v1915_v13, %v2840_v50 }
0x18f0   :  { %v1921_v5 = vadd.f32 1e-05, %v1919_v26 }
0x18f2   :  { %2589 = vrsqrt.f32 %v1921_v5  ;;  %vm1929_vm2 = vweird.f32 %v1921_v5 }
0x18f5   :  { %v1918_v33 = vpop.xlane.xlu2 %1917 }
0x18f6   :  { %v1920_v20 = vmul.f32 %v1918_v33, %v2840_v50 }
0x18f8   :  { %v2590_v34 = vpop.eup %2589  ;;  %v1922_v22 = vadd.f32 1e-05, %v1920_v20 }
0x18f9   :  { %v1924_v45 = vmul.f32 %v2590_v34, %v1921_v5  ;;  %vm1930_vm1 = vweird.f32 %v2590_v34 }
0x18fa   :  { %2591 = vrsqrt.f32 %v1922_v22  ;;  %vm1931_vm3 = vmor %vm1929_vm2, %vm1930_vm1  ;;  %vm1939_vm6 = vweird.f32 %v1922_v22 }
0x18fb   :  { %v1925_v24 = vmul.f32 %v2590_v34, %v1924_v45 }
0x18fd   :  { %v1926_v16 = vmul.f32 0.5, %v1925_v24 }
0x18ff   :  { %v1927_v63 = vsub.f32 1.5, %v1926_v16 }
0x1900   :  { %v2592_v27 = vpop.eup %2591 }
0x1901   :  { %v1928_v57 = vmul.f32 %v2590_v34, %v1927_v63  ;;  %v1934_v28 = vmul.f32 %v2592_v27, %v1922_v22  ;;  %vm1940_vm5 = vweird.f32 %v2592_v27 }
0x1902   :  { %vm1941_vm7 = vmor %vm1939_vm6, %vm1940_vm5 }
0x1903   :  { %v1935_v30 = vmul.f32 %v2592_v27, %v1934_v28  ;;  %v1932_v31 = vsel %vm1931_vm3, %v2590_v34, %v1928_v57 }
0x1904   :  { %v1943_v38 = vmul.f32 %v1932_v31, %v1909_v61 }
0x1905   :  { %v1936_v32 = vmul.f32 0.5, %v1935_v30  ;;  %v2442_v30 = vld [vmem:[%s3387_s5 + $0x1c] ss:$0 sm:$0xff] }
0x1906   :  { %v1946_v41 = vmul.f32 %v2437_v36, %v1943_v38 }
0x1907   :  { %v1937_v35 = vsub.f32 1.5, %v1936_v32 }
0x1908   :  { %v1949_v44 = vadd.f32 %v2438_v29, %v1946_v41 }
0x1909   :  { %v1938_v60 = vmul.f32 %v2592_v27, %v1937_v35 }
0x190b   :  { %v1942_v62 = vsel %vm1941_vm7, %v2592_v27, %v1938_v60  ;;  %v2441_v27 = vld [vmem:[%s3387_s5 + $0x1b] ss:$0 sm:$0xff] }
0x190c   :  { %v1944_v42 = vmul.f32 %v1942_v62, %v1910_v39 }
0x190e   :  { %v1947_v43 = vmul.f32 %v2437_v36, %v1944_v42 }
0x1910   :  { %v1950_v46 = vadd.f32 %v2438_v29, %v1947_v43 }
0x1912   :  { %v1951_v47 = vpack.c.bf16 %v1950_v46, %v1949_v44 }
0x1914   :  { %2276 = vmatmul.msk.bf16.vlgmr.msrb.gmra.mxu0 %vm92_vm0, %v1951_v47 }
0x1991   :  { %v1978_v18 = vpop.f32.mrf.mxu0 }
0x1992   :  { %v1979_v51 = vadd.f32 %v2439_v10, %v1978_v18 }
0x1994   :  { %v1983_v53 = vmax.f32 %v1979_v51, 0.0 }
0x1999   :  { %v1980_v52 = vpop.f32.mrf.mxu0 }
0x199a   :  { %v1981_v11 = vadd.f32 %v2439_v10, %v1980_v52 }
0x199c   :  { %v1984_v9 = vmax.f32 %v1981_v11, 0.0 }
0x199e   :  { %v1985_v54 = vpack.c.bf16 %v1984_v9, %v1983_v53 }
0x19a0   :  { %2044 = vmatmul.bf16.vlgmr.msrb.gmra.mxu1 %v1985_v54 }
0x1a1d   :  { %v2045_v37 = vpop.f32.mrf.mxu1 }
0x1a1e   :  { %v2046_v58 = vadd.f32 %v2440_v56, %v2045_v37 }
0x1a20   :  { %v2050_v59 = vadd.f32 %v2046_v58, %v1949_v44 }
0x1a22   :  { %v2054_v61 = vsel %vm92_vm0, %v2050_v59, 0.0 }
0x1a23   :  { %2055 = vadd.xlane.f32.xlu2 %v2054_v61 }
0x1a25   :  { %v2047_v0 = vpop.f32.mrf.mxu1 }
0x1a26   :  { %v2048_v1 = vadd.f32 %v2440_v56, %v2047_v0 }
0x1a28   :  { %v2051_v2 = vadd.f32 %v2048_v1, %v1950_v46 }
0x1a2a   :  { %v2057_v12 = vsel %vm92_vm0, %v2051_v2, 0.0 }
0x1a2b   :  { %2058 = vadd.xlane.f32.xlu2 %v2057_v12 }
0x1a96   :  { %v2056_v39 = vpop.xlane.xlu2 %2055 }
0x1a97   :  { %v2060_v3 = vmul.f32 %v2056_v39, %v2840_v50 }
0x1a99   :  { %v2062_v4 = vsub.f32 %v2050_v59, %v2060_v3 }
0x1a9b   :  { %v2064_v21 = vmul.f32 %v2062_v4, %v2062_v4 }
0x1a9d   :  { %v2066_v7 = vsel %vm92_vm0, %v2064_v21, 0.0 }
0x1a9e   :  { %2067 = vadd.xlane.f32.xlu2 %v2066_v7  ;;  %v2059_v8 = vpop.xlane.xlu2 %2058 }
0x1a9f   :  { %v2061_v13 = vmul.f32 %v2059_v8, %v2840_v50 }
0x1aa1   :  { %v2063_v26 = vsub.f32 %v2051_v2, %v2061_v13 }
0x1aa3   :  { %v2065_v14 = vmul.f32 %v2063_v26, %v2063_v26 }
0x1aa5   :  { %v2069_v15 = vsel %vm92_vm0, %v2065_v14, 0.0 }
0x1aa6   :  { %2070 = vadd.xlane.f32.xlu0 %v2069_v15 }
0x1b11   :  { %v2068_v5 = vpop.xlane.xlu2 %2067 }
0x1b12   :  { %v2072_v17 = vmul.f32 %v2068_v5, %v2840_v50 }
0x1b14   :  { %v2074_v19 = vadd.f32 1e-05, %v2072_v17 }
0x1b16   :  { %2593 = vrsqrt.f32 %v2074_v19  ;;  %vm2082_vm9 = vweird.f32 %v2074_v19 }
0x1b19   :  { %v2071_v33 = vpop.xlane.xlu0 %2070 }
0x1b1a   :  { %v2073_v20 = vmul.f32 %v2071_v33, %v2840_v50 }
0x1b1c   :  { %v2594_v6 = vpop.eup %2593  ;;  %v2075_v34 = vadd.f32 1e-05, %v2073_v20 }
0x1b1d   :  { %v2077_v22 = vmul.f32 %v2594_v6, %v2074_v19  ;;  %vm2083_vm8 = vweird.f32 %v2594_v6 }
0x1b1e   :  { %2595 = vrsqrt.f32 %v2075_v34  ;;  %vm2084_vm10 = vmor %vm2082_vm9, %vm2083_vm8  ;;  %vm2092_vm12 = vweird.f32 %v2075_v34 }
0x1b1f   :  { %v2078_v45 = vmul.f32 %v2594_v6, %v2077_v22 }
0x1b21   :  { %v2079_v23 = vmul.f32 0.5, %v2078_v45 }
0x1b23   :  { %v2080_v24 = vsub.f32 1.5, %v2079_v23 }
0x1b24   :  { %v2596_v16 = vpop.eup %2595 }
0x1b25   :  { %v2081_v25 = vmul.f32 %v2594_v6, %v2080_v24  ;;  %v2087_v63 = vmul.f32 %v2596_v16, %v2075_v34  ;;  %vm2093_vm11 = vweird.f32 %v2596_v16 }
0x1b26   :  { %vm2094_vm13 = vmor %vm2092_vm12, %vm2093_vm11 }
0x1b27   :  { %v2085_v57 = vsel %vm2084_vm10, %v2594_v6, %v2081_v25  ;;  %v2088_v28 = vmul.f32 %v2596_v16, %v2087_v63 }
0x1b28   :  { %v2096_v50 = vmul.f32 %v2085_v57, %v2062_v4 }
0x1b29   :  { %v2089_v31 = vmul.f32 0.5, %v2088_v28 }
0x1b2a   :  { %v2099_v32 = vmul.f32 %v2441_v27, %v2096_v50 }
0x1b2b   :  { %v2090_v35 = vsub.f32 1.5, %v2089_v31 }
0x1b2c   :  { %v2102_v36 = vadd.f32 %v2442_v30, %v2099_v32 }
0x1b2d   :  { %v2091_v38 = vmul.f32 %v2596_v16, %v2090_v35 }
0x1b2e   :  { %2104 = vst.msk [vmem:[#allocation5] sm:$0xff] %vm92_vm0, %v2102_v36 }
0x1b2f   :  { %v2095_v60 = vsel %vm2094_vm13, %v2596_v16, %v2091_v38 }
0x1b30   :  { %v2097_v62 = vmul.f32 %v2095_v60, %v2063_v26 }
0x1b32   :  { %v2100_v29 = vmul.f32 %v2441_v27, %v2097_v62 }
0x1b34   :  { %v2103_v41 = vadd.f32 %v2442_v30, %v2100_v29 }
0x1b36   :  { %2105 = vst.msk [vmem:[#allocation5 + $0x8] sm:$0xff] %vm92_vm0, %v2103_v41 }
0x1b37   :  { %2118 = dma.vmem_to_hbm [thread:$0]  %s2111_s14, 256, %s2113_s15, [#allocation4], %s2655_s26, %s2655_s26, %s2656_s27  }
0x1b38   :  { %2652 = dma.done.wait [#allocation4], 256  }
0x1b39   :  { %2653 = vsyncadd [#allocation4], 4294967040 }
0x1b3a   :  { %2123 = vsyncpa [#allocation3], 1 }
0x1b3b   :  { %2124 = vsyncpa [#allocation4], 1 }

</bundles_post_ra>
